<compile_context>
chip_gen: v5e
topology: v5e:2x2
jax: 0.10.0
libtpu: 0.0.40
codegen_flags: <defaults>
</compile_context>

<pallas_src>
import functools

import numpy as np
import jax
import jax.numpy as jnp
from jax.experimental import pallas as pl
from jax.experimental.pallas import tpu as pltpu

EXPANSION = 4
BN_EPS = 1e-5


# ----------------------------- small helpers ------------------------------- #

def _round_up(x, m):
  return ((x + m - 1) // m) * m


def _scatter_pad_matrix(h, w, pad):
  """P: (PADFLAT_AL, h*w) 0/1. x1_padded_flat = P @ x1_flat (zero border)."""
  wp, hp = w + 2 * pad, h + 2 * pad
  pf = _round_up(hp * wp, 8)
  m = np.zeros((pf, h * w), np.float32)
  for i in range(h):
    for j in range(w):
      m[(i + pad) * wp + (j + pad), i * w + j] = 1.0
  return m


def _select_conv2_matrix(h, w, pad, stride):
  """S: (OH*OW, LEN_FULL) 0/1. Picks strided output rows of full-res conv2."""
  wp = w + 2 * pad
  oh = (h + 2 * pad - 3) // stride + 1
  ow = (w + 2 * pad - 3) // stride + 1
  len_full = (h - 1) * wp + w
  m = np.zeros((oh * ow, len_full), np.float32)
  for a in range(oh):
    for b in range(ow):
      m[a * ow + b, (stride * a) * wp + stride * b] = 1.0
  return m, oh, ow


def _select_stride_matrix(h, w, stride):
  """Sd: (OH*OW, h*w) 0/1. Picks strided positions from the unpadded input."""
  oh = (h - 1) // stride + 1
  ow = (w - 1) // stride + 1
  m = np.zeros((oh * ow, h * w), np.float32)
  for a in range(oh):
    for b in range(ow):
      m[a * ow + b, (stride * a) * w + stride * b] = 1.0
  return m


def _fold_bn(p):
  """Fold eval-mode BN into the conv weight (scale) and a shift row."""
  scale = p["gamma"] * jax.lax.rsqrt(p["var"] + BN_EPS)
  cout = p["w"].shape[-1]
  w = p["w"] * scale[None, None, None, :]
  shift = ((p["b"] - p["mean"]) * scale + p["beta"]).reshape(1, cout)
  return w, shift


# --------------------------- fused bottleneck kernel ------------------------ #

def _bottleneck_kernel(x_ref, w1_ref, s1_ref, w2_ref, s2_ref, w3_ref, s3_ref,
                       pmat_ref, smat_ref, *rest, w_pad, len_full,
                       has_downsample):
  if has_downsample:
    wd_ref, sd_ref, sdmat_ref, o_ref, x1p_ref = rest
  else:
    o_ref, x1p_ref = rest

  f32, bf16 = jnp.float32, jnp.bfloat16

  x2d = x_ref[0]                                     # (H*W, Cin) f32
  x2d_bf = x2d.astype(bf16)

  # ---- conv1 (1x1) + bn1 + ReLU : (H*W, C1) ----
  t = jnp.dot(x2d_bf, w1_ref[...], preferred_element_type=f32)
  t = jnp.maximum(t + s1_ref[...], 0.0)

  # ---- scatter into the zero-padded, flattened spatial layout (VMEM) ----
  x1p_ref[...] = jnp.dot(pmat_ref[...], t.astype(bf16),
                         preferred_element_type=f32)

  # ---- conv2 (3x3) + bn2 + ReLU : 9 shifted-view accumulating matmuls ----
  c1 = w2_ref.shape[-1]
  acc = jnp.zeros((len_full, c1), f32)
  for tap in range(9):
    di, dj = tap // 3, tap % 3
    a = x1p_ref[pl.ds(di * w_pad + dj, len_full), :].astype(bf16)
    acc = acc + jnp.dot(a, w2_ref[tap], preferred_element_type=f32)
  y2 = jnp.maximum(acc + s2_ref[...], 0.0)           # (LEN_FULL, C1)

  # strided spatial selection (exact 0/1 matmul): (OH*OW, C1)
  y2s = jnp.dot(smat_ref[...], y2.astype(bf16), preferred_element_type=f32)

  # ---- conv3 (1x1) + bn3 ----
  y3 = jnp.dot(y2s.astype(bf16), w3_ref[...], preferred_element_type=f32)
  y3 = y3 + s3_ref[...]

  # ---- residual branch ----
  if has_downsample:
    xs = jnp.dot(sdmat_ref[...], x2d_bf, preferred_element_type=f32)
    ident = jnp.dot(xs.astype(bf16), wd_ref[...], preferred_element_type=f32)
    ident = ident + sd_ref[...]
  else:
    ident = x2d                                      # Cin == C3, stride == 1

  o_ref[0] = jnp.maximum(y3 + ident, 0.0).astype(o_ref.dtype)


# --------------------------------- forward ---------------------------------- #

@functools.partial(jax.jit, static_argnames=("stride",))
def bottleneck_forward(x_nchw, params, *, stride):
  n, cin, h, w = x_nchw.shape
  # NCHW module interface; a real pipeline would stay NHWC end-to-end and
  # drop these two small layout copies.
  x = jnp.transpose(x_nchw, (0, 2, 3, 1)).reshape(n, h * w, cin)

  w1, s1 = _fold_bn(params["conv1"])
  c1 = w1.shape[-1]
  w1 = w1.reshape(cin, c1).astype(jnp.bfloat16)
  w2, s2 = _fold_bn(params["conv2"])
  w2 = w2.reshape(9, c1, c1).astype(jnp.bfloat16)
  w3, s3 = _fold_bn(params["conv3"])
  c3 = w3.shape[-1]
  w3 = w3.reshape(c1, c3).astype(jnp.bfloat16)

  w_pad = w + 2
  len_full = (h - 1) * w_pad + w
  pmat = jnp.asarray(_scatter_pad_matrix(h, w, 1), jnp.bfloat16)
  smat_np, oh, ow = _select_conv2_matrix(h, w, 1, stride)
  smat = jnp.asarray(smat_np, jnp.bfloat16)

  has_downsample = params["downsample"] is not None

  args = [x, w1, s1, w2, s2, w3, s3, pmat, smat]
  in_specs = [
      pl.BlockSpec((1, h * w, cin), lambda i: (i, 0, 0)),
      pl.BlockSpec(w1.shape, lambda i: (0, 0)),
      pl.BlockSpec(s1.shape, lambda i: (0, 0)),
      pl.BlockSpec(w2.shape, lambda i: (0, 0, 0)),
      pl.BlockSpec(s2.shape, lambda i: (0, 0)),
      pl.BlockSpec(w3.shape, lambda i: (0, 0)),
      pl.BlockSpec(s3.shape, lambda i: (0, 0)),
      pl.BlockSpec(pmat.shape, lambda i: (0, 0)),
      pl.BlockSpec(smat.shape, lambda i: (0, 0)),
  ]
  if has_downsample:
    wd, sd = _fold_bn(params["downsample"])
    wd = wd.reshape(cin, c3).astype(jnp.bfloat16)
    sdmat = jnp.asarray(_select_stride_matrix(h, w, stride), jnp.bfloat16)
    args += [wd, sd, sdmat]
    in_specs += [
        pl.BlockSpec(wd.shape, lambda i: (0, 0)),
        pl.BlockSpec(sd.shape, lambda i: (0, 0)),
        pl.BlockSpec(sdmat.shape, lambda i: (0, 0)),
    ]

  kernel = functools.partial(_bottleneck_kernel, w_pad=w_pad,
                             len_full=len_full, has_downsample=has_downsample)
  out = pl.pallas_call(
      kernel,
      out_shape=jax.ShapeDtypeStruct((n, oh * ow, c3), jnp.float32),
      grid=(n,),
      in_specs=in_specs,
      out_specs=pl.BlockSpec((1, oh * ow, c3), lambda i: (i, 0, 0)),
      scratch_shapes=[pltpu.VMEM((pmat.shape[0], c1), jnp.float32)],
      compiler_params=pltpu.CompilerParams(
          dimension_semantics=("parallel",)),
  )(*args)

  y = out.reshape(n, oh, ow, c3)
  return jnp.transpose(y, (0, 3, 1, 2))              # NHWC -> NCHW


# ------------------------------ parameter init ------------------------------ #

def init_conv_bn(key, kh, kw, cin, cout):
  kw_, kb, kg, kbe, km, kv = jax.random.split(key, 6)
  return dict(
      w=jax.random.normal(kw_, (kh, kw, cin, cout), jnp.float32) * 0.05,
      b=jax.random.normal(kb, (cout,), jnp.float32) * 0.05,
      gamma=1.0 + 0.1 * jax.random.normal(kg, (cout,), jnp.float32),
      beta=0.1 * jax.random.normal(kbe, (cout,), jnp.float32),
      mean=0.1 * jax.random.normal(km, (cout,), jnp.float32),
      var=1.0 + 0.1 * jnp.abs(jax.random.normal(kv, (cout,), jnp.float32)),
  )


def init_bottleneck(key, in_channels, out_channels, is_first_block):
  k1, k2, k3, k4 = jax.random.split(key, 4)
  return dict(
      conv1=init_conv_bn(k1, 1, 1, in_channels, out_channels),
      conv2=init_conv_bn(k2, 3, 3, out_channels, out_channels),
      conv3=init_conv_bn(k3, 1, 1, out_channels, out_channels * EXPANSION),
      downsample=(init_conv_bn(k4, 1, 1, in_channels,
                               out_channels * EXPANSION)
                  if is_first_block else None),
  )


# ---------------------------- pure-JAX reference ----------------------------- #

def _conv_bn_ref(x, p, stride, pad, relu, residual=None):
  y = jax.lax.conv_general_dilated(
      x, p["w"], window_strides=(stride, stride),
      padding=[(pad, pad), (pad, pad)],
      dimension_numbers=("NHWC", "HWIO", "NHWC"))
  y = y + p["b"]
  scale = p["gamma"] / jnp.sqrt(p["var"] + BN_EPS)
  y = (y - p["mean"]) * scale + p["beta"]
  if residual is not None:
    y = y + residual
  if relu:
    y = jnp.maximum(y, 0.0)
  return y


def bottleneck_ref(x_nchw, p, stride):
  x = jnp.transpose(x_nchw, (0, 2, 3, 1))
  identity = x
  out = _conv_bn_ref(x, p["conv1"], 1, 0, True)
  out = _conv_bn_ref(out, p["conv2"], stride, 1, True)
  if p["downsample"] is not None:
    identity = _conv_bn_ref(x, p["downsample"], stride, 0, False)
  out = _conv_bn_ref(out, p["conv3"], 1, 0, True, residual=identity)
  return jnp.transpose(out, (0, 3, 1, 2))


# ----------------------------------- main ------------------------------------ #

if __name__ == "__main__":
  key = jax.random.PRNGKey(0)
  kp1, kp2, kx = jax.random.split(key, 3)

  in_channels, out_channels, stride = 16, 8, 2
  # First block of a layer: downsample branch, stride 2.
  p1 = init_bottleneck(kp1, in_channels, out_channels, is_first_block=True)
  # Non-first block: identity skip, stride 1.
  p2 = init_bottleneck(kp2, out_channels * EXPANSION, out_channels,
                       is_first_block=False)

  x = jax.random.normal(kx, (2, in_channels, 16, 16), jnp.float32)  # NCHW

  y1 = bottleneck_forward(x, p1, stride=stride)
  y2 = bottleneck_forward(y1, p2, stride=1)
  jax.block_until_ready((y1, y2))

  assert y1.shape == (2, out_channels * EXPANSION, 8, 8), y1.shape
  assert y2.shape == (2, out_channels * EXPANSION, 8, 8), y2.shape
  assert bool(jnp.all(jnp.isfinite(y2)))
  assert bool(jnp.all(y2 >= 0.0))  # final ReLU

  # Correctness vs pure-JAX f32 reference (bf16 MXU operands -> loose tol).
  r1 = bottleneck_ref(x, p1, stride)
  r2 = bottleneck_ref(y1, p2, 1)
  err1 = float(jnp.max(jnp.abs(y1 - r1)) / (jnp.max(jnp.abs(r1)) + 1e-6))
  err2 = float(jnp.max(jnp.abs(y2 - r2)) / (jnp.max(jnp.abs(r2)) + 1e-6))
  assert err1 < 5e-2, err1
  assert err2 < 5e-2, err2

  print("KERNEL_OK")
</pallas_src>

<mosaic_0001>
module attributes {stable_mosaic.version = 11 : i64} {
  func.func @_bottleneck_kernel(%arg0: i32, %arg1: memref<1x256x16xf32, #tpu.memory_space<vmem>>, %arg2: memref<16x8xbf16, #tpu.memory_space<vmem>>, %arg3: memref<1x8xf32, #tpu.memory_space<vmem>>, %arg4: memref<9x8x8xbf16, #tpu.memory_space<vmem>>, %arg5: memref<1x8xf32, #tpu.memory_space<vmem>>, %arg6: memref<8x32xbf16, #tpu.memory_space<vmem>>, %arg7: memref<1x32xf32, #tpu.memory_space<vmem>>, %arg8: memref<328x256xbf16, #tpu.memory_space<vmem>>, %arg9: memref<64x286xbf16, #tpu.memory_space<vmem>>, %arg10: memref<16x32xbf16, #tpu.memory_space<vmem>>, %arg11: memref<1x32xf32, #tpu.memory_space<vmem>>, %arg12: memref<64x256xbf16, #tpu.memory_space<vmem>>, %arg13: memref<1x64x32xf32, #tpu.memory_space<vmem>>, %arg14: memref<328x8xf32, #tpu.memory_space<vmem>>) attributes {dimension_semantics = [#tpu.dimension_semantics<parallel>], iteration_bounds = array<i64: 2>, scalar_prefetch = 0 : i64, scratch_operands = 1 : i64, tpu.core_type = #tpu.core_type<tc>, window_params = [{transform_indices = @transform_0, window_bounds = array<i64: 1, 256, 16>}, {pipeline_mode = #tpu.pipeline_mode<synchronous>, transform_indices = @transform_1, window_bounds = array<i64: 16, 8>}, {pipeline_mode = #tpu.pipeline_mode<synchronous>, transform_indices = @transform_2, window_bounds = array<i64: 1, 8>}, {pipeline_mode = #tpu.pipeline_mode<synchronous>, transform_indices = @transform_3, window_bounds = array<i64: 9, 8, 8>}, {pipeline_mode = #tpu.pipeline_mode<synchronous>, transform_indices = @transform_4, window_bounds = array<i64: 1, 8>}, {pipeline_mode = #tpu.pipeline_mode<synchronous>, transform_indices = @transform_5, window_bounds = array<i64: 8, 32>}, {pipeline_mode = #tpu.pipeline_mode<synchronous>, transform_indices = @transform_6, window_bounds = array<i64: 1, 32>}, {pipeline_mode = #tpu.pipeline_mode<synchronous>, transform_indices = @transform_7, window_bounds = array<i64: 328, 256>}, {pipeline_mode = #tpu.pipeline_mode<synchronous>, transform_indices = @transform_8, window_bounds = array<i64: 64, 286>}, {pipeline_mode = #tpu.pipeline_mode<synchronous>, transform_indices = @transform_9, window_bounds = array<i64: 16, 32>}, {pipeline_mode = #tpu.pipeline_mode<synchronous>, transform_indices = @transform_10, window_bounds = array<i64: 1, 32>}, {pipeline_mode = #tpu.pipeline_mode<synchronous>, transform_indices = @transform_11, window_bounds = array<i64: 64, 256>}, {transform_indices = @transform_12, window_bounds = array<i64: 1, 64, 32>}]} {
    %c0 = arith.constant 0 : index
    %c0_0 = arith.constant 0 : index
    %c0_1 = arith.constant 0 : index
    %0 = vector.load %arg1[%c0, %c0_0, %c0_1] : memref<1x256x16xf32, #tpu.memory_space<vmem>>, vector<1x256x16xf32>
    %1 = vector.shape_cast %0 : vector<1x256x16xf32> to vector<256x16xf32>
    %2 = arith.truncf %1 : vector<256x16xf32> to vector<256x16xbf16>
    %c0_2 = arith.constant 0 : index
    %c0_3 = arith.constant 0 : index
    %3 = vector.load %arg2[%c0_2, %c0_3] : memref<16x8xbf16, #tpu.memory_space<vmem>>, vector<16x8xbf16>
    %cst = arith.constant dense<0.000000e+00> : vector<256x8xf32>
    %4 = tpu.matmul %2, %3, %cst {dimension_numbers = #tpu.dot_dimension_numbers<[1], [0], [0], [1], [0, 0, 1, 1], [], []>} : vector<256x16xbf16>, vector<16x8xbf16>, vector<256x8xf32> -> vector<256x8xf32>
    %c0_4 = arith.constant 0 : index
    %c0_5 = arith.constant 0 : index
    %5 = vector.load %arg3[%c0_4, %c0_5] : memref<1x8xf32, #tpu.memory_space<vmem>>, vector<1x8xf32>
    %6 = vector.broadcast %5 : vector<1x8xf32> to vector<256x8xf32>
    %7 = arith.addf %4, %6 : vector<256x8xf32>
    %cst_6 = arith.constant 0.000000e+00 : f32
    %8 = vector.broadcast %cst_6 : f32 to vector<256x8xf32>
    %9 = arith.maximumf %7, %8 : vector<256x8xf32>
    %c0_7 = arith.constant 0 : index
    %c0_8 = arith.constant 0 : index
    %10 = vector.load %arg8[%c0_7, %c0_8] : memref<328x256xbf16, #tpu.memory_space<vmem>>, vector<328x256xbf16>
    %11 = arith.truncf %9 : vector<256x8xf32> to vector<256x8xbf16>
    %cst_9 = arith.constant dense<0.000000e+00> : vector<328x8xf32>
    %12 = tpu.matmul %10, %11, %cst_9 {dimension_numbers = #tpu.dot_dimension_numbers<[1], [0], [0], [1], [0, 0, 1, 1], [], []>} : vector<328x256xbf16>, vector<256x8xbf16>, vector<328x8xf32> -> vector<328x8xf32>
    %c0_10 = arith.constant 0 : index
    %c0_11 = arith.constant 0 : index
    %13 = vector.load %arg14[%c0_10, %c0_11] : memref<328x8xf32, #tpu.memory_space<vmem>>, vector<328x8xf32>
    tpu.vector_store %arg14[%c0_10, %c0_11], %12 {strides = array<i32>} : memref<328x8xf32, #tpu.memory_space<vmem>>, vector<328x8xf32>,
    %cst_12 = arith.constant 0.000000e+00 : f32
    %14 = vector.broadcast %cst_12 : f32 to vector<286x8xf32>
    %c0_13 = arith.constant 0 : index
    %c0_14 = arith.constant 0 : index
    %15 = vector.load %arg14[%c0_13, %c0_14] : memref<328x8xf32, #tpu.memory_space<vmem>>, vector<286x8xf32>
    %16 = arith.truncf %15 : vector<286x8xf32> to vector<286x8xbf16>
    %c0_15 = arith.constant 0 : index
    %c0_16 = arith.constant 0 : index
    %c0_17 = arith.constant 0 : index
    %17 = vector.load %arg4[%c0_15, %c0_16, %c0_17] : memref<9x8x8xbf16, #tpu.memory_space<vmem>>, vector<1x8x8xbf16>
    %18 = vector.shape_cast %17 : vector<1x8x8xbf16> to vector<8x8xbf16>
    %cst_18 = arith.constant dense<0.000000e+00> : vector<286x8xf32>
    %19 = tpu.matmul %16, %18, %cst_18 {dimension_numbers = #tpu.dot_dimension_numbers<[1], [0], [0], [1], [0, 0, 1, 1], [], []>} : vector<286x8xbf16>, vector<8x8xbf16>, vector<286x8xf32> -> vector<286x8xf32>
    %20 = arith.addf %14, %19 : vector<286x8xf32>
    %c1 = arith.constant 1 : index
    %c0_19 = arith.constant 0 : index
    %21 = vector.load %arg14[%c1, %c0_19] : memref<328x8xf32, #tpu.memory_space<vmem>>, vector<286x8xf32>
    %22 = arith.truncf %21 : vector<286x8xf32> to vector<286x8xbf16>
    %c1_20 = arith.constant 1 : index
    %c0_21 = arith.constant 0 : index
    %c0_22 = arith.constant 0 : index
    %23 = vector.load %arg4[%c1_20, %c0_21, %c0_22] : memref<9x8x8xbf16, #tpu.memory_space<vmem>>, vector<1x8x8xbf16>
    %24 = vector.shape_cast %23 : vector<1x8x8xbf16> to vector<8x8xbf16>
    %cst_23 = arith.constant dense<0.000000e+00> : vector<286x8xf32>
    %25 = tpu.matmul %22, %24, %cst_23 {dimension_numbers = #tpu.dot_dimension_numbers<[1], [0], [0], [1], [0, 0, 1, 1], [], []>} : vector<286x8xbf16>, vector<8x8xbf16>, vector<286x8xf32> -> vector<286x8xf32>
    %26 = arith.addf %20, %25 : vector<286x8xf32>
    %c2 = arith.constant 2 : index
    %c0_24 = arith.constant 0 : index
    %27 = vector.load %arg14[%c2, %c0_24] : memref<328x8xf32, #tpu.memory_space<vmem>>, vector<286x8xf32>
    %28 = arith.truncf %27 : vector<286x8xf32> to vector<286x8xbf16>
    %c2_25 = arith.constant 2 : index
    %c0_26 = arith.constant 0 : index
    %c0_27 = arith.constant 0 : index
    %29 = vector.load %arg4[%c2_25, %c0_26, %c0_27] : memref<9x8x8xbf16, #tpu.memory_space<vmem>>, vector<1x8x8xbf16>
    %30 = vector.shape_cast %29 : vector<1x8x8xbf16> to vector<8x8xbf16>
    %cst_28 = arith.constant dense<0.000000e+00> : vector<286x8xf32>
    %31 = tpu.matmul %28, %30, %cst_28 {dimension_numbers = #tpu.dot_dimension_numbers<[1], [0], [0], [1], [0, 0, 1, 1], [], []>} : vector<286x8xbf16>, vector<8x8xbf16>, vector<286x8xf32> -> vector<286x8xf32>
    %32 = arith.addf %26, %31 : vector<286x8xf32>
    %c18 = arith.constant 18 : index
    %c0_29 = arith.constant 0 : index
    %33 = vector.load %arg14[%c18, %c0_29] : memref<328x8xf32, #tpu.memory_space<vmem>>, vector<286x8xf32>
    %34 = arith.truncf %33 : vector<286x8xf32> to vector<286x8xbf16>
    %c3 = arith.constant 3 : index
    %c0_30 = arith.constant 0 : index
    %c0_31 = arith.constant 0 : index
    %35 = vector.load %arg4[%c3, %c0_30, %c0_31] : memref<9x8x8xbf16, #tpu.memory_space<vmem>>, vector<1x8x8xbf16>
    %36 = vector.shape_cast %35 : vector<1x8x8xbf16> to vector<8x8xbf16>
    %cst_32 = arith.constant dense<0.000000e+00> : vector<286x8xf32>
    %37 = tpu.matmul %34, %36, %cst_32 {dimension_numbers = #tpu.dot_dimension_numbers<[1], [0], [0], [1], [0, 0, 1, 1], [], []>} : vector<286x8xbf16>, vector<8x8xbf16>, vector<286x8xf32> -> vector<286x8xf32>
    %38 = arith.addf %32, %37 : vector<286x8xf32>
    %c19 = arith.constant 19 : index
    %c0_33 = arith.constant 0 : index
    %39 = vector.load %arg14[%c19, %c0_33] : memref<328x8xf32, #tpu.memory_space<vmem>>, vector<286x8xf32>
    %40 = arith.truncf %39 : vector<286x8xf32> to vector<286x8xbf16>
    %c4 = arith.constant 4 : index
    %c0_34 = arith.constant 0 : index
    %c0_35 = arith.constant 0 : index
    %41 = vector.load %arg4[%c4, %c0_34, %c0_35] : memref<9x8x8xbf16, #tpu.memory_space<vmem>>, vector<1x8x8xbf16>
    %42 = vector.shape_cast %41 : vector<1x8x8xbf16> to vector<8x8xbf16>
    %cst_36 = arith.constant dense<0.000000e+00> : vector<286x8xf32>
    %43 = tpu.matmul %40, %42, %cst_36 {dimension_numbers = #tpu.dot_dimension_numbers<[1], [0], [0], [1], [0, 0, 1, 1], [], []>} : vector<286x8xbf16>, vector<8x8xbf16>, vector<286x8xf32> -> vector<286x8xf32>
    %44 = arith.addf %38, %43 : vector<286x8xf32>
    %c20 = arith.constant 20 : index
    %c0_37 = arith.constant 0 : index
    %45 = vector.load %arg14[%c20, %c0_37] : memref<328x8xf32, #tpu.memory_space<vmem>>, vector<286x8xf32>
    %46 = arith.truncf %45 : vector<286x8xf32> to vector<286x8xbf16>
    %c5 = arith.constant 5 : index
    %c0_38 = arith.constant 0 : index
    %c0_39 = arith.constant 0 : index
    %47 = vector.load %arg4[%c5, %c0_38, %c0_39] : memref<9x8x8xbf16, #tpu.memory_space<vmem>>, vector<1x8x8xbf16>
    %48 = vector.shape_cast %47 : vector<1x8x8xbf16> to vector<8x8xbf16>
    %cst_40 = arith.constant dense<0.000000e+00> : vector<286x8xf32>
    %49 = tpu.matmul %46, %48, %cst_40 {dimension_numbers = #tpu.dot_dimension_numbers<[1], [0], [0], [1], [0, 0, 1, 1], [], []>} : vector<286x8xbf16>, vector<8x8xbf16>, vector<286x8xf32> -> vector<286x8xf32>
    %50 = arith.addf %44, %49 : vector<286x8xf32>
    %c36 = arith.constant 36 : index
    %c0_41 = arith.constant 0 : index
    %51 = vector.load %arg14[%c36, %c0_41] : memref<328x8xf32, #tpu.memory_space<vmem>>, vector<286x8xf32>
    %52 = arith.truncf %51 : vector<286x8xf32> to vector<286x8xbf16>
    %c6 = arith.constant 6 : index
    %c0_42 = arith.constant 0 : index
    %c0_43 = arith.constant 0 : index
    %53 = vector.load %arg4[%c6, %c0_42, %c0_43] : memref<9x8x8xbf16, #tpu.memory_space<vmem>>, vector<1x8x8xbf16>
    %54 = vector.shape_cast %53 : vector<1x8x8xbf16> to vector<8x8xbf16>
    %cst_44 = arith.constant dense<0.000000e+00> : vector<286x8xf32>
    %55 = tpu.matmul %52, %54, %cst_44 {dimension_numbers = #tpu.dot_dimension_numbers<[1], [0], [0], [1], [0, 0, 1, 1], [], []>} : vector<286x8xbf16>, vector<8x8xbf16>, vector<286x8xf32> -> vector<286x8xf32>
    %56 = arith.addf %50, %55 : vector<286x8xf32>
    %c37 = arith.constant 37 : index
    %c0_45 = arith.constant 0 : index
    %57 = vector.load %arg14[%c37, %c0_45] : memref<328x8xf32, #tpu.memory_space<vmem>>, vector<286x8xf32>
    %58 = arith.truncf %57 : vector<286x8xf32> to vector<286x8xbf16>
    %c7 = arith.constant 7 : index
    %c0_46 = arith.constant 0 : index
    %c0_47 = arith.constant 0 : index
    %59 = vector.load %arg4[%c7, %c0_46, %c0_47] : memref<9x8x8xbf16, #tpu.memory_space<vmem>>, vector<1x8x8xbf16>
    %60 = vector.shape_cast %59 : vector<1x8x8xbf16> to vector<8x8xbf16>
    %cst_48 = arith.constant dense<0.000000e+00> : vector<286x8xf32>
    %61 = tpu.matmul %58, %60, %cst_48 {dimension_numbers = #tpu.dot_dimension_numbers<[1], [0], [0], [1], [0, 0, 1, 1], [], []>} : vector<286x8xbf16>, vector<8x8xbf16>, vector<286x8xf32> -> vector<286x8xf32>
    %62 = arith.addf %56, %61 : vector<286x8xf32>
    %c38 = arith.constant 38 : index
    %c0_49 = arith.constant 0 : index
    %63 = vector.load %arg14[%c38, %c0_49] : memref<328x8xf32, #tpu.memory_space<vmem>>, vector<286x8xf32>
    %64 = arith.truncf %63 : vector<286x8xf32> to vector<286x8xbf16>
    %c8 = arith.constant 8 : index
    %c0_50 = arith.constant 0 : index
    %c0_51 = arith.constant 0 : index
    %65 = vector.load %arg4[%c8, %c0_50, %c0_51] : memref<9x8x8xbf16, #tpu.memory_space<vmem>>, vector<1x8x8xbf16>
    %66 = vector.shape_cast %65 : vector<1x8x8xbf16> to vector<8x8xbf16>
    %cst_52 = arith.constant dense<0.000000e+00> : vector<286x8xf32>
    %67 = tpu.matmul %64, %66, %cst_52 {dimension_numbers = #tpu.dot_dimension_numbers<[1], [0], [0], [1], [0, 0, 1, 1], [], []>} : vector<286x8xbf16>, vector<8x8xbf16>, vector<286x8xf32> -> vector<286x8xf32>
    %68 = arith.addf %62, %67 : vector<286x8xf32>
    %c0_53 = arith.constant 0 : index
    %c0_54 = arith.constant 0 : index
    %69 = vector.load %arg5[%c0_53, %c0_54] : memref<1x8xf32, #tpu.memory_space<vmem>>, vector<1x8xf32>
    %70 = vector.broadcast %69 : vector<1x8xf32> to vector<286x8xf32>
    %71 = arith.addf %68, %70 : vector<286x8xf32>
    %cst_55 = arith.constant 0.000000e+00 : f32
    %72 = vector.broadcast %cst_55 : f32 to vector<286x8xf32>
    %73 = arith.maximumf %71, %72 : vector<286x8xf32>
    %c0_56 = arith.constant 0 : index
    %c0_57 = arith.constant 0 : index
    %74 = vector.load %arg9[%c0_56, %c0_57] : memref<64x286xbf16, #tpu.memory_space<vmem>>, vector<64x286xbf16>
    %75 = arith.truncf %73 : vector<286x8xf32> to vector<286x8xbf16>
    %cst_58 = arith.constant dense<0.000000e+00> : vector<64x8xf32>
    %76 = tpu.matmul %74, %75, %cst_58 {dimension_numbers = #tpu.dot_dimension_numbers<[1], [0], [0], [1], [0, 0, 1, 1], [], []>} : vector<64x286xbf16>, vector<286x8xbf16>, vector<64x8xf32> -> vector<64x8xf32>
    %77 = arith.truncf %76 : vector<64x8xf32> to vector<64x8xbf16>
    %c0_59 = arith.constant 0 : index
    %c0_60 = arith.constant 0 : index
    %78 = vector.load %arg6[%c0_59, %c0_60] : memref<8x32xbf16, #tpu.memory_space<vmem>>, vector<8x32xbf16>
    %cst_61 = arith.constant dense<0.000000e+00> : vector<64x32xf32>
    %79 = tpu.matmul %77, %78, %cst_61 {dimension_numbers = #tpu.dot_dimension_numbers<[1], [0], [0], [1], [0, 0, 1, 1], [], []>} : vector<64x8xbf16>, vector<8x32xbf16>, vector<64x32xf32> -> vector<64x32xf32>
    %c0_62 = arith.constant 0 : index
    %c0_63 = arith.constant 0 : index
    %80 = vector.load %arg7[%c0_62, %c0_63] : memref<1x32xf32, #tpu.memory_space<vmem>>, vector<1x32xf32>
    %81 = vector.broadcast %80 : vector<1x32xf32> to vector<64x32xf32>
    %82 = arith.addf %79, %81 : vector<64x32xf32>
    %c0_64 = arith.constant 0 : index
    %c0_65 = arith.constant 0 : index
    %83 = vector.load %arg12[%c0_64, %c0_65] : memref<64x256xbf16, #tpu.memory_space<vmem>>, vector<64x256xbf16>
    %cst_66 = arith.constant dense<0.000000e+00> : vector<64x16xf32>
    %84 = tpu.matmul %83, %2, %cst_66 {dimension_numbers = #tpu.dot_dimension_numbers<[1], [0], [0], [1], [0, 0, 1, 1], [], []>} : vector<64x256xbf16>, vector<256x16xbf16>, vector<64x16xf32> -> vector<64x16xf32>
    %85 = arith.truncf %84 : vector<64x16xf32> to vector<64x16xbf16>
    %c0_67 = arith.constant 0 : index
    %c0_68 = arith.constant 0 : index
    %86 = vector.load %arg10[%c0_67, %c0_68] : memref<16x32xbf16, #tpu.memory_space<vmem>>, vector<16x32xbf16>
    %cst_69 = arith.constant dense<0.000000e+00> : vector<64x32xf32>
    %87 = tpu.matmul %85, %86, %cst_69 {dimension_numbers = #tpu.dot_dimension_numbers<[1], [0], [0], [1], [0, 0, 1, 1], [], []>} : vector<64x16xbf16>, vector<16x32xbf16>, vector<64x32xf32> -> vector<64x32xf32>
    %c0_70 = arith.constant 0 : index
    %c0_71 = arith.constant 0 : index
    %88 = vector.load %arg11[%c0_70, %c0_71] : memref<1x32xf32, #tpu.memory_space<vmem>>, vector<1x32xf32>
    %89 = vector.broadcast %88 : vector<1x32xf32> to vector<64x32xf32>
    %90 = arith.addf %87, %89 : vector<64x32xf32>
    %91 = arith.addf %82, %90 : vector<64x32xf32>
    %cst_72 = arith.constant 0.000000e+00 : f32
    %92 = vector.broadcast %cst_72 : f32 to vector<64x32xf32>
    %93 = arith.maximumf %91, %92 : vector<64x32xf32>
    %c0_73 = arith.constant 0 : index
    %c0_74 = arith.constant 0 : index
    %c0_75 = arith.constant 0 : index
    %94 = vector.load %arg13[%c0_73, %c0_74, %c0_75] : memref<1x64x32xf32, #tpu.memory_space<vmem>>, vector<1x64x32xf32>
    %95 = vector.shape_cast %94 : vector<1x64x32xf32> to vector<64x32xf32>
    %96 = vector.shape_cast %93 : vector<64x32xf32> to vector<1x64x32xf32>
    tpu.vector_store %arg13[%c0_73, %c0_74, %c0_75], %96 {strides = array<i32>} : memref<1x64x32xf32, #tpu.memory_space<vmem>>, vector<1x64x32xf32>,
    return
  }
  func.func @transform_0(%arg0: i32) -> (i32, i32, i32) {
    %c0_i32 = arith.constant 0 : i32
    %c0_i32_0 = arith.constant 0 : i32
    %c0_i32_1 = arith.constant 0 : i32
    return %arg0, %c0_i32, %c0_i32_0 : i32, i32, i32
  }
  func.func @transform_1(%arg0: i32) -> (i32, i32) {
    %c0_i32 = arith.constant 0 : i32
    %c0_i32_0 = arith.constant 0 : i32
    %c0_i32_1 = arith.constant 0 : i32
    return %c0_i32, %c0_i32_0 : i32, i32
  }
  func.func @transform_2(%arg0: i32) -> (i32, i32) {
    %c0_i32 = arith.constant 0 : i32
    %c0_i32_0 = arith.constant 0 : i32
    %c0_i32_1 = arith.constant 0 : i32
    return %c0_i32, %c0_i32_0 : i32, i32
  }
  func.func @transform_3(%arg0: i32) -> (i32, i32, i32) {
    %c0_i32 = arith.constant 0 : i32
    %c0_i32_0 = arith.constant 0 : i32
    %c0_i32_1 = arith.constant 0 : i32
    %c0_i32_2 = arith.constant 0 : i32
    return %c0_i32, %c0_i32_0, %c0_i32_1 : i32, i32, i32
  }
  func.func @transform_4(%arg0: i32) -> (i32, i32) {
    %c0_i32 = arith.constant 0 : i32
    %c0_i32_0 = arith.constant 0 : i32
    %c0_i32_1 = arith.constant 0 : i32
    return %c0_i32, %c0_i32_0 : i32, i32
  }
  func.func @transform_5(%arg0: i32) -> (i32, i32) {
    %c0_i32 = arith.constant 0 : i32
    %c0_i32_0 = arith.constant 0 : i32
    %c0_i32_1 = arith.constant 0 : i32
    return %c0_i32, %c0_i32_0 : i32, i32
  }
  func.func @transform_6(%arg0: i32) -> (i32, i32) {
    %c0_i32 = arith.constant 0 : i32
    %c0_i32_0 = arith.constant 0 : i32
    %c0_i32_1 = arith.constant 0 : i32
    return %c0_i32, %c0_i32_0 : i32, i32
  }
  func.func @transform_7(%arg0: i32) -> (i32, i32) {
    %c0_i32 = arith.constant 0 : i32
    %c0_i32_0 = arith.constant 0 : i32
    %c0_i32_1 = arith.constant 0 : i32
    return %c0_i32, %c0_i32_0 : i32, i32
  }
  func.func @transform_8(%arg0: i32) -> (i32, i32) {
    %c0_i32 = arith.constant 0 : i32
    %c0_i32_0 = arith.constant 0 : i32
    %c0_i32_1 = arith.constant 0 : i32
    return %c0_i32, %c0_i32_0 : i32, i32
  }
  func.func @transform_9(%arg0: i32) -> (i32, i32) {
    %c0_i32 = arith.constant 0 : i32
    %c0_i32_0 = arith.constant 0 : i32
    %c0_i32_1 = arith.constant 0 : i32
    return %c0_i32, %c0_i32_0 : i32, i32
  }
  func.func @transform_10(%arg0: i32) -> (i32, i32) {
    %c0_i32 = arith.constant 0 : i32
    %c0_i32_0 = arith.constant 0 : i32
    %c0_i32_1 = arith.constant 0 : i32
    return %c0_i32, %c0_i32_0 : i32, i32
  }
  func.func @transform_11(%arg0: i32) -> (i32, i32) {
    %c0_i32 = arith.constant 0 : i32
    %c0_i32_0 = arith.constant 0 : i32
    %c0_i32_1 = arith.constant 0 : i32
    return %c0_i32, %c0_i32_0 : i32, i32
  }
  func.func @transform_12(%arg0: i32) -> (i32, i32, i32) {
    %c0_i32 = arith.constant 0 : i32
    %c0_i32_0 = arith.constant 0 : i32
    %c0_i32_1 = arith.constant 0 : i32
    return %arg0, %c0_i32, %c0_i32_0 : i32, i32, i32
  }
}

</mosaic_0001>

<bundles_post_ra>
// kernel: bottleneck_forward.1
= control target key start
LH: loop header
LB: loop body
LE: loop exit
PB: predicated region body
PF: predicated region fallthrough
CT: control target
= control target key end

     0   :  { %s6399_s0 = inlined_call_operand.vmem [shape: f32[2,256,16], index: 0, kind: input, shape index: {}]   ;;  %s6400_s1 = inlined_call_operand.vmem [shape: bf16[16,8], index: 1, kind: input, shape index: {}]   ;;  %s6401_s2 = inlined_call_operand.vmem [shape: f32[1,8], index: 2, kind: input, shape index: {}]   ;;  %s6402_s3 = inlined_call_operand.vmem [shape: bf16[9,8,8], index: 3, kind: input, shape index: {}]   ;;  %s6403_s4 = inlined_call_operand.vmem [shape: f32[1,8], index: 4, kind: input, shape index: {}]   ;;  %s6404_s5 = inlined_call_operand.vmem [shape: bf16[8,32], index: 5, kind: input, shape index: {}]   ;;  %s6405_s6 = inlined_call_operand.vmem [shape: f32[1,32], index: 6, kind: input, shape index: {}]   ;;  %s6406_s7 = inlined_call_operand.vmem [shape: bf16[328,256], index: 7, kind: input, shape index: {}]   ;;  %s6407_s8 = inlined_call_operand.vmem [shape: bf16[64,286], index: 8, kind: input, shape index: {}]   ;;  %s6408_s9 = inlined_call_operand.vmem [shape: bf16[16,32], index: 9, kind: input, shape index: {}]   ;;  %s6409_s10 = inlined_call_operand.vmem [shape: f32[1,32], index: 10, kind: input, shape index: {}]   ;;  %s6410_s11 = inlined_call_operand.vmem [shape: bf16[64,256], index: 11, kind: input, shape index: {}]   ;;  %s6411_s12 = inlined_call_operand.hbm [shape: f32[2,64,32], index: 12, kind: output, shape index: {}]  }
   0x1   :  { %6421 = sst [smem:[#allocation71_spill]] %s6399_s0 }
   0x2   :  { %6422 = sst [smem:[#allocation72_spill]] %s6400_s1 }
   0x3   :  { %17 = vsyncpa [#allocation4], 0 }
   0x4   :  { %19 = vsyncpa [#allocation4 + $0x1], 0  ;;  %s4627_s21 = smov 0   ;;  %s4629_s22 = smov 0  }
   0x5   :  { %s4631_s23 = smov 0   ;;  %s4633_s24 = smov 0  }
   0x6 LB: > { %s4648_s25 = sadd.s32 4294967295, %s4558_s24   ;;  %s3928_s26 = sadd.s32 4294967294, %s4558_s24   ;;  %s4558_s24 = sphi %s4633_s24, %s6634_s24   ;;  %s4554_s23 = sphi %s4631_s23, %s6633_s23   ;;  %s4550_s22 = sphi %s4629_s22, %s6632_s22   ;;  %s4546_s21 = sphi %s4627_s21, %s6631_s21  }
   0x7   : > { %s4652_s27 = sadd.s32 1, %s4558_s24   ;;  %s289_s28 = sadd.s32 1, %s4554_s23 }
   0x8   : > { %s286_s29 = ssub.s32 %s4558_s24, %s4652_s27  ;;  %p299_p0 = scmp.ne.s32.totalorder %s4554_s23, %s4550_s22 }
   0x9   : > { %p287_p1 = scmp.eq.s32.totalorder %s286_s29, 0  ;;  %p300_p2 = scmp.eq.s32.totalorder %s4648_s25, 1 }
   0xa   : > { %p305_p3 = scmp.ne.s32.totalorder %s4550_s22, %s4546_s21  ;;  %p306_p4 = scmp.eq.s32.totalorder %s3928_s26, 1 }
   0xb   : > { %s4663_s30 = scalar_select %p287_p1, %s4554_s23, %s289_s28  }
   0xc   : > { %p4665_p5 = por %p300_p2, %p299_p0  ;;  %p4669_p6 = por %p306_p4, %p305_p3 }
   0xd   : > { %p3931_p7 = scmp.ge.s32.totalorder %s4558_s24, 1  ;;  %p365_p8 = scmp.lt.s32.totalorder %s4558_s24, 3 }
   0xf   : > { %p366_p9 = pnand %p3931_p7, %p365_p8 }
  0x11   : > { %369 = sbr.rel (%p366_p9) target bundleno = 1929 (0x789), region = 68 }
  0x16   : > { %s6425_s1 = sld [smem:[#allocation72_spill]]  ;;  %p407_p10 = scmp.lt.s32.totalorder %s4648_s25, 1  ;;  %vm473_vm0 = vcmask 130048   ;;  %v4740_v29 = vld [vmem:[%s6401_s2] ss:$0 sm:$0xff]  ;;  %vm1340_vm1 = vcmask 1043456  }
  0x17   : > { %s6426_s0 = sld [smem:[#allocation71_spill]]  ;;  %vm1133_vm2 = vcmask 64512   ;;  %vm3518_vm3 = vcmask 1046528   ;;  %vm3505_vm4 = vcmask 244736   ;;  %vm3841_vm5 = vcmask 261120   ;;  %s4516_s29 = scalar_lea.hbm %s6411_s12, 128 }
  0x18   : > { %s408_s17 = scalar_select %p407_p10, %s4648_s25, 1 }
  0x1a   : > { %s4386_s18 = sshll.u32 %s408_s17, 8 }
  0x1c   : > { %v4387_v0 = vld [vmem:[%s6425_s1] sm:$0xff] }
  0x1d   : > { %529 = vmatpush.bf16.msra.mxu0 %v4387_v0  ;;  %4450 = vmatpush.bf16.msra.mxu3 %v4387_v0  ;;  %s4683_s26 = scalar_lea.vmem %s6426_s0, %s4386_s18  ;;  %s404_s18 = sand.u32 1, %s4550_s22  }
  0x1e   : > { %v413_v1 = vld [vmem:[%s4683_s26] sm:$0xff]  ;;  %v414_v2 = vld [vmem:[%s4683_s26 + $0x8] sm:$0xff]  ;;  %v415_v4 = vld [vmem:[%s4683_s26 + $0x10] sm:$0xff]  ;;  %s3932_s19 = sshll.u32 %s404_s18, 6 }
  0x1f   : > { %v4687_v3 = vpack.c.bf16 %v414_v2, %v413_v1  ;;  %v416_v5 = vld [vmem:[%s4683_s26 + $0x18] sm:$0xff]  ;;  %v417_v7 = vld [vmem:[%s4683_s26 + $0x20] sm:$0xff]  ;;  %v418_v8 = vld [vmem:[%s4683_s26 + $0x28] sm:$0xff]  ;;  %s6347_s20 = scalar_lea.vmem [#allocation3], %s3932_s19 }
  0x20   : > { %v4693_v6 = vpack.c.bf16 %v416_v5, %v415_v4  ;;  %v4699_v9 = vpack.c.bf16 %v418_v8, %v417_v7  ;;  %v419_v10 = vld [vmem:[%s4683_s26 + $0x30] sm:$0xff]  ;;  %v420_v11 = vld [vmem:[%s4683_s26 + $0x38] sm:$0xff]  ;;  %v421_v13 = vld [vmem:[%s4683_s26 + $0x40] sm:$0xff]  ;;  %s3863_s16 = sshll.u32 %s6347_s20, 4  ;;  %s3864_s16 = int_to_ptr.vmem [resolvable:$true] %s3863_s16 }
  0x21   : > { %3939 = vmatmul.msk.bf16.vlgmr.msra.gmra.mxu0 %vm473_vm0, %v4687_v3  ;;  %v4705_v12 = vpack.c.bf16 %v420_v11, %v419_v10  ;;  %v422_v14 = vld [vmem:[%s4683_s26 + $0x48] sm:$0xff]  ;;  %v423_v16 = vld [vmem:[%s4683_s26 + $0x50] sm:$0xff]  ;;  %v424_v17 = vld [vmem:[%s4683_s26 + $0x58] sm:$0xff] }
  0x22   : > { %v4711_v15 = vpack.c.bf16 %v422_v14, %v421_v13  ;;  %v4717_v18 = vpack.c.bf16 %v424_v17, %v423_v16  ;;  %v425_v19 = vld [vmem:[%s4683_s26 + $0x60] sm:$0xff]  ;;  %v426_v20 = vld [vmem:[%s4683_s26 + $0x68] sm:$0xff]  ;;  %v427_v22 = vld [vmem:[%s4683_s26 + $0x70] sm:$0xff] }
  0x23   : > { %v4723_v21 = vpack.c.bf16 %v426_v20, %v425_v19  ;;  %v428_v23 = vld [vmem:[%s4683_s26 + $0x78] sm:$0xff]  ;;  %v429_v25 = vld [vmem:[%s4683_s26 + $0x80] sm:$0xff]  ;;  %v430_v26 = vld [vmem:[%s4683_s26 + $0x88] sm:$0xff] }
  0x24   : > { %v4729_v24 = vpack.c.bf16 %v428_v23, %v427_v22  ;;  %v4735_v27 = vpack.c.bf16 %v430_v26, %v429_v25  ;;  %v431_v35 = vld [vmem:[%s4683_s26 + $0x90] sm:$0xff]  ;;  %v432_v36 = vld [vmem:[%s4683_s26 + $0x98] sm:$0xff]  ;;  %v433_v45 = vld [vmem:[%s4683_s26 + $0xa0] sm:$0xff] }
  0x25   : > { %v4750_v38 = vpack.c.bf16 %v432_v36, %v431_v35  ;;  %v434_v46 = vld [vmem:[%s4683_s26 + $0xa8] sm:$0xff]  ;;  %v435_v55 = vld [vmem:[%s4683_s26 + $0xb0] sm:$0xff]  ;;  %v436_v56 = vld [vmem:[%s4683_s26 + $0xb8] sm:$0xff] }
  0x26   : > { %v4760_v48 = vpack.c.bf16 %v434_v46, %v433_v45  ;;  %v443_v58 = vld [vmem:[%s4683_s26 + $0xf0] sm:$0xff]  ;;  %v444_v59 = vld [vmem:[%s4683_s26 + $0xf8] sm:$0xff]  ;;  %v4770_v60 = vpack.c.bf16 %v436_v56, %v435_v55  ;;  %v437_v0 = vld [vmem:[%s4683_s26 + $0xc0] sm:$0xff] }
  0x27   : > { %v4772_v61 = vpack.c.bf16 %v444_v59, %v443_v58  ;;  %v438_v1 = vld [vmem:[%s4683_s26 + $0xc8] sm:$0xff]  ;;  %v439_v7 = vld [vmem:[%s4683_s26 + $0xd0] sm:$0xff]  ;;  %v440_v8 = vld [vmem:[%s4683_s26 + $0xd8] sm:$0xff] }
  0x28   : > { %v4780_v2 = vpack.c.bf16 %v438_v1, %v437_v0  ;;  %v4786_v10 = vpack.c.bf16 %v440_v8, %v439_v7  ;;  %v441_v14 = vld [vmem:[%s4683_s26 + $0xe0] sm:$0xff]  ;;  %v442_v16 = vld [vmem:[%s4683_s26 + $0xe8] sm:$0xff]  ;;  %s4449_s26 = sshll.u32 %s4648_s25, 6  ;;  %s3851_s25 = scalar_lea.sflag [#allocation4], %s404_s18 }
  0x29   : > { %3954 = vmatmul.msk.bf16.vlgmr.msra.gmra.mxu3 %vm473_vm0, %v4772_v61  ;;  %v4792_v17 = vpack.c.bf16 %v442_v16, %v441_v14  ;;  %s3862_s15 = scalar_lea.hbm %s6411_s12, %s4449_s26 }
  0x2a   : > { %s3865_s0 = sshll.u32 %s3862_s15, 4  ;;  %s3866_s0 = int_to_ptr.hbm [resolvable:$true] %s3865_s0 }
  0x2b   : > { %s4510_s17 = sshra.s32 %s3866_s0, 4  ;;  %s4511_s17 = int_to_ptr.hbm [resolvable:$true] %s4510_s17 }
  0x2c   : > { %s4512_s19 = scalar_lea.hbm %s4511_s17, 64  ;;  %p4517_p0 = scmp.lt.s32.totalorder %s4511_s17, %s6411_s12 }
  0x2d   : > { %p4513_p11 = scmp.ne.s32.totalorder %s4511_s17, %s4512_s19  ;;  %p4518_p1 = scmp.lt.s32.totalorder %s4516_s29, %s4512_s19 }
  0x2f   : > { %p4514_p12 = pnand %p4513_p11, %p4665_p5  ;;  %p4519_p2 = por %p4518_p1, %p4517_p0 }
  0x31   : > { %3940 = vmatmul.msk.bf16.gmra.mxu0 %vm473_vm0, %v4693_v6  ;;  %p4515_p13 = pneg %p4514_p12 }
  0x33   : > { %p4520_p3 = pnand %p4519_p2, %p4515_p13 }
  0x41   : > { %3941 = vmatmul.msk.bf16.gmra.mxu0 %vm473_vm0, %v4699_v9 }
  0x51   : > { %3942 = vmatmul.msk.bf16.gmra.mxu0 %vm473_vm0, %v4705_v12 }
  0x61   : > { %3943 = vmatmul.msk.bf16.gmra.mxu0 %vm473_vm0, %v4711_v15 }
  0x71   : > { %3944 = vmatmul.msk.bf16.gmra.mxu0 %vm473_vm0, %v4717_v18 }
  0x81   : > { %3945 = vmatmul.msk.bf16.gmra.mxu0 %vm473_vm0, %v4723_v21 }
  0x91   : > { %3946 = vmatmul.msk.bf16.gmra.mxu0 %vm473_vm0, %v4729_v24 }
  0x9e   : > { %v531_v28 = vpop.f32.mrf.mxu0 }
  0x9f   : > { %v532_v30 = vadd.f32 %v4740_v29, %v531_v28 }
  0xa1   : > { %3947 = vmatmul.msk.bf16.gmra.mxu0 %vm473_vm0, %v4735_v27  ;;  %v611_v33 = vmax.f32 %v532_v30, 0.0 }
  0xa6   : > { %v533_v31 = vpop.f32.mrf.mxu0 }
  0xa7   : > { %v534_v32 = vadd.f32 %v4740_v29, %v533_v31 }
  0xa9   : > { %v612_v34 = vmax.f32 %v534_v32, 0.0 }
  0xab   : > { %v4748_v37 = vpack.c.bf16 %v612_v34, %v611_v33 }
  0xae   : > { %v536_v39 = vpop.f32.mrf.mxu0 }
  0xaf   : > { %v537_v40 = vadd.f32 %v4740_v29, %v536_v39 }
  0xb1   : > { %3948 = vmatmul.msk.bf16.gmra.mxu0 %vm473_vm0, %v4750_v38  ;;  %v613_v43 = vmax.f32 %v537_v40, 0.0 }
  0xb6   : > { %v538_v41 = vpop.f32.mrf.mxu0 }
  0xb7   : > { %v539_v42 = vadd.f32 %v4740_v29, %v538_v41 }
  0xb9   : > { %v614_v44 = vmax.f32 %v539_v42, 0.0 }
  0xbb   : > { %v4758_v47 = vpack.c.bf16 %v614_v44, %v613_v43 }
  0xbe   : > { %v541_v49 = vpop.f32.mrf.mxu0 }
  0xbf   : > { %v542_v50 = vadd.f32 %v4740_v29, %v541_v49 }
  0xc1   : > { %3949 = vmatmul.msk.bf16.gmra.mxu0 %vm473_vm0, %v4760_v48  ;;  %v615_v53 = vmax.f32 %v542_v50, 0.0 }
  0xc6   : > { %v543_v51 = vpop.f32.mrf.mxu0 }
  0xc7   : > { %v544_v52 = vadd.f32 %v4740_v29, %v543_v51 }
  0xc9   : > { %v616_v54 = vmax.f32 %v544_v52, 0.0 }
  0xcb   : > { %v686_v57 = vpack.c.bf16 %v616_v54, %v615_v53 }
  0xce   : > { %v546_v62 = vpop.f32.mrf.mxu0 }
  0xcf   : > { %v547_v51 = vadd.f32 %v4740_v29, %v546_v62  ;;  %v4389_v62 = vld [vmem:[%s6406_s7 + $0x4] sm:$0xf0] }
  0xd1   : > { %3950 = vmatmul.msk.bf16.gmra.mxu0 %vm473_vm0, %v4770_v60  ;;  %v617_v56 = vmax.f32 %v547_v51, 0.0 }
  0xd6   : > { %v548_v63 = vpop.f32.mrf.mxu0 }
  0xd7   : > { %v549_v46 = vadd.f32 %v4740_v29, %v548_v63  ;;  %v3957_v63 = vld [vmem:[%s6406_s7] sm:$0xf] }
  0xd8   : > { %v3958_v1 = vor.u32 %v4389_v62, %v3957_v63 }
  0xd9   : > { %v618_v54 = vmax.f32 %v549_v46, 0.0 }
  0xdb   : > { %v687_v58 = vpack.c.bf16 %v618_v54, %v617_v56 }
  0xde   : > { %v551_v4 = vpop.f32.mrf.mxu0 }
  0xdf   : > { %v552_v44 = vadd.f32 %v4740_v29, %v551_v4 }
  0xe1   : > { %3951 = vmatmul.msk.bf16.gmra.mxu0 %vm473_vm0, %v4780_v2  ;;  %v619_v52 = vmax.f32 %v552_v44, 0.0  ;;  %v3997_v44 = vld [vmem:[%s6406_s7 + $0x50] sm:$0xf] }
  0xe6   : > { %v553_v5 = vpop.f32.mrf.mxu0 }
  0xe7   : > { %v554_v41 = vadd.f32 %v4740_v29, %v553_v5 }
  0xe9   : > { %v620_v49 = vmax.f32 %v554_v41, 0.0 }
  0xeb   : > { %v688_v55 = vpack.c.bf16 %v620_v49, %v619_v52 }
  0xee   : > { %v556_v11 = vpop.f32.mrf.mxu0 }
  0xef   : > { %v557_v36 = vadd.f32 %v4740_v29, %v556_v11  ;;  %v606_v11 = vpop.f32.mrf.mxu3 }
  0xf0   : > { %v607_v16 = vadd.f32 %v4740_v29, %v606_v11 }
  0xf1   : > { %3952 = vmatmul.msk.bf16.gmra.mxu0 %vm473_vm0, %v4786_v10  ;;  %v621_v45 = vmax.f32 %v557_v36, 0.0  ;;  %v4397_v36 = vld [vmem:[%s6406_s7 + $0x44] sm:$0xf0] }
  0xf6   : > { %v558_v13 = vpop.f32.mrf.mxu0 }
  0xf7   : > { %v559_v33 = vadd.f32 %v4740_v29, %v558_v13  ;;  %v3973_v13 = vld [vmem:[%s6406_s7 + $0x20] sm:$0xf] }
  0xf9   : > { %v622_v42 = vmax.f32 %v559_v33, 0.0 }
  0xfb   : > { %v689_v50 = vpack.c.bf16 %v622_v42, %v621_v45  ;;  %v4399_v45 = vld [vmem:[%s6406_s7 + $0x54] sm:$0xf0] }
  0xfc   : > { %v3998_v51 = vor.u32 %v4399_v45, %v3997_v44  ;;  %v3967_v44 = vld [vmem:[%s6406_s7 + $0x18] sm:$0xf0] }
  0xfe   : > { %v561_v19 = vpop.f32.mrf.mxu0 }
  0xff   : > { %v562_v30 = vadd.f32 %v4740_v29, %v561_v19 }
 0x101   : > { %3953 = vmatmul.msk.bf16.gmra.mxu0 %vm473_vm0, %v4792_v17  ;;  %v623_v39 = vmax.f32 %v562_v30, 0.0  ;;  %v3981_v30 = vld [vmem:[%s6406_s7 + $0x30] sm:$0xf] }
 0x106   : > { %v563_v20 = vpop.f32.mrf.mxu0 }
 0x107   : > { %v564_v26 = vadd.f32 %v4740_v29, %v563_v20  ;;  %v608_v20 = vpop.f32.mrf.mxu3 }
 0x109   : > { %v624_v34 = vmax.f32 %v564_v26, 0.0 }
 0x10b   : > { %v690_v43 = vpack.c.bf16 %v624_v34, %v623_v39 }
 0x10e   : > { %v566_v22 = vpop.f32.mrf.mxu0 }
 0x10f   : > { %v567_v23 = vadd.f32 %v4740_v29, %v566_v22  ;;  %v641_v22 = vmax.f32 %v607_v16, 0.0 }
 0x111   : > { %v625_v31 = vmax.f32 %v567_v23, 0.0  ;;  %v609_v23 = vadd.f32 %v4740_v29, %v608_v20 }
 0x116   : > { %v568_v25 = vpop.f32.mrf.mxu0 }
 0x117   : > { %v569_v28 = vadd.f32 %v4740_v29, %v568_v25  ;;  %v642_v25 = vmax.f32 %v609_v23, 0.0  ;;  %v4005_v23 = vld [vmem:[%s6406_s7 + $0x60] sm:$0xf] }
 0x119   : > { %v626_v32 = vmax.f32 %v569_v28, 0.0  ;;  %v699_v28 = vpack.c.bf16 %v642_v25, %v641_v22 }
 0x11b   : > { %v691_v35 = vpack.c.bf16 %v626_v32, %v625_v31  ;;  %1020 = vmatpush.bf16.msra.mxu2 %v699_v28  ;;  %v4395_v31 = vld [vmem:[%s6406_s7 + $0x34] sm:$0xf0] }
 0x11c   : > { %v3982_v33 = vor.u32 %v4395_v31, %v3981_v30 }
 0x11d   : > { %907 = vmatpush.bf16.msra.mxu1 %v691_v35  ;;  %v3989_v35 = vld [vmem:[%s6406_s7 + $0x40] sm:$0xf] }
 0x11e   : > { %v4802_v40 = vpop.f32.mrf.mxu0  ;;  %v3990_v41 = vor.u32 %v4397_v36, %v3989_v35 }
 0x121   : > { %908 = vmatpush.bf16.msra.mxu1 %v690_v43 }
 0x125   : > { %909 = vmatpush.bf16.msra.mxu1 %v689_v50 }
 0x126   : > { %v4808_v53 = vpop.f32.mrf.mxu0 }
 0x127   : > { %v574_v30 = vadd.f32 %v4740_v29, %v4808_v53  ;;  %v3959_v53 = vld [vmem:[%s6406_s7 + $0x8] sm:$0xf0] }
 0x129   : > { %910 = vmatpush.bf16.msra.mxu1 %v688_v55 }
 0x12d   : > { %911 = vmatpush.bf16.msra.mxu1 %v687_v58 }
 0x12e   : > { %v4810_v59 = vpop.f32.mrf.mxu0 }
 0x12f   : > { %v577_v28 = vadd.f32 %v4740_v29, %v4810_v59  ;;  %v4388_v59 = vld [vmem:[%s6406_s7 + $0x4] sm:$0xf] }
 0x131   : > { %912 = vmatpush.bf16.msra.mxu1 %v686_v57  ;;  %v3965_v57 = vld [vmem:[%s6406_s7 + $0x10] sm:$0xf] }
 0x135   : > { %913 = vmatpush.bf16.msra.mxu1 %v4758_v47  ;;  %v4391_v47 = vld [vmem:[%s6406_s7 + $0x14] sm:$0xf0] }
 0x136   : > { %v4819_v0 = vpop.f32.mrf.mxu0  ;;  %v3966_v7 = vor.u32 %v4391_v47, %v3965_v57 }
 0x139   : > { %914 = vmatpush.bf16.msra.mxu1 %v4748_v37  ;;  %v4393_v37 = vld [vmem:[%s6406_s7 + $0x24] sm:$0xf0] }
 0x13a   : > { %v3974_v19 = vor.u32 %v4393_v37, %v3973_v13 }
 0x13c   : > { %915 = vmatmul.bf16.vlgmr.msra.gmra.mxu1 %v3958_v1 }
 0x13e   : > { %v581_v4 = vpop.f32.mrf.mxu0 }
 0x13f   : > { %v582_v20 = vadd.f32 %v4740_v29, %v581_v4 }
 0x141   : > { %v631_v4 = vmax.f32 %v582_v20, 0.0 }
 0x146   : > { %v583_v5 = vpop.f32.mrf.mxu0 }
 0x147   : > { %v584_v37 = vadd.f32 %v4740_v29, %v583_v5 }
 0x149   : > { %v632_v25 = vmax.f32 %v584_v37, 0.0  ;;  %v4409_v37 = vld [vmem:[%s6406_s7 + $0xa4] sm:$0xf0] }
 0x14c   : > { %920 = vmatmul.bf16.gmra.mxu1 %v3966_v7 }
 0x14e   : > { %v586_v8 = vpop.f32.mrf.mxu0 }
 0x14f   : > { %v587_v11 = vadd.f32 %v4740_v29, %v586_v8  ;;  %v579_v8 = vadd.f32 %v4740_v29, %v4819_v0  ;;  %v628_v0 = vmax.f32 %v574_v30, 0.0  ;;  %v3999_v30 = vld [vmem:[%s6406_s7 + $0x58] sm:$0xf0] }
 0x151   : > { %v633_v22 = vmax.f32 %v587_v11, 0.0  ;;  %v630_v31 = vmax.f32 %v579_v8, 0.0  ;;  %v4045_v8 = vld [vmem:[%s6406_s7 + $0xb0] sm:$0xf] }
 0x156   : > { %v588_v14 = vpop.f32.mrf.mxu0 }
 0x157   : > { %v589_v57 = vadd.f32 %v4740_v29, %v588_v14  ;;  %v4401_v14 = vld [vmem:[%s6406_s7 + $0x64] sm:$0xf0] }
 0x158   : > { %v4006_v5 = vor.u32 %v4401_v14, %v4005_v23  ;;  %v3991_v23 = vld [vmem:[%s6406_s7 + $0x48] sm:$0xf0] }
 0x159   : > { %v634_v16 = vmax.f32 %v589_v57, 0.0 }
 0x15c   : > { %925 = vmatmul.bf16.gmra.mxu1 %v3974_v19 }
 0x15e   : > { %v591_v26 = vpop.f32.mrf.mxu0 }
 0x15f   : > { %v592_v62 = vadd.f32 %v4740_v29, %v591_v26  ;;  %v695_v26 = vpack.c.bf16 %v634_v16, %v633_v22  ;;  %v4396_v22 = vld [vmem:[%s6406_s7 + $0x44] sm:$0xf] }
 0x160   : > { %v3994_v14 = vor.u32 %v4396_v22, %v3991_v23 }
 0x161   : > { %v635_v13 = vmax.f32 %v592_v62, 0.0 }
 0x166   : > { %v593_v32 = vpop.f32.mrf.mxu0 }
 0x167   : > { %v594_v56 = vadd.f32 %v4740_v29, %v593_v32  ;;  %v694_v32 = vpack.c.bf16 %v632_v25, %v631_v4  ;;  %v4411_v25 = vld [vmem:[%s6406_s7 + $0xb4] sm:$0xf0]  ;;  %v4398_v4 = vld [vmem:[%s6406_s7 + $0x54] sm:$0xf] }
 0x169   : > { %v636_v47 = vmax.f32 %v594_v56, 0.0 }
 0x16b   : > { %v696_v19 = vpack.c.bf16 %v636_v47, %v635_v13  ;;  %v4394_v47 = vld [vmem:[%s6406_s7 + $0x34] sm:$0xf]  ;;  %v4037_v13 = vld [vmem:[%s6406_s7 + $0xa0] sm:$0xf] }
 0x16c   : > { %930 = vmatmul.bf16.gmra.mxu1 %v3982_v33  ;;  %v572_v33 = vadd.f32 %v4740_v29, %v4802_v40  ;;  %v4403_v40 = vld [vmem:[%s6406_s7 + $0x74] sm:$0xf0]  ;;  %v4038_v16 = vor.u32 %v4409_v37, %v4037_v13  ;;  %v4077_v13 = vld [vmem:[%s6406_s7 + $0xf0] sm:$0xf] }
 0x16d   : > { %v4419_v37 = vld [vmem:[%s6406_s7 + $0xf4] sm:$0xf0] }
 0x16e   : > { %v596_v34 = vpop.f32.mrf.mxu0  ;;  %v627_v36 = vmax.f32 %v572_v33, 0.0  ;;  %v4413_v33 = vld [vmem:[%s6406_s7 + $0xc4] sm:$0xf0] }
 0x16f   : > { %v597_v52 = vadd.f32 %v4740_v29, %v596_v34  ;;  %v629_v34 = vmax.f32 %v577_v28, 0.0 }
 0x171   : > { %v637_v1 = vmax.f32 %v597_v52, 0.0  ;;  %v693_v35 = vpack.c.bf16 %v630_v31, %v629_v34  ;;  %v4002_v31 = vor.u32 %v4398_v4, %v3999_v30 }
 0x176   : > { %v598_v39 = vpop.f32.mrf.mxu0 }
 0x177   : > { %v599_v49 = vadd.f32 %v4740_v29, %v598_v39  ;;  %v692_v39 = vpack.c.bf16 %v628_v0, %v627_v36  ;;  %v4400_v36 = vld [vmem:[%s6406_s7 + $0x64] sm:$0xf] }
 0x179   : > { %v638_v58 = vmax.f32 %v599_v49, 0.0  ;;  %v4405_v49 = vld [vmem:[%s6406_s7 + $0x84] sm:$0xf0] }
 0x17b   : > { %v697_v7 = vpack.c.bf16 %v638_v58, %v637_v1  ;;  %v4029_v58 = vld [vmem:[%s6406_s7 + $0x90] sm:$0xf] }
 0x17c   : > { %935 = vmatmul.bf16.gmra.mxu1 %v3990_v41  ;;  %v3962_v41 = vor.u32 %v4388_v59, %v3959_v53  ;;  %v4007_v59 = vld [vmem:[%s6406_s7 + $0x68] sm:$0xf0] }
 0x17d   : > { %v4010_v53 = vor.u32 %v4400_v36, %v4007_v59 }
 0x17e   : > { %v601_v42 = vpop.f32.mrf.mxu0 }
 0x17f   : > { %v602_v43 = vadd.f32 %v4740_v29, %v601_v42 }
 0x181   : > { %v639_v54 = vmax.f32 %v602_v43, 0.0  ;;  %v4390_v43 = vld [vmem:[%s6406_s7 + $0x14] sm:$0xf] }
 0x182   : > { %v3970_v45 = vor.u32 %v4390_v43, %v3967_v44  ;;  %v4402_v43 = vld [vmem:[%s6406_s7 + $0x74] sm:$0xf]  ;;  %v4015_v44 = vld [vmem:[%s6406_s7 + $0x78] sm:$0xf0] }
 0x186   : > { %v603_v46 = vpop.f32.mrf.mxu0 }
 0x187   : > { %v604_v50 = vadd.f32 %v4740_v29, %v603_v46  ;;  %v4013_v29 = vld [vmem:[%s6406_s7 + $0x70] sm:$0xf]  ;;  %v4021_v46 = vld [vmem:[%s6406_s7 + $0x80] sm:$0xf] }
 0x188   : > { %v4014_v42 = vor.u32 %v4403_v40, %v4013_v29 }
 0x189   : > { %v640_v55 = vmax.f32 %v604_v50, 0.0  ;;  %v4022_v50 = vor.u32 %v4405_v49, %v4021_v46  ;;  %v4069_v46 = vld [vmem:[%s6406_s7 + $0xe0] sm:$0xf]  ;;  %v4417_v49 = vld [vmem:[%s6406_s7 + $0xe4] sm:$0xf0] }
 0x18b   : > { %v698_v63 = vpack.c.bf16 %v640_v55, %v639_v54  ;;  %v4392_v54 = vld [vmem:[%s6406_s7 + $0x24] sm:$0xf]  ;;  %v3975_v55 = vld [vmem:[%s6406_s7 + $0x28] sm:$0xf0] }
 0x18c   : > { %940 = vmatmul.bf16.gmra.mxu1 %v3998_v51  ;;  %v3978_v56 = vor.u32 %v4392_v54, %v3975_v55  ;;  %v1229_v55 = vld [vmem:[%s6402_s3] sm:$0xf] }
 0x18d   : > { %1021 = vmatpush.bf16.msra.mxu2 %v698_v63  ;;  %v4407_v63 = vld [vmem:[%s6406_s7 + $0x94] sm:$0xf0] }
 0x18e   : > { %v4030_v62 = vor.u32 %v4407_v63, %v4029_v58  ;;  %v4404_v63 = vld [vmem:[%s6406_s7 + $0x84] sm:$0xf] }
 0x191   : > { %1022 = vmatpush.bf16.msra.mxu2 %v697_v7  ;;  %v3983_v7 = vld [vmem:[%s6406_s7 + $0x38] sm:$0xf0] }
 0x192   : > { %v3986_v11 = vor.u32 %v4394_v47, %v3983_v7  ;;  %v4115_v47 = vld [vmem:[%s6402_s3 + $0x4] sm:$0xf] }
 0x195   : > { %1023 = vmatpush.bf16.msra.mxu2 %v696_v19 }
 0x199   : > { %1024 = vmatpush.bf16.msra.mxu2 %v695_v26  ;;  %v4046_v26 = vor.u32 %v4411_v25, %v4045_v8  ;;  %v4406_v25 = vld [vmem:[%s6406_s7 + $0x94] sm:$0xf] }
 0x19c   : > { %945 = vmatmul.bf16.gmra.mxu1 %v4006_v5 }
 0x19d   : > { %1025 = vmatpush.bf16.msra.mxu2 %v694_v32  ;;  %v4053_v32 = vld [vmem:[%s6406_s7 + $0xc0] sm:$0xf] }
 0x19e   : > { %v4054_v34 = vor.u32 %v4413_v33, %v4053_v32  ;;  %v4421_v32 = vld [vmem:[%s6406_s7 + $0x104] sm:$0xf0] }
 0x1a1   : > { %1026 = vmatpush.bf16.msra.mxu2 %v693_v35 }
 0x1a5   : > { %1027 = vmatpush.bf16.msra.mxu2 %v692_v39  ;;  %v4061_v39 = vld [vmem:[%s6406_s7 + $0xd0] sm:$0xf] }
 0x1a8   : > { %1028 = vmatmul.bf16.vlgmr.msra.gmra.mxu2 %v3962_v41  ;;  %v4415_v41 = vld [vmem:[%s6406_s7 + $0xd4] sm:$0xf0] }
 0x1a9   : > { %v4062_v29 = vor.u32 %v4415_v41, %v4061_v39 }
 0x1ac   : > { %950 = vmatmul.bf16.gmra.mxu1 %v4014_v42 }
 0x1b8   : > { %1033 = vmatmul.bf16.gmra.mxu2 %v3970_v45  ;;  %v4018_v45 = vor.u32 %v4402_v43, %v4015_v44  ;;  %v4039_v43 = vld [vmem:[%s6406_s7 + $0xa8] sm:$0xf0] }
 0x1b9   : > { %v4902_v51 = vpop.f32.mrf.mxu1 }
 0x1bc   : > { %955 = vmatmul.bf16.gmra.mxu1 %v4022_v50  ;;  %v4070_v50 = vor.u32 %v4417_v49, %v4069_v46  ;;  %v4093_v46 = vld [vmem:[%s6406_s7 + $0x110] sm:$0xf] }
 0x1c1   : > { %v4904_v52 = vpop.f32.mrf.mxu1 }
 0x1c8   : > { %1038 = vmatmul.bf16.gmra.mxu2 %v3978_v56  ;;  %v1498_v56 = vsel %vm1340_vm1, %v1229_v55, 0  ;;  %v4423_v55 = vld [vmem:[%s6406_s7 + $0x114] sm:$0xf0] }
 0x1c9   : > { %v4918_v1 = vpop.f32.mrf.mxu1  ;;  %1507 = vmatpush.bf16.msrb.mxu0 %v1498_v56 }
 0x1cc   : > { %960 = vmatmul.bf16.gmra.mxu1 %v4030_v62  ;;  %v4023_v62 = vld [vmem:[%s6406_s7 + $0x88] sm:$0xf0] }
 0x1cd   : > { %v4026_v7 = vor.u32 %v4404_v63, %v4023_v62  ;;  %v4094_v63 = vor.u32 %v4423_v55, %v4093_v46 }
 0x1d1   : > { %v4920_v57 = vpop.f32.mrf.mxu1 }
 0x1d8   : > { %1043 = vmatmul.bf16.gmra.mxu2 %v3986_v11  ;;  %v1342_v11 = vsel %vm1340_vm1, %v4115_v47, 0 }
 0x1d9   : > { %v4934_v19 = vpop.f32.mrf.mxu1  ;;  %1351 = vmatpush.bf16.msrb.mxu3 %v1342_v11 }
 0x1dc   : > { %965 = vmatmul.bf16.gmra.mxu1 %v4038_v16  ;;  %v4078_v16 = vor.u32 %v4419_v37, %v4077_v13 }
 0x1e1   : > { %v4936_v20 = vpop.f32.mrf.mxu1 }
 0x1e8   : > { %1048 = vmatmul.bf16.gmra.mxu2 %v3994_v14 }
 0x1e9   : > { %v4950_v5 = vpop.f32.mrf.mxu1 }
 0x1ec   : > { %970 = vmatmul.bf16.gmra.mxu1 %v4046_v26  ;;  %v4031_v26 = vld [vmem:[%s6406_s7 + $0x98] sm:$0xf0] }
 0x1f1   : > { %v4952_v28 = vpop.f32.mrf.mxu1 }
 0x1f8   : > { %1053 = vmatmul.bf16.gmra.mxu2 %v4002_v31  ;;  %v4034_v31 = vor.u32 %v4406_v25, %v4031_v26  ;;  %v4101_v26 = vld [vmem:[%s6406_s7 + $0x120] sm:$0xf] }
 0x1f9   : > { %v4966_v0 = vpop.f32.mrf.mxu1 }
 0x1fc   : > { %975 = vmatmul.bf16.gmra.mxu1 %v4054_v34 }
 0x201   : > { %v4968_v35 = vpop.f32.mrf.mxu1 }
 0x208   : > { %1058 = vmatmul.bf16.gmra.mxu2 %v4010_v53 }
 0x209   : > { %v4982_v40 = vpop.f32.mrf.mxu1 }
 0x20c   : > { %980 = vmatmul.bf16.gmra.mxu1 %v4062_v29  ;;  %v4408_v29 = vld [vmem:[%s6406_s7 + $0xa4] sm:$0xf] }
 0x211   : > { %v4984_v42 = vpop.f32.mrf.mxu1 }
 0x218   : > { %1063 = vmatmul.bf16.gmra.mxu2 %v4018_v45  ;;  %v4042_v45 = vor.u32 %v4408_v29, %v4039_v43  ;;  %v4412_v29 = vld [vmem:[%s6406_s7 + $0xc4] sm:$0xf]  ;;  %v4055_v43 = vld [vmem:[%s6406_s7 + $0xc8] sm:$0xf0] }
 0x219   : > { %v4998_v54 = vpop.f32.mrf.mxu1 }
 0x21c   : > { %985 = vmatmul.bf16.gmra.mxu1 %v4070_v50 }
 0x221   : > { %v5004_v58 = vpop.f32.mrf.mxu1 }
 0x228   : > { %1068 = vmatmul.bf16.gmra.mxu2 %v4026_v7 }
 0x229   : > { %v5022_v22 = vpop.f32.mrf.mxu1 }
 0x22b   : > { %v1029_v23 = vpop.f32.mrf.mxu2 }
 0x22c   : > { %v1030_v14 = vadd.f32 %v1029_v23, %v4902_v51  ;;  %990 = vmatmul.bf16.gmra.mxu1 %v4078_v16  ;;  %v4085_v51 = vld [vmem:[%s6406_s7 + $0x100] sm:$0xf]  ;;  %v4410_v16 = vld [vmem:[%s6406_s7 + $0xb4] sm:$0xf]  ;;  %v4047_v23 = vld [vmem:[%s6406_s7 + $0xb8] sm:$0xf0] }
 0x22d   : > { %v4086_v33 = vor.u32 %v4421_v32, %v4085_v51  ;;  %v4050_v25 = vor.u32 %v4410_v16, %v4047_v23 }
 0x22e   : > { %1134 = vst.msk [vmem:[#allocation2] sm:$0xff] %vm1133_vm2, %v1030_v14 }
 0x231   : > { %v5026_v8 = vpop.f32.mrf.mxu1 }
 0x233   : > { %v1031_v4 = vpop.f32.mrf.mxu2 }
 0x234   : > { %v1032_v30 = vadd.f32 %v1031_v4, %v4904_v52 }
 0x235   : > { %v1175_v52 = vld [vmem:[#allocation2] sm:$0xff] }
 0x236   : > { %1135 = vst.msk [vmem:[#allocation2 + $0x8] sm:$0xff] %vm1133_vm2, %v1032_v30 }
 0x238   : > { %1073 = vmatmul.bf16.gmra.mxu2 %v4034_v31  ;;  %v4425_v31 = vld [vmem:[%s6406_s7 + $0x124] sm:$0xf0] }
 0x239   : > { %v5042_v34 = vpop.f32.mrf.mxu1  ;;  %v4102_v32 = vor.u32 %v4425_v31, %v4101_v26 }
 0x23b   : > { %v1034_v36 = vpop.f32.mrf.mxu2 }
 0x23c   : > { %v1035_v59 = vadd.f32 %v1034_v36, %v4918_v1  ;;  %995 = vmatmul.bf16.gmra.mxu1 %v4086_v33 }
 0x23d   : > { %v1176_v53 = vld [vmem:[#allocation2 + $0x8] sm:$0xff] }
 0x23e   : > { %1136 = vst.msk [vmem:[#allocation2 + $0x10] sm:$0xff] %vm1133_vm2, %v1035_v59  ;;  %v1211_v39 = vpack.c.bf16 %v1176_v53, %v1175_v52  ;;  %v1230_v49 = vld [vmem:[#allocation2 + $0x1] sm:$0xff] }
 0x240   : > { %4134 = vmatmul.msk.bf16.vlgmr.msrb.gmra.mxu0 %vm1133_vm2, %v1211_v39 }
 0x241   : > { %v5047_v41 = vpop.f32.mrf.mxu1 }
 0x243   : > { %v1036_v44 = vpop.f32.mrf.mxu2 }
 0x244   : > { %v1037_v1 = vadd.f32 %v1036_v44, %v4920_v57 }
 0x245   : > { %v1231_v50 = vld [vmem:[#allocation2 + $0x9] sm:$0xff] }
 0x246   : > { %1137 = vst.msk [vmem:[#allocation2 + $0x18] sm:$0xff] %vm1133_vm2, %v1037_v1  ;;  %v1266_v56 = vpack.c.bf16 %v1231_v50, %v1230_v49  ;;  %v1177_v7 = vld [vmem:[#allocation2 + $0x10] sm:$0xff]  ;;  %v4058_v1 = vor.u32 %v4412_v29, %v4055_v43  ;;  %v4427_v50 = vld [vmem:[%s6406_s7 + $0x134] sm:$0xf0] }
 0x248   : > { %1078 = vmatmul.bf16.gmra.mxu2 %v4042_v45  ;;  %4116 = vmatmul.msk.bf16.vlgmr.msrb.gmra.mxu3 %vm1133_vm2, %v1266_v56  ;;  %v4109_v45 = vld [vmem:[%s6406_s7 + $0x130] sm:$0xf]  ;;  %v4171_v56 = vld [vmem:[%s6402_s3 + $0xc] sm:$0xf] }
 0x249   : > { %v5064_v62 = vpop.f32.mrf.mxu1 }
 0x24b   : > { %v1039_v57 = vpop.f32.mrf.mxu2 }
 0x24c   : > { %v1040_v47 = vadd.f32 %v1039_v57, %v4934_v19  ;;  %1000 = vmatmul.bf16.gmra.mxu1 %v4094_v63  ;;  %v1958_v63 = vsel %vm1340_vm1, %v4171_v56, 0 }
 0x24d   : > { %v1178_v11 = vld [vmem:[#allocation2 + $0x18] sm:$0xff]  ;;  %1967 = vmatpush.bf16.msrb.mxu1 %v1958_v63 }
 0x24e   : > { %1138 = vst.msk [vmem:[#allocation2 + $0x20] sm:$0xff] %vm1133_vm2, %v1040_v47  ;;  %v1212_v13 = vpack.c.bf16 %v1178_v11, %v1177_v7  ;;  %v1232_v4 = vld [vmem:[#allocation2 + $0x11] sm:$0xff] }
 0x250   : > { %4135 = vmatmul.msk.bf16.gmra.mxu0 %vm1133_vm2, %v1212_v13 }
 0x251   : > { %v5069_v37 = vpop.f32.mrf.mxu1 }
 0x253   : > { %v1041_v14 = vpop.f32.mrf.mxu2 }
 0x254   : > { %v1042_v19 = vadd.f32 %v1041_v14, %v4936_v20  ;;  %v4414_v14 = vld [vmem:[%s6406_s7 + $0xd4] sm:$0xf] }
 0x255   : > { %v1233_v30 = vld [vmem:[#allocation2 + $0x19] sm:$0xff] }
 0x256   : > { %1139 = vst.msk [vmem:[#allocation2 + $0x28] sm:$0xff] %vm1133_vm2, %v1042_v19  ;;  %v1267_v51 = vpack.c.bf16 %v1233_v30, %v1232_v4  ;;  %v1179_v59 = vld [vmem:[#allocation2 + $0x20] sm:$0xff]  ;;  %v4063_v19 = vld [vmem:[%s6406_s7 + $0xd8] sm:$0xf0] }
 0x257   : > { %v4066_v4 = vor.u32 %v4414_v14, %v4063_v19  ;;  %v4418_v14 = vld [vmem:[%s6406_s7 + $0xf4] sm:$0xf] }
 0x258   : > { %1083 = vmatmul.bf16.gmra.mxu2 %v4050_v25  ;;  %4117 = vmatmul.msk.bf16.gmra.mxu3 %vm1133_vm2, %v1267_v51 }
 0x259   : > { %v5086_v33 = vpop.f32.mrf.mxu1 }
 0x25b   : > { %v1044_v20 = vpop.f32.mrf.mxu2 }
 0x25c   : > { %v1045_v36 = vadd.f32 %v1044_v20, %v4950_v5  ;;  %1005 = vmatmul.bf16.gmra.mxu1 %v4102_v32 }
 0x25d   : > { %v1180_v52 = vld [vmem:[#allocation2 + $0x28] sm:$0xff] }
 0x25e   : > { %1140 = vst.msk [vmem:[#allocation2 + $0x30] sm:$0xff] %vm1133_vm2, %v1045_v36  ;;  %v1213_v53 = vpack.c.bf16 %v1180_v52, %v1179_v59  ;;  %v1234_v46 = vld [vmem:[#allocation2 + $0x21] sm:$0xff] }
 0x260   : > { %4136 = vmatmul.msk.bf16.gmra.mxu0 %vm1133_vm2, %v1213_v53 }
 0x261   : > { %v5091_v39 = vpop.f32.mrf.mxu1 }
 0x263   : > { %v1046_v44 = vpop.f32.mrf.mxu2 }
 0x264   : > { %v1047_v5 = vadd.f32 %v1046_v44, %v4952_v28  ;;  %v4110_v28 = vor.u32 %v4427_v50, %v4109_v45  ;;  %v4416_v44 = vld [vmem:[%s6406_s7 + $0xe4] sm:$0xf] }
 0x265   : > { %v1235_v49 = vld [vmem:[#allocation2 + $0x29] sm:$0xff] }
 0x266   : > { %1141 = vst.msk [vmem:[#allocation2 + $0x38] sm:$0xff] %vm1133_vm2, %v1047_v5  ;;  %v1268_v55 = vpack.c.bf16 %v1235_v49, %v1234_v46  ;;  %v1181_v11 = vld [vmem:[#allocation2 + $0x30] sm:$0xff]  ;;  %v4071_v5 = vld [vmem:[%s6406_s7 + $0xe8] sm:$0xf0] }
 0x267   : > { %v4074_v45 = vor.u32 %v4416_v44, %v4071_v5  ;;  %v4420_v5 = vld [vmem:[%s6406_s7 + $0x104] sm:$0xf] }
 0x268   : > { %1088 = vmatmul.bf16.gmra.mxu2 %v4058_v1  ;;  %4118 = vmatmul.msk.bf16.gmra.mxu3 %vm1133_vm2, %v1268_v55  ;;  %v1848_v55 = vld [vmem:[#allocation2 + $0x1a] sm:$0xff] }
 0x269   : > { %v5112_v57 = vpop.f32.mrf.mxu1 }
 0x26b   : > { %v1049_v47 = vpop.f32.mrf.mxu2 }
 0x26c   : > { %v1050_v7 = vadd.f32 %v1049_v47, %v4966_v0  ;;  %1010 = vmatmul.bf16.gmra.mxu1 %v4110_v28  ;;  %v5128_v0 = vld [vmem:[%s6406_s7 + $0x140] sm:$0xff]  ;;  %v1847_v28 = vld [vmem:[#allocation2 + $0x12] sm:$0xff] }
 0x26d   : > { %v1182_v13 = vld [vmem:[#allocation2 + $0x38] sm:$0xff]  ;;  %v821_v30 = vunpack.c.l.b16 %v5128_v0  ;;  %v5152_v63 = vpack.c.bf16 %v1848_v55, %v1847_v28 }
 0x26e   : > { %1142 = vst.msk [vmem:[#allocation2 + $0x40] sm:$0xff] %vm1133_vm2, %v1050_v7  ;;  %v1214_v16 = vpack.c.bf16 %v1182_v13, %v1181_v11  ;;  %v1236_v31 = vld [vmem:[#allocation2 + $0x31] sm:$0xff] }
 0x26f   : > { %v863_v20 = vpack.c.b16 %v821_v30, %v821_v30 }
 0x270   : > { %4137 = vmatmul.msk.bf16.gmra.mxu0 %vm1133_vm2, %v1214_v16 }
 0x271   : > { %v5117_v23 = vpop.f32.mrf.mxu1 }
 0x273   : > { %v1051_v25 = vpop.f32.mrf.mxu2 }
 0x274   : > { %v1052_v26 = vadd.f32 %v1051_v25, %v4968_v35 }
 0x275   : > { %v1237_v51 = vld [vmem:[#allocation2 + $0x39] sm:$0xff] }
 0x276   : > { %1143 = vst.msk [vmem:[#allocation2 + $0x48] sm:$0xff] %vm1133_vm2, %v1052_v26  ;;  %v1269_v32 = vpack.c.bf16 %v1237_v51, %v1236_v31  ;;  %v1183_v53 = vld [vmem:[#allocation2 + $0x40] sm:$0xff]  ;;  %v1850_v51 = vld [vmem:[#allocation2 + $0x2a] sm:$0xff] }
 0x277   : > { %v1852_v55 = vld [vmem:[#allocation2 + $0x3a] sm:$0xff] }
 0x278   : > { %1093 = vmatmul.bf16.gmra.mxu2 %v4066_v4  ;;  %4119 = vmatmul.msk.bf16.gmra.mxu3 %vm1133_vm2, %v1269_v32 }
 0x279   : > { %v5134_v36 = vpop.f32.mrf.mxu1 }
 0x27b   : > { %v1054_v59 = vpop.f32.mrf.mxu2 }
 0x27c   : > { %v1055_v52 = vadd.f32 %v1054_v59, %v4982_v40  ;;  %1015 = vmatmul.bf16.gmra.mxu1 %v863_v20  ;;  %v1849_v20 = vld [vmem:[#allocation2 + $0x22] sm:$0xff] }
 0x27d   : > { %v1184_v35 = vld [vmem:[#allocation2 + $0x48] sm:$0xff]  ;;  %v5172_v59 = vpack.c.bf16 %v1850_v51, %v1849_v20 }
 0x27e   : > { %1144 = vst.msk [vmem:[#allocation2 + $0x50] sm:$0xff] %vm1133_vm2, %v1055_v52  ;;  %v1215_v29 = vpack.c.bf16 %v1184_v35, %v1183_v53  ;;  %v1238_v46 = vld [vmem:[#allocation2 + $0x41] sm:$0xff] }
 0x280   : > { %4138 = vmatmul.msk.bf16.gmra.mxu0 %vm1133_vm2, %v1215_v29 }
 0x281   : > { %v5139_v43 = vpop.f32.mrf.mxu1 }
 0x283   : > { %v1056_v1 = vpop.f32.mrf.mxu2 }
 0x284   : > { %v1057_v40 = vadd.f32 %v1056_v1, %v4984_v42 }
 0x285   : > { %v1239_v49 = vld [vmem:[#allocation2 + $0x49] sm:$0xff] }
 0x286   : > { %1145 = vst.msk [vmem:[#allocation2 + $0x58] sm:$0xff] %vm1133_vm2, %v1057_v40  ;;  %v1270_v50 = vpack.c.bf16 %v1239_v49, %v1238_v46  ;;  %v1185_v42 = vld [vmem:[#allocation2 + $0x50] sm:$0xff] }
 0x287   : > { %v1854_v20 = vld [vmem:[#allocation2 + $0x4a] sm:$0xff] }
 0x288   : > { %1098 = vmatmul.bf16.gmra.mxu2 %v4074_v45  ;;  %4120 = vmatmul.msk.bf16.gmra.mxu3 %vm1133_vm2, %v1270_v50 }
 0x289   : > { %v5150_v56 = vpop.f32.mrf.mxu1 }
 0x28b   : > { %v1059_v47 = vpop.f32.mrf.mxu2 }
 0x28c   : > { %v1060_v7 = vadd.f32 %v1059_v47, %v4998_v54  ;;  %4172 = vmatmul.msk.bf16.vlgmr.msrb.gmra.mxu1 %vm1133_vm2, %v5152_v63  ;;  %v4079_v54 = vld [vmem:[%s6406_s7 + $0xf8] sm:$0xf0]  ;;  %v1851_v47 = vld [vmem:[#allocation2 + $0x32] sm:$0xff] }
 0x28d   : > { %v1186_v11 = vld [vmem:[#allocation2 + $0x58] sm:$0xff]  ;;  %v4082_v26 = vor.u32 %v4418_v14, %v4079_v54 }
 0x28e   : > { %1146 = vst.msk [vmem:[#allocation2 + $0x60] sm:$0xff] %vm1133_vm2, %v1060_v7  ;;  %v1216_v13 = vpack.c.bf16 %v1186_v11, %v1185_v42  ;;  %v1240_v4 = vld [vmem:[#allocation2 + $0x51] sm:$0xff]  ;;  %v5192_v7 = vpack.c.bf16 %v1852_v55, %v1851_v47 }
 0x290   : > { %4139 = vmatmul.msk.bf16.gmra.mxu0 %vm1133_vm2, %v1216_v13 }
 0x291   : > { %v5159_v16 = vpop.f32.mrf.mxu1 }
 0x293   : > { %v1061_v19 = vpop.f32.mrf.mxu2 }
 0x294   : > { %v1062_v25 = vadd.f32 %v1061_v19, %v5004_v58  ;;  %v4422_v19 = vld [vmem:[%s6406_s7 + $0x114] sm:$0xf] }
 0x295   : > { %v1241_v30 = vld [vmem:[#allocation2 + $0x59] sm:$0xff] }
 0x296   : > { %1147 = vst.msk [vmem:[#allocation2 + $0x68] sm:$0xff] %vm1133_vm2, %v1062_v25  ;;  %v1271_v31 = vpack.c.bf16 %v1241_v30, %v1240_v4  ;;  %v1187_v58 = vld [vmem:[#allocation2 + $0x60] sm:$0xff] }
 0x298   : > { %1103 = vmatmul.bf16.gmra.mxu2 %v4082_v26  ;;  %4121 = vmatmul.msk.bf16.gmra.mxu3 %vm1133_vm2, %v1271_v31 }
 0x299   : > { %v5170_v32 = vpop.f32.mrf.mxu1 }
 0x29b   : > { %v1064_v52 = vpop.f32.mrf.mxu2 }
 0x29c   : > { %v1065_v53 = vadd.f32 %v1064_v52, %v5022_v22  ;;  %4173 = vmatmul.msk.bf16.gmra.mxu1 %vm1133_vm2, %v5172_v59  ;;  %v4087_v22 = vld [vmem:[%s6406_s7 + $0x108] sm:$0xf0] }
 0x29d   : > { %v1188_v35 = vld [vmem:[#allocation2 + $0x68] sm:$0xff]  ;;  %v4090_v45 = vor.u32 %v4420_v5, %v4087_v22 }
 0x29e   : > { %1148 = vst.msk [vmem:[#allocation2 + $0x70] sm:$0xff] %vm1133_vm2, %v1065_v53  ;;  %v1217_v29 = vpack.c.bf16 %v1188_v35, %v1187_v58  ;;  %v1242_v46 = vld [vmem:[#allocation2 + $0x61] sm:$0xff] }
 0x29f   : > { %v1853_v53 = vld [vmem:[#allocation2 + $0x42] sm:$0xff] }
 0x2a0   : > { %4140 = vmatmul.msk.bf16.gmra.mxu0 %vm1133_vm2, %v1217_v29  ;;  %v5212_v58 = vpack.c.bf16 %v1854_v20, %v1853_v53  ;;  %v4426_v53 = vld [vmem:[%s6406_s7 + $0x134] sm:$0xf] }
 0x2a1   : > { %v5179_v44 = vpop.f32.mrf.mxu1 }
 0x2a3   : > { %v1066_v1 = vpop.f32.mrf.mxu2 }
 0x2a4   : > { %v1067_v40 = vadd.f32 %v1066_v1, %v5026_v8 }
 0x2a5   : > { %v1243_v49 = vld [vmem:[#allocation2 + $0x69] sm:$0xff] }
 0x2a6   : > { %1149 = vst.msk [vmem:[#allocation2 + $0x78] sm:$0xff] %vm1133_vm2, %v1067_v40  ;;  %v1272_v50 = vpack.c.bf16 %v1243_v49, %v1242_v46  ;;  %v1189_v8 = vld [vmem:[#allocation2 + $0x70] sm:$0xff] }
 0x2a8   : > { %1108 = vmatmul.bf16.gmra.mxu2 %v4090_v45  ;;  %4122 = vmatmul.msk.bf16.gmra.mxu3 %vm1133_vm2, %v1272_v50  ;;  %v4424_v45 = vld [vmem:[%s6406_s7 + $0x124] sm:$0xf] }
 0x2a9   : > { %v5190_v28 = vpop.f32.mrf.mxu1 }
 0x2ab   : > { %v1069_v42 = vpop.f32.mrf.mxu2 }
 0x2ac   : > { %v1070_v11 = vadd.f32 %v1069_v42, %v5042_v34  ;;  %4174 = vmatmul.msk.bf16.gmra.mxu1 %vm1133_vm2, %v5192_v7  ;;  %v4095_v34 = vld [vmem:[%s6406_s7 + $0x118] sm:$0xf0] }
 0x2ad   : > { %v1190_v13 = vld [vmem:[#allocation2 + $0x78] sm:$0xff]  ;;  %v4098_v4 = vor.u32 %v4422_v19, %v4095_v34 }
 0x2ae   : > { %1150 = vst.msk [vmem:[#allocation2 + $0x80] sm:$0xff] %vm1133_vm2, %v1070_v11  ;;  %v1218_v14 = vpack.c.bf16 %v1190_v13, %v1189_v8  ;;  %v1244_v30 = vld [vmem:[#allocation2 + $0x71] sm:$0xff]  ;;  %v1856_v8 = vld [vmem:[#allocation2 + $0x5a] sm:$0xff] }
 0x2b0   : > { %4141 = vmatmul.msk.bf16.gmra.mxu0 %vm1133_vm2, %v1218_v14  ;;  %v1855_v14 = vld [vmem:[#allocation2 + $0x52] sm:$0xff] }
 0x2b1   : > { %v5199_v54 = vpop.f32.mrf.mxu1  ;;  %v5232_v19 = vpack.c.bf16 %v1856_v8, %v1855_v14 }
 0x2b3   : > { %v1071_v25 = vpop.f32.mrf.mxu2 }
 0x2b4   : > { %v1072_v26 = vadd.f32 %v1071_v25, %v5047_v41 }
 0x2b5   : > { %v1245_v31 = vld [vmem:[#allocation2 + $0x79] sm:$0xff] }
 0x2b6   : > { %1151 = vst.msk [vmem:[#allocation2 + $0x88] sm:$0xff] %vm1133_vm2, %v1072_v26  ;;  %v1273_v51 = vpack.c.bf16 %v1245_v31, %v1244_v30  ;;  %v1191_v5 = vld [vmem:[#allocation2 + $0x80] sm:$0xff] }
 0x2b8   : > { %1113 = vmatmul.bf16.gmra.mxu2 %v4098_v4  ;;  %4123 = vmatmul.msk.bf16.gmra.mxu3 %vm1133_vm2, %v1273_v51 }
 0x2b9   : > { %v5210_v52 = vpop.f32.mrf.mxu1 }
 0x2bb   : > { %v1074_v35 = vpop.f32.mrf.mxu2 }
 0x2bc   : > { %v1075_v29 = vadd.f32 %v1074_v35, %v5064_v62  ;;  %4175 = vmatmul.msk.bf16.gmra.mxu1 %vm1133_vm2, %v5212_v58  ;;  %v4103_v62 = vld [vmem:[%s6406_s7 + $0x128] sm:$0xf0] }
 0x2bd   : > { %v1509_v41 = vpop.f32.mrf.mxu0  ;;  %v1192_v22 = vld [vmem:[#allocation2 + $0x88] sm:$0xff]  ;;  %v4106_v50 = vor.u32 %v4424_v45, %v4103_v62 }
 0x2be   : > { %1152 = vst.msk [vmem:[#allocation2 + $0x90] sm:$0xff] %vm1133_vm2, %v1075_v29  ;;  %v1219_v1 = vpack.c.bf16 %v1192_v22, %v1191_v5  ;;  %v1246_v47 = vld [vmem:[#allocation2 + $0x81] sm:$0xff] }
 0x2c0   : > { %4142 = vmatmul.msk.bf16.gmra.mxu0 %vm1133_vm2, %v1219_v1  ;;  %v4190_v1 = vld [vmem:[%s6402_s3 + $0x10] sm:$0xf] }
 0x2c1   : > { %v5219_v40 = vpop.f32.mrf.mxu1 }
 0x2c3   : > { %v1076_v46 = vpop.f32.mrf.mxu2 }
 0x2c4   : > { %v1077_v49 = vadd.f32 %v1076_v46, %v5069_v37 }
 0x2c5   : > { %v1511_v55 = vpop.f32.mrf.mxu0  ;;  %v1247_v42 = vld [vmem:[#allocation2 + $0x89] sm:$0xff] }
 0x2c6   : > { %1153 = vst.msk [vmem:[#allocation2 + $0x98] sm:$0xff] %vm1133_vm2, %v1077_v49  ;;  %v1274_v11 = vpack.c.bf16 %v1247_v42, %v1246_v47  ;;  %v1193_v30 = vld [vmem:[#allocation2 + $0x90] sm:$0xff]  ;;  %v2206_v49 = vsel %vm1340_vm1, %v4190_v1, 0 }
 0x2c7   : > { %2215 = vmatpush.bf16.msrb.mxu2 %v2206_v49  ;;  %v1858_v47 = vld [vmem:[#allocation2 + $0x6a] sm:$0xff]  ;;  %v1859_v49 = vld [vmem:[#allocation2 + $0x72] sm:$0xff] }
 0x2c8   : > { %1118 = vmatmul.bf16.gmra.mxu2 %v4106_v50  ;;  %4124 = vmatmul.msk.bf16.gmra.mxu3 %vm1133_vm2, %v1274_v11 }
 0x2c9   : > { %v5230_v13 = vpop.f32.mrf.mxu1 }
 0x2cb   : > { %v1079_v34 = vpop.f32.mrf.mxu2  ;;  %v1353_v25 = vpop.f32.mrf.mxu3 }
 0x2cc   : > { %v1080_v37 = vadd.f32 %v1079_v34, %v5086_v33  ;;  %v5235_v26 = vadd.f32 %v1509_v41, %v1353_v25  ;;  %4176 = vmatmul.msk.bf16.gmra.mxu1 %vm1133_vm2, %v5232_v19  ;;  %v4111_v33 = vld [vmem:[%s6406_s7 + $0x138] sm:$0xf0] }
 0x2cd   : > { %v1514_v4 = vpop.f32.mrf.mxu0  ;;  %v1194_v31 = vld [vmem:[#allocation2 + $0x98] sm:$0xff]  ;;  %v4114_v22 = vor.u32 %v4426_v53, %v4111_v33 }
 0x2ce   : > { %1154 = vst.msk [vmem:[#allocation2 + $0xa0] sm:$0xff] %vm1133_vm2, %v1080_v37  ;;  %v1220_v51 = vpack.c.bf16 %v1194_v31, %v1193_v30  ;;  %v1248_v62 = vld [vmem:[#allocation2 + $0x91] sm:$0xff] }
 0x2d0   : > { %4143 = vmatmul.msk.bf16.gmra.mxu0 %vm1133_vm2, %v1220_v51  ;;  %v822_v51 = vunpack.c.h.b16 %v5128_v0 }
 0x2d1   : > { %v5241_v20 = vpop.f32.mrf.mxu1 }
 0x2d3   : > { %v1081_v35 = vpop.f32.mrf.mxu2  ;;  %v1355_v29 = vpop.f32.mrf.mxu3 }
 0x2d4   : > { %v1082_v41 = vadd.f32 %v1081_v35, %v5091_v39  ;;  %v5250_v5 = vadd.f32 %v1511_v55, %v1355_v29  ;;  %v1857_v55 = vld [vmem:[#allocation2 + $0x62] sm:$0xff]  ;;  %v864_v29 = vpack.c.b16 %v822_v51, %v822_v51 }
 0x2d5   : > { %v1516_v45 = vpop.f32.mrf.mxu0  ;;  %v1249_v46 = vld [vmem:[#allocation2 + $0x99] sm:$0xff]  ;;  %v5260_v42 = vpack.c.bf16 %v1858_v47, %v1857_v55 }
 0x2d6   : > { %1155 = vst.msk [vmem:[#allocation2 + $0xa8] sm:$0xff] %vm1133_vm2, %v1082_v41  ;;  %v1275_v50 = vpack.c.bf16 %v1249_v46, %v1248_v62  ;;  %v1195_v37 = vld [vmem:[#allocation2 + $0xa0] sm:$0xff] }
 0x2d7   : > { %v1860_v46 = vld [vmem:[#allocation2 + $0x7a] sm:$0xff] }
 0x2d8   : > { %1123 = vmatmul.bf16.gmra.mxu2 %v4114_v22  ;;  %4125 = vmatmul.msk.bf16.gmra.mxu3 %vm1133_vm2, %v1275_v50  ;;  %v5279_v50 = vpack.c.bf16 %v1860_v46, %v1859_v49  ;;  %v1862_v46 = vld [vmem:[#allocation2 + $0x8a] sm:$0xff] }
 0x2d9   : > { %v5258_v39 = vpop.f32.mrf.mxu1 }
 0x2db   : > { %v1084_v11 = vpop.f32.mrf.mxu2  ;;  %v1358_v8 = vpop.f32.mrf.mxu3 }
 0x2dc   : > { %v1085_v14 = vadd.f32 %v1084_v11, %v5112_v57  ;;  %v5263_v34 = vadd.f32 %v1514_v4, %v1358_v8  ;;  %4177 = vmatmul.msk.bf16.gmra.mxu1 %vm1133_vm2, %v5260_v42 }
 0x2dd   : > { %v1519_v25 = vpop.f32.mrf.mxu0  ;;  %v1196_v30 = vld [vmem:[#allocation2 + $0xa8] sm:$0xff] }
 0x2de   : > { %1156 = vst.msk [vmem:[#allocation2 + $0xb0] sm:$0xff] %vm1133_vm2, %v1085_v14  ;;  %v1221_v31 = vpack.c.bf16 %v1196_v30, %v1195_v37  ;;  %v1250_v22 = vld [vmem:[#allocation2 + $0xa1] sm:$0xff] }
 0x2e0   : > { %4144 = vmatmul.msk.bf16.gmra.mxu0 %vm1133_vm2, %v1221_v31 }
 0x2e1   : > { %v5270_v53 = vpop.f32.mrf.mxu1 }
 0x2e3   : > { %v1086_v33 = vpop.f32.mrf.mxu2  ;;  %v1360_v35 = vpop.f32.mrf.mxu3 }
 0x2e4   : > { %v1087_v57 = vadd.f32 %v1086_v33, %v5117_v23  ;;  %v5273_v4 = vadd.f32 %v1516_v45, %v1360_v35  ;;  %v2096_v33 = vld [vmem:[#allocation2 + $0x1b] sm:$0xff] }
 0x2e5   : > { %v1521_v41 = vpop.f32.mrf.mxu0  ;;  %v1251_v1 = vld [vmem:[#allocation2 + $0xa9] sm:$0xff] }
 0x2e6   : > { %1157 = vst.msk [vmem:[#allocation2 + $0xb8] sm:$0xff] %vm1133_vm2, %v1087_v57  ;;  %v1276_v62 = vpack.c.bf16 %v1251_v1, %v1250_v22  ;;  %v1197_v8 = vld [vmem:[#allocation2 + $0xb0] sm:$0xff] }
 0x2e7   : > { %v2095_v22 = vld [vmem:[#allocation2 + $0x13] sm:$0xff] }
 0x2e8   : > { %1128 = vmatmul.bf16.gmra.mxu2 %v864_v29  ;;  %4126 = vmatmul.msk.bf16.gmra.mxu3 %vm1133_vm2, %v1276_v62  ;;  %v2131_v62 = vpack.c.bf16 %v2096_v33, %v2095_v22 }
 0x2e9   : > { %v5277_v0 = vpop.f32.mrf.mxu1 }
 0x2eb   : > { %v1089_v47 = vpop.f32.mrf.mxu2  ;;  %v1363_v23 = vpop.f32.mrf.mxu3 }
 0x2ec   : > { %v1090_v45 = vadd.f32 %v1089_v47, %v5134_v36  ;;  %v5282_v55 = vadd.f32 %v1519_v25, %v1363_v23  ;;  %4178 = vmatmul.msk.bf16.gmra.mxu1 %vm1133_vm2, %v5279_v50  ;;  %v1861_v47 = vld [vmem:[#allocation2 + $0x82] sm:$0xff] }
 0x2ed   : > { %v1524_v11 = vpop.f32.mrf.mxu0  ;;  %v1198_v14 = vld [vmem:[#allocation2 + $0xb8] sm:$0xff]  ;;  %v5298_v23 = vpack.c.bf16 %v1862_v46, %v1861_v47  ;;  %v2097_v46 = vld [vmem:[#allocation2 + $0x23] sm:$0xff] }
 0x2ee   : > { %1158 = vst.msk [vmem:[#allocation2 + $0xc0] sm:$0xff] %vm1133_vm2, %v1090_v45  ;;  %v1222_v37 = vpack.c.bf16 %v1198_v14, %v1197_v8  ;;  %v1252_v57 = vld [vmem:[#allocation2 + $0xb1] sm:$0xff] }
 0x2f0   : > { %4145 = vmatmul.msk.bf16.gmra.mxu0 %vm1133_vm2, %v1222_v37 }
 0x2f1   : > { %v5288_v30 = vpop.f32.mrf.mxu1 }
 0x2f3   : > { %v1091_v31 = vpop.f32.mrf.mxu2  ;;  %v1365_v51 = vpop.f32.mrf.mxu3 }
 0x2f4   : > { %v1092_v36 = vadd.f32 %v1091_v31, %v5139_v43  ;;  %v5291_v25 = vadd.f32 %v1521_v41, %v1365_v51 }
 0x2f5   : > { %v1526_v35 = vpop.f32.mrf.mxu0  ;;  %v1253_v29 = vld [vmem:[#allocation2 + $0xb9] sm:$0xff] }
 0x2f6   : > { %1159 = vst.msk [vmem:[#allocation2 + $0xc8] sm:$0xff] %vm1133_vm2, %v1092_v36  ;;  %v1277_v1 = vpack.c.bf16 %v1253_v29, %v1252_v57  ;;  %v1199_v37 = vld [vmem:[#allocation2 + $0xc0] sm:$0xff]  ;;  %v2098_v29 = vld [vmem:[#allocation2 + $0x2b] sm:$0xff] }
 0x2f8   : > { %4127 = vmatmul.msk.bf16.gmra.mxu3 %vm1133_vm2, %v1277_v1  ;;  %4191 = vmatmul.msk.bf16.vlgmr.msrb.gmra.mxu2 %vm1133_vm2, %v2131_v62 }
 0x2f9   : > { %v5296_v49 = vpop.f32.mrf.mxu1 }
 0x2fb   : > { %v1094_v43 = vpop.f32.mrf.mxu2  ;;  %v1368_v41 = vpop.f32.mrf.mxu3 }
 0x2fc   : > { %v1095_v45 = vadd.f32 %v1094_v43, %v5150_v56  ;;  %v5301_v8 = vadd.f32 %v1524_v11, %v1368_v41  ;;  %4179 = vmatmul.msk.bf16.gmra.mxu1 %vm1133_vm2, %v5298_v23  ;;  %v2132_v43 = vpack.c.bf16 %v2098_v29, %v2097_v46  ;;  %v1864_v41 = vld [vmem:[#allocation2 + $0x9a] sm:$0xff] }
 0x2fd   : > { %v1529_v14 = vpop.f32.mrf.mxu0  ;;  %v1200_v31 = vld [vmem:[#allocation2 + $0xc8] sm:$0xff] }
 0x2fe   : > { %6427 = vst [vmem:[#allocation6_spill] sm:$0xff] %v5301_v8  ;;  %v1223_v51 = vpack.c.bf16 %v1200_v31, %v1199_v37  ;;  %v1254_v1 = vld [vmem:[#allocation2 + $0xc1] sm:$0xff]  ;;  %v1863_v37 = vld [vmem:[#allocation2 + $0x92] sm:$0xff] }
 0x2ff   : > { %1160 = vst.msk [vmem:[#allocation2 + $0xd0] sm:$0xff] %vm1133_vm2, %v1095_v45  ;;  %v5315_v31 = vpack.c.bf16 %v1864_v41, %v1863_v37 }
 0x300   : > { %4146 = vmatmul.msk.bf16.gmra.mxu0 %vm1133_vm2, %v1223_v51 }
 0x301   : > { %v1018_v33 = vpop.f32.mrf.mxu1 }
 0x303   : > { %v1096_v36 = vpop.f32.mrf.mxu2  ;;  %v1370_v57 = vpop.f32.mrf.mxu3 }
 0x304   : > { %v1097_v22 = vadd.f32 %v1096_v36, %v5159_v16  ;;  %v5308_v56 = vadd.f32 %v1526_v35, %v1370_v57 }
 0x305   : > { %v1531_v11 = vpop.f32.mrf.mxu0 }
 0x306   : > { %6428 = vst [vmem:[#allocation7_spill] sm:$0xff] %v5308_v56  ;;  %v1255_v62 = vld [vmem:[#allocation2 + $0xc9] sm:$0xff] }
 0x307   : > { %1161 = vst.msk [vmem:[#allocation2 + $0xd8] sm:$0xff] %vm1133_vm2, %v1097_v22  ;;  %v1278_v47 = vpack.c.bf16 %v1255_v62, %v1254_v1  ;;  %v1201_v57 = vld [vmem:[#allocation2 + $0xd0] sm:$0xff] }
 0x308   : > { %4192 = vmatmul.msk.bf16.gmra.mxu2 %vm1133_vm2, %v2132_v43 }
 0x309   : > { %4128 = vmatmul.msk.bf16.gmra.mxu3 %vm1133_vm2, %v1278_v47  ;;  %v5313_v45 = vpop.f32.mrf.mxu1  ;;  %v2100_v47 = vld [vmem:[#allocation2 + $0x3b] sm:$0xff] }
 0x30b   : > { %v1099_v16 = vpop.f32.mrf.mxu2  ;;  %v1373_v35 = vpop.f32.mrf.mxu3 }
 0x30c   : > { %v1100_v51 = vadd.f32 %v1099_v16, %v5170_v32  ;;  %v5318_v33 = vadd.f32 %v1529_v14, %v1373_v35  ;;  %4180 = vmatmul.msk.bf16.gmra.mxu1 %vm1133_vm2, %v5315_v31  ;;  %v2099_v16 = vld [vmem:[#allocation2 + $0x33] sm:$0xff] }
 0x30d   : > { %v1534_v36 = vpop.f32.mrf.mxu0 }
 0x30e   : > { %6429 = vst [vmem:[#allocation8_spill] sm:$0xff] %v5318_v33  ;;  %v1202_v29 = vld [vmem:[#allocation2 + $0xd8] sm:$0xff] }
 0x30f   : > { %1162 = vst.msk [vmem:[#allocation2 + $0xe0] sm:$0xff] %vm1133_vm2, %v1100_v51  ;;  %v1224_v22 = vpack.c.bf16 %v1202_v29, %v1201_v57  ;;  %v1256_v41 = vld [vmem:[#allocation2 + $0xd1] sm:$0xff]  ;;  %v2133_v51 = vpack.c.bf16 %v2100_v47, %v2099_v16 }
 0x310   : > { %v1866_v57 = vld [vmem:[#allocation2 + $0xaa] sm:$0xff] }
 0x311   : > { %4147 = vmatmul.msk.bf16.gmra.mxu0 %vm1133_vm2, %v1224_v22  ;;  %v5324_v1 = vpop.f32.mrf.mxu1  ;;  %v1865_v22 = vld [vmem:[#allocation2 + $0xa2] sm:$0xff] }
 0x312   : > { %v5334_v33 = vpack.c.bf16 %v1866_v57, %v1865_v22  ;;  %v2102_v57 = vld [vmem:[#allocation2 + $0x4b] sm:$0xff] }
 0x313   : > { %v1101_v62 = vpop.f32.mrf.mxu2  ;;  %v1375_v46 = vpop.f32.mrf.mxu3 }
 0x314   : > { %v1102_v32 = vadd.f32 %v1101_v62, %v5179_v44  ;;  %v5327_v14 = vadd.f32 %v1531_v11, %v1375_v46 }
 0x315   : > { %v1536_v43 = vpop.f32.mrf.mxu0 }
 0x316   : > { %6430 = vst [vmem:[#allocation9_spill] sm:$0xff] %v5327_v14  ;;  %v1257_v37 = vld [vmem:[#allocation2 + $0xd9] sm:$0xff] }
 0x317   : > { %1163 = vst.msk [vmem:[#allocation2 + $0xe8] sm:$0xff] %vm1133_vm2, %v1102_v32  ;;  %v1279_v35 = vpack.c.bf16 %v1257_v37, %v1256_v41  ;;  %v1203_v32 = vld [vmem:[#allocation2 + $0xe0] sm:$0xff] }
 0x318   : > { %4193 = vmatmul.msk.bf16.gmra.mxu2 %vm1133_vm2, %v2133_v51 }
 0x319   : > { %4129 = vmatmul.msk.bf16.gmra.mxu3 %vm1133_vm2, %v1279_v35  ;;  %v5332_v29 = vpop.f32.mrf.mxu1 }
 0x31b   : > { %v1104_v44 = vpop.f32.mrf.mxu2  ;;  %v1378_v11 = vpop.f32.mrf.mxu3 }
 0x31c   : > { %v1105_v62 = vadd.f32 %v1104_v44, %v5190_v28  ;;  %v5337_v46 = vadd.f32 %v1534_v36, %v1378_v11  ;;  %4181 = vmatmul.msk.bf16.gmra.mxu1 %vm1133_vm2, %v5334_v33 }
 0x31d   : > { %v1539_v47 = vpop.f32.mrf.mxu0 }
 0x31e   : > { %6431 = vst [vmem:[#allocation10_spill] sm:$0xff] %v5337_v46  ;;  %v1204_v41 = vld [vmem:[#allocation2 + $0xe8] sm:$0xff] }
 0x31f   : > { %1164 = vst.msk [vmem:[#allocation2 + $0xf0] sm:$0xff] %vm1133_vm2, %v1105_v62  ;;  %v1225_v37 = vpack.c.bf16 %v1204_v41, %v1203_v32  ;;  %v1258_v44 = vld [vmem:[#allocation2 + $0xe1] sm:$0xff] }
 0x320   : > { %v2101_v46 = vld [vmem:[#allocation2 + $0x43] sm:$0xff]  ;;  %v1868_v32 = vld [vmem:[#allocation2 + $0xba] sm:$0xff] }
 0x321   : > { %4148 = vmatmul.msk.bf16.gmra.mxu0 %vm1133_vm2, %v1225_v37  ;;  %v5343_v16 = vpop.f32.mrf.mxu1  ;;  %v2134_v62 = vpack.c.bf16 %v2102_v57, %v2101_v46  ;;  %v4152_v41 = vld [vmem:[%s6402_s3 + $0x8] sm:$0xf] }
 0x322   : > { %v1710_v37 = vsel %vm1340_vm1, %v4152_v41, 0 }
 0x323   : > { %v1106_v35 = vpop.f32.mrf.mxu2  ;;  %v1380_v51 = vpop.f32.mrf.mxu3  ;;  %1719 = vmatpush.bf16.msra.mxu3 %v1710_v37  ;;  %v2104_v37 = vld [vmem:[#allocation2 + $0x5b] sm:$0xff] }
 0x324   : > { %v1107_v28 = vadd.f32 %v1106_v35, %v5199_v54  ;;  %v5346_v36 = vadd.f32 %v1536_v43, %v1380_v51  ;;  %v1867_v43 = vld [vmem:[#allocation2 + $0xb2] sm:$0xff] }
 0x325   : > { %v1541_v22 = vpop.f32.mrf.mxu0  ;;  %v5357_v35 = vpack.c.bf16 %v1868_v32, %v1867_v43 }
 0x326   : > { %6432 = vst [vmem:[#allocation11_spill] sm:$0xff] %v5346_v36  ;;  %v1259_v11 = vld [vmem:[#allocation2 + $0xe9] sm:$0xff]  ;;  %v2103_v36 = vld [vmem:[#allocation2 + $0x53] sm:$0xff] }
 0x327   : > { %1165 = vst.msk [vmem:[#allocation2 + $0xf8] sm:$0xff] %vm1133_vm2, %v1107_v28  ;;  %v1280_v14 = vpack.c.bf16 %v1259_v11, %v1258_v44  ;;  %v1205_v44 = vld [vmem:[#allocation2 + $0xf0] sm:$0xff] }
 0x328   : > { %4194 = vmatmul.msk.bf16.gmra.mxu2 %vm1133_vm2, %v2134_v62 }
 0x329   : > { %4130 = vmatmul.msk.bf16.gmra.mxu3 %vm1133_vm2, %v1280_v14  ;;  %v5354_v54 = vpop.f32.mrf.mxu1 }
 0x32b   : > { %v1109_v51 = vpop.f32.mrf.mxu2  ;;  %v1383_v28 = vpop.f32.mrf.mxu3 }
 0x32c   : > { %v1110_v46 = vadd.f32 %v1109_v51, %v5210_v52  ;;  %v5360_v57 = vadd.f32 %v1539_v47, %v1383_v28  ;;  %4182 = vmatmul.msk.bf16.gmra.mxu1 %vm1133_vm2, %v5357_v35 }
 0x32d   : > { %v1544_v14 = vpop.f32.mrf.mxu0 }
 0x32e   : > { %6433 = vst [vmem:[#allocation12_spill] sm:$0xff] %v5360_v57  ;;  %v1206_v11 = vld [vmem:[#allocation2 + $0xf8] sm:$0xff] }
 0x32f   : > { %1166 = vst.msk [vmem:[#allocation2 + $0x100] sm:$0xff] %vm1133_vm2, %v1110_v46  ;;  %v1226_v62 = vpack.c.bf16 %v1206_v11, %v1205_v44  ;;  %v1260_v28 = vld [vmem:[#allocation2 + $0xf1] sm:$0xff]  ;;  %v2135_v46 = vpack.c.bf16 %v2104_v37, %v2103_v36 }
 0x330   : > { %v1870_v44 = vld [vmem:[#allocation2 + $0xca] sm:$0xff] }
 0x331   : > { %4149 = vmatmul.msk.bf16.gmra.mxu0 %vm1133_vm2, %v1226_v62  ;;  %v5366_v32 = vpop.f32.mrf.mxu1  ;;  %v1869_v62 = vld [vmem:[#allocation2 + $0xc2] sm:$0xff] }
 0x332   : > { %v5376_v8 = vpack.c.bf16 %v1870_v44, %v1869_v62  ;;  %v2106_v44 = vld [vmem:[#allocation2 + $0x6b] sm:$0xff] }
 0x333   : > { %v1111_v41 = vpop.f32.mrf.mxu2  ;;  %v1385_v43 = vpop.f32.mrf.mxu3 }
 0x334   : > { %v1112_v52 = vadd.f32 %v1111_v41, %v5219_v40  ;;  %v5369_v47 = vadd.f32 %v1541_v22, %v1385_v43  ;;  %6435 = vst [vmem:[#allocation14_spill] sm:$0xff] %v5376_v8 }
 0x335   : > { %v1546_v51 = vpop.f32.mrf.mxu0 }
 0x336   : > { %6434 = vst [vmem:[#allocation13_spill] sm:$0xff] %v5369_v47  ;;  %v1261_v57 = vld [vmem:[#allocation2 + $0xf9] sm:$0xff] }
 0x337   : > { %1167 = vst.msk [vmem:[#allocation2 + $0x108] sm:$0xff] %vm1133_vm2, %v1112_v52  ;;  %v1281_v56 = vpack.c.bf16 %v1261_v57, %v1260_v28  ;;  %v1207_v57 = vld [vmem:[#allocation2 + $0x100] sm:$0xff] }
 0x338   : > { %4195 = vmatmul.msk.bf16.gmra.mxu2 %vm1133_vm2, %v2135_v46 }
 0x339   : > { %4131 = vmatmul.msk.bf16.gmra.mxu3 %vm1133_vm2, %v1281_v56  ;;  %v5374_v11 = vpop.f32.mrf.mxu1  ;;  %v4209_v56 = vld [vmem:[%s6402_s3 + $0x14] sm:$0xf] }
 0x33a   : > { %v2454_v52 = vsel %vm1340_vm1, %v4209_v56, 0 }
 0x33b   : > { %v1114_v40 = vpop.f32.mrf.mxu2  ;;  %v1388_v22 = vpop.f32.mrf.mxu3  ;;  %2463 = vmatpush.bf16.msra.mxu0 %v2454_v52  ;;  %v1871_v52 = vld [vmem:[#allocation2 + $0xd2] sm:$0xff] }
 0x33c   : > { %v1115_v41 = vadd.f32 %v1114_v40, %v5230_v13  ;;  %v5379_v43 = vadd.f32 %v1544_v14, %v1388_v22  ;;  %4183 = vmatmul.msk.bf16.gmra.mxu1 %vm1133_vm2, %v5376_v8  ;;  %v2105_v8 = vld [vmem:[#allocation2 + $0x63] sm:$0xff] }
 0x33d   : > { %v1549_v36 = vpop.f32.mrf.mxu0  ;;  %v2136_v56 = vpack.c.bf16 %v2106_v44, %v2105_v8 }
 0x33e   : > { %6436 = vst [vmem:[#allocation15_spill] sm:$0xff] %v5379_v43  ;;  %v1208_v37 = vld [vmem:[#allocation2 + $0x108] sm:$0xff] }
 0x33f   : > { %1168 = vst.msk [vmem:[#allocation2 + $0x110] sm:$0xff] %vm1133_vm2, %v1115_v41  ;;  %v1227_v28 = vpack.c.bf16 %v1208_v37, %v1207_v57  ;;  %v1262_v43 = vld [vmem:[#allocation2 + $0x101] sm:$0xff] }
 0x340   : > { %v1872_v57 = vld [vmem:[#allocation2 + $0xda] sm:$0xff] }
 0x341   : > { %4150 = vmatmul.msk.bf16.gmra.mxu0 %vm1133_vm2, %v1227_v28  ;;  %v5389_v13 = vpop.f32.mrf.mxu1  ;;  %v5399_v28 = vpack.c.bf16 %v1872_v57, %v1871_v52 }
 0x343   : > { %v1116_v14 = vpop.f32.mrf.mxu2  ;;  %v1390_v46 = vpop.f32.mrf.mxu3  ;;  %6438 = vst [vmem:[#allocation17_spill] sm:$0xff] %v5399_v28 }
 0x344   : > { %v1117_v62 = vadd.f32 %v1116_v14, %v5241_v20  ;;  %v5392_v40 = vadd.f32 %v1546_v51, %v1390_v46 }
 0x345   : > { %v1551_v22 = vpop.f32.mrf.mxu0 }
 0x346   : > { %6437 = vst [vmem:[#allocation16_spill] sm:$0xff] %v5392_v40  ;;  %v1263_v47 = vld [vmem:[#allocation2 + $0x109] sm:$0xff] }
 0x347   : > { %1169 = vst.msk [vmem:[#allocation2 + $0x118] sm:$0xff] %vm1133_vm2, %v1117_v62  ;;  %v1282_v41 = vpack.c.bf16 %v1263_v47, %v1262_v43  ;;  %v1209_v47 = vld [vmem:[#allocation2 + $0x110] sm:$0xff] }
 0x348   : > { %4196 = vmatmul.msk.bf16.gmra.mxu2 %vm1133_vm2, %v2136_v56 }
 0x349   : > { %4132 = vmatmul.msk.bf16.gmra.mxu3 %vm1133_vm2, %v1282_v41  ;;  %v5397_v37 = vpop.f32.mrf.mxu1 }
 0x34b   : > { %v1119_v20 = vpop.f32.mrf.mxu2  ;;  %v1393_v51 = vpop.f32.mrf.mxu3 }
 0x34c   : > { %v1120_v14 = vadd.f32 %v1119_v20, %v5258_v39  ;;  %v5402_v46 = vadd.f32 %v1549_v36, %v1393_v51  ;;  %4184 = vmatmul.msk.bf16.gmra.mxu1 %vm1133_vm2, %v5399_v28  ;;  %v2108_v39 = vld [vmem:[#allocation2 + $0x7b] sm:$0xff] }
 0x34d   : > { %v1554_v8 = vpop.f32.mrf.mxu0 }
 0x34e   : > { %6439 = vst [vmem:[#allocation18_spill] sm:$0xff] %v5402_v46  ;;  %v1210_v43 = vld [vmem:[#allocation2 + $0x118] sm:$0x3f] }
 0x34f   : > { %1170 = vst.msk [vmem:[#allocation2 + $0x120] sm:$0xff] %vm1133_vm2, %v1120_v14  ;;  %v1228_v44 = vpack.c.bf16 %v1210_v43, %v1209_v47  ;;  %v1264_v57 = vld [vmem:[#allocation2 + $0x111] sm:$0xff]  ;;  %v1265_v52 = vld [vmem:[#allocation2 + $0x119] sm:$0x3f] }
 0x350   : > { %v2107_v46 = vld [vmem:[#allocation2 + $0x73] sm:$0xff]  ;;  %v1283_v40 = vpack.c.bf16 %v1265_v52, %v1264_v57  ;;  %v1874_v47 = vld [vmem:[#allocation2 + $0xea] sm:$0xff] }
 0x351   : > { %4151 = vmatmul.msk.bf16.gmra.mxu0 %vm1133_vm2, %v1228_v44  ;;  %v5408_v62 = vpop.f32.mrf.mxu1  ;;  %v2137_v14 = vpack.c.bf16 %v2108_v39, %v2107_v46  ;;  %v1873_v44 = vld [vmem:[#allocation2 + $0xe2] sm:$0xff]  ;;  %v2343_v57 = vld [vmem:[#allocation2 + $0x14] sm:$0xff] }
 0x352   : > { %6440 = vst [vmem:[#allocation19_spill] sm:$0xff] %v5408_v62  ;;  %v5418_v28 = vpack.c.bf16 %v1874_v47, %v1873_v44  ;;  %v2110_v47 = vld [vmem:[#allocation2 + $0x8b] sm:$0xff]  ;;  %v1599_v44 = vld [vmem:[#allocation2 + $0x2] sm:$0xff] }
 0x353   : > { %v1121_v41 = vpop.f32.mrf.mxu2  ;;  %v1395_v56 = vpop.f32.mrf.mxu3 }
 0x354   : > { %v1122_v36 = vadd.f32 %v1121_v41, %v5270_v53  ;;  %v5411_v20 = vadd.f32 %v1551_v22, %v1395_v56  ;;  %v2344_v22 = vld [vmem:[#allocation2 + $0x1c] sm:$0xff] }
 0x355   : > { %v1556_v51 = vpop.f32.mrf.mxu0 }
 0x356   : > { %6441 = vst [vmem:[#allocation20_spill] sm:$0xff] %v5411_v20 }
 0x357   : > { %1171 = vst.msk [vmem:[#allocation2 + $0x128] sm:$0xff] %vm1133_vm2, %v1122_v36 }
 0x358   : > { %4197 = vmatmul.msk.bf16.gmra.mxu2 %vm1133_vm2, %v2137_v14  ;;  %v1600_v14 = vld [vmem:[#allocation2 + $0xa] sm:$0xff] }
 0x359   : > { %4133 = vmatmul.msk.bf16.gmra.mxu3 %vm1133_vm2, %v1283_v40  ;;  %v5416_v43 = vpop.f32.mrf.mxu1  ;;  %v2379_v40 = vpack.c.bf16 %v2344_v22, %v2343_v57  ;;  %v1876_v22 = vld [vmem:[#allocation2 + $0xfa] sm:$0xff] }
 0x35b   : > { %v1124_v62 = vpop.f32.mrf.mxu2  ;;  %v1398_v53 = vpop.f32.mrf.mxu3 }
 0x35c   : > { %v1125_v41 = vadd.f32 %v1124_v62, %v5277_v0  ;;  %v5421_v56 = vadd.f32 %v1554_v8, %v1398_v53  ;;  %4185 = vmatmul.msk.bf16.gmra.mxu1 %vm1133_vm2, %v5418_v28  ;;  %v2109_v53 = vld [vmem:[#allocation2 + $0x83] sm:$0xff] }
 0x35d   : > { %v1559_v46 = vpop.f32.mrf.mxu0 }
 0x35e   : > { %6442 = vst [vmem:[#allocation21_spill] sm:$0xff] %v5421_v56  ;;  %v1635_v56 = vpack.c.bf16 %v1600_v14, %v1599_v44 }
 0x35f   : > { %1172 = vst.msk [vmem:[#allocation2 + $0x130] sm:$0xff] %vm1133_vm2, %v1125_v41  ;;  %v2138_v41 = vpack.c.bf16 %v2110_v47, %v2109_v53  ;;  %v2345_v47 = vld [vmem:[#allocation2 + $0x24] sm:$0xff] }
 0x361   : > { %4210 = vmatmul.msk.bf16.vlgmr.msra.gmra.mxu0 %vm1133_vm2, %v2379_v40  ;;  %v5427_v52 = vpop.f32.mrf.mxu1  ;;  %v1875_v40 = vld [vmem:[#allocation2 + $0xf2] sm:$0xff] }
 0x362   : > { %v5437_v20 = vpack.c.bf16 %v1876_v22, %v1875_v40  ;;  %v2111_v22 = vld [vmem:[#allocation2 + $0x93] sm:$0xff] }
 0x363   : > { %v1126_v39 = vpop.f32.mrf.mxu2  ;;  %v1400_v36 = vpop.f32.mrf.mxu3 }
 0x364   : > { %v1127_v0 = vadd.f32 %v1126_v39, %v5288_v30  ;;  %v5430_v8 = vadd.f32 %v1556_v51, %v1400_v36  ;;  %v2346_v39 = vld [vmem:[#allocation2 + $0x2c] sm:$0xff] }
 0x365   : > { %v1561_v62 = vpop.f32.mrf.mxu0 }
 0x366   : > { %6443 = vst [vmem:[#allocation22_spill] sm:$0xff] %v5430_v8 }
 0x367   : > { %1173 = vst.msk [vmem:[#allocation2 + $0x138] sm:$0xff] %vm1133_vm2, %v1127_v0 }
 0x368   : > { %4198 = vmatmul.msk.bf16.gmra.mxu2 %vm1133_vm2, %v2138_v41  ;;  %v2112_v41 = vld [vmem:[#allocation2 + $0x9b] sm:$0xff] }
 0x369   : > { %4153 = vmatmul.msk.bf16.vlgmr.msra.gmra.mxu3 %vm1133_vm2, %v1635_v56  ;;  %v5435_v57 = vpop.f32.mrf.mxu1  ;;  %v5445_v56 = vpack.c.bf16 %v2346_v39, %v2345_v47  ;;  %v2139_v40 = vpack.c.bf16 %v2112_v41, %v2111_v22  ;;  %v1877_v39 = vld [vmem:[#allocation2 + $0x102] sm:$0xff]  ;;  %v2347_v41 = vld [vmem:[#allocation2 + $0x34] sm:$0xff] }
 0x36a   : > { %6444 = vst [vmem:[#allocation23_spill] sm:$0xff] %v5435_v57 }
 0x36b   : > { %v1129_v30 = vpop.f32.mrf.mxu2  ;;  %v1403_v51 = vpop.f32.mrf.mxu3  ;;  %6446 = vst [vmem:[#allocation25_spill] sm:$0xff] %v5445_v56 }
 0x36c   : > { %v1130_v36 = vadd.f32 %v1129_v30, %v5296_v49  ;;  %v5440_v8 = vadd.f32 %v1559_v46, %v1403_v51  ;;  %4186 = vmatmul.msk.bf16.gmra.mxu1 %vm1133_vm2, %v5437_v20  ;;  %v1878_v30 = vld [vmem:[#allocation2 + $0x10a] sm:$0xff] }
 0x36d   : > { %v1564_v14 = vpop.f32.mrf.mxu0 }
 0x36e   : > { %6445 = vst [vmem:[#allocation24_spill] sm:$0xff] %v5440_v8 }
 0x36f   : > { %1174 = vst.msk [vmem:[#allocation2 + $0x140] sm:$0xff] %vm1133_vm2, %v1130_v36  ;;  %v5458_v36 = vpack.c.bf16 %v1878_v30, %v1877_v39  ;;  %v2114_v39 = vld [vmem:[#allocation2 + $0xab] sm:$0xff] }
 0x371   : > { %4211 = vmatmul.msk.bf16.gmra.mxu0 %vm1133_vm2, %v5445_v56  ;;  %v5449_v0 = vpop.f32.mrf.mxu1  ;;  %v1882_v56 = vld [vmem:[#allocation2 + $0x12a] sm:$0x3f] }
 0x372   : > { %6447 = vst [vmem:[#allocation26_spill] sm:$0xff] %v5449_v0  ;;  %v2348_v0 = vld [vmem:[#allocation2 + $0x3c] sm:$0xff] }
 0x373   : > { %v1131_v44 = vpop.f32.mrf.mxu2  ;;  %v1405_v53 = vpop.f32.mrf.mxu3  ;;  %v5466_v22 = vpack.c.bf16 %v2348_v0, %v2347_v41  ;;  %v5481_v41 = vld [vmem:[#allocation2 + $0x112] sm:$0xff] }
 0x374   : > { %v5451_v49 = vadd.f32 %v1561_v62, %v1405_v53 }
 0x375   : > { %v1566_v46 = vpop.f32.mrf.mxu0  ;;  %6451 = vst [vmem:[#allocation30_spill] sm:$0xff] %v5466_v22 }
 0x376   : > { %6448 = vst [vmem:[#allocation27_spill] sm:$0xff] %v5451_v49 }
 0x378   : > { %4199 = vmatmul.msk.bf16.gmra.mxu2 %vm1133_vm2, %v2139_v40 }
 0x379   : > { %4154 = vmatmul.msk.bf16.gmra.mxu3 %vm1133_vm2, %v5152_v63  ;;  %v5456_v51 = vpop.f32.mrf.mxu1 }
 0x37a   : > { %6449 = vst [vmem:[#allocation28_spill] sm:$0xff] %v5456_v51 }
 0x37b   : > { %v1408_v47 = vpop.f32.mrf.mxu3  ;;  %v5460_v44 = vpop.f32.mrf.mxu2 }
 0x37c   : > { %v5462_v62 = vadd.f32 %v1564_v14, %v1408_v47  ;;  %4187 = vmatmul.msk.bf16.gmra.mxu1 %vm1133_vm2, %v5458_v36  ;;  %v2113_v47 = vld [vmem:[#allocation2 + $0xa3] sm:$0xff] }
 0x37d   : > { %v1569_v53 = vpop.f32.mrf.mxu0  ;;  %v2140_v57 = vpack.c.bf16 %v2114_v39, %v2113_v47  ;;  %v2350_v47 = vld [vmem:[#allocation2 + $0x4c] sm:$0xff] }
 0x37e   : > { %6450 = vst [vmem:[#allocation29_spill] sm:$0xff] %v5462_v62  ;;  %v1880_v62 = vld [vmem:[#allocation2 + $0x11a] sm:$0xff] }
 0x381   : > { %4212 = vmatmul.msk.bf16.gmra.mxu0 %vm1133_vm2, %v5466_v22  ;;  %v5470_v63 = vpop.f32.mrf.mxu1  ;;  %v2349_v22 = vld [vmem:[#allocation2 + $0x44] sm:$0xff] }
 0x382   : > { %6452 = vst [vmem:[#allocation31_spill] sm:$0xff] %v5470_v63  ;;  %v4247_v63 = vld [vmem:[%s6402_s3 + $0x1c] sm:$0xf]  ;;  %v5494_v49 = vpack.c.bf16 %v2350_v47, %v2349_v22 }
 0x383   : > { %v1410_v40 = vpop.f32.mrf.mxu3  ;;  %v5472_v30 = vpop.f32.mrf.mxu2 }
 0x384   : > { %v5474_v51 = vadd.f32 %v1566_v46, %v1410_v40  ;;  %v1899_v46 = vpack.c.bf16 %v1880_v62, %v5481_v41  ;;  %v2950_v40 = vsel %vm1340_vm1, %v4247_v63, 0  ;;  %6455 = vst [vmem:[#allocation34_spill] sm:$0xff] %v5494_v49 }
 0x385   : > { %v1571_v14 = vpop.f32.mrf.mxu0  ;;  %2959 = vmatpush.bf16.msra.mxu1 %v2950_v40  ;;  %v2115_v40 = vld [vmem:[#allocation2 + $0xb3] sm:$0xff] }
 0x386   : > { %6453 = vst [vmem:[#allocation32_spill] sm:$0xff] %v5474_v51 }
 0x388   : > { %4200 = vmatmul.msk.bf16.gmra.mxu2 %vm1133_vm2, %v2140_v57 }
 0x389   : > { %4155 = vmatmul.msk.bf16.gmra.mxu3 %vm1133_vm2, %v5172_v59  ;;  %v5479_v0 = vpop.f32.mrf.mxu1  ;;  %3710 = vmatpush.bf16.msrb.mxu1 %v4729_v24 }
 0x38b   : > { %v5488_v39 = vpop.f32.mrf.mxu2 }
 0x38c   : > { %v1413_v51 = vpop.f32.mrf.mxu3  ;;  %4188 = vmatmul.msk.bf16.gmra.mxu1 %vm1133_vm2, %v1899_v46 }
 0x38d   : > { %v5490_v59 = vadd.f32 %v1569_v53, %v1413_v51  ;;  %3711 = vmatpush.bf16.msrb.mxu1 %v4723_v21  ;;  %v2116_v51 = vld [vmem:[#allocation2 + $0xbb] sm:$0xff] }
 0x38e   : > { %v1574_v57 = vpop.f32.mrf.mxu0  ;;  %v2141_v24 = vpack.c.bf16 %v2116_v51, %v2115_v40  ;;  %v2351_v51 = vld [vmem:[#allocation2 + $0x54] sm:$0xff] }
 0x38f   : > { %6454 = vst [vmem:[#allocation33_spill] sm:$0xff] %v5490_v59  ;;  %v1881_v59 = vld [vmem:[#allocation2 + $0x122] sm:$0xff] }
 0x390   : > { %v1900_v22 = vpack.c.bf16 %v1882_v56, %v1881_v59  ;;  %v2118_v59 = vld [vmem:[#allocation2 + $0xcb] sm:$0xff] }
 0x391   : > { %4213 = vmatmul.msk.bf16.gmra.mxu0 %vm1133_vm2, %v5494_v49  ;;  %v5498_v62 = vpop.f32.mrf.mxu1  ;;  %3712 = vmatpush.bf16.msrb.mxu1 %v4717_v18 }
 0x392   : > { %6456 = vst [vmem:[#allocation35_spill] sm:$0xff] %v5498_v62 }
 0x393   : > { %v5501_v8 = vpop.f32.mrf.mxu2 }
 0x394   : > { %v1415_v63 = vpop.f32.mrf.mxu3 }
 0x395   : > { %v5503_v53 = vadd.f32 %v1571_v14, %v1415_v63  ;;  %3713 = vmatpush.bf16.msrb.mxu1 %v4711_v15  ;;  %v2352_v63 = vld [vmem:[#allocation2 + $0x5c] sm:$0xff] }
 0x396   : > { %v1576_v46 = vpop.f32.mrf.mxu0 }
 0x397   : > { %6457 = vst [vmem:[#allocation36_spill] sm:$0xff] %v5503_v53 }
 0x398   : > { %4201 = vmatmul.msk.bf16.gmra.mxu2 %vm1133_vm2, %v2141_v24 }
 0x399   : > { %4156 = vmatmul.msk.bf16.gmra.mxu3 %vm1133_vm2, %v5192_v7  ;;  %v5510_v21 = vpop.f32.mrf.mxu1  ;;  %3714 = vmatpush.bf16.msrb.mxu1 %v4705_v12  ;;  %v5518_v7 = vpack.c.bf16 %v2352_v63, %v2351_v51 }
 0x39b   : > { %v5512_v14 = vpop.f32.mrf.mxu2  ;;  %6459 = vst [vmem:[#allocation38_spill] sm:$0xff] %v5518_v7 }
 0x39c   : > { %v1418_v47 = vpop.f32.mrf.mxu3  ;;  %4189 = vmatmul.msk.bf16.gmra.mxu1 %vm1133_vm2, %v1900_v22  ;;  %v2117_v22 = vld [vmem:[#allocation2 + $0xc3] sm:$0xff] }
 0x39d   : > { %v5514_v62 = vadd.f32 %v1574_v57, %v1418_v47  ;;  %3715 = vmatpush.bf16.msrb.mxu1 %v4699_v9  ;;  %v2142_v12 = vpack.c.bf16 %v2118_v59, %v2117_v22  ;;  %v2840_v47 = vld [vmem:[#allocation2 + $0x2d] sm:$0xff]  ;;  %v2839_v9 = vld [vmem:[#allocation2 + $0x25] sm:$0xff] }
 0x39e   : > { %v1579_v18 = vpop.f32.mrf.mxu0  ;;  %v2875_v63 = vpack.c.bf16 %v2840_v47, %v2839_v9  ;;  %v2353_v59 = vld [vmem:[#allocation2 + $0x64] sm:$0xff] }
 0x39f   : > { %6458 = vst [vmem:[#allocation37_spill] sm:$0xff] %v5514_v62 }
 0x3a1   : > { %4214 = vmatmul.msk.bf16.gmra.mxu0 %vm1133_vm2, %v5518_v7  ;;  %v5525_v40 = vpop.f32.mrf.mxu1  ;;  %3716 = vmatpush.bf16.msrb.mxu1 %v4693_v6  ;;  %v2356_v7 = vld [vmem:[#allocation2 + $0x7c] sm:$0xff] }
 0x3a2   : > { %6460 = vst [vmem:[#allocation39_spill] sm:$0xff] %v5525_v40 }
 0x3a3   : > { %v5523_v56 = vpop.f32.mrf.mxu2 }
 0x3a4   : > { %v1420_v15 = vpop.f32.mrf.mxu3 }
 0x3a5   : > { %v5527_v57 = vadd.f32 %v1576_v46, %v1420_v15  ;;  %3717 = vmatpush.bf16.msrb.mxu1 %v4687_v3  ;;  %v2354_v46 = vld [vmem:[#allocation2 + $0x6c] sm:$0xff] }
 0x3a6   : > { %v1581_v24 = vpop.f32.mrf.mxu0  ;;  %v5541_v40 = vpack.c.bf16 %v2354_v46, %v2353_v59  ;;  %v2841_v46 = vld [vmem:[#allocation2 + $0x35] sm:$0xff] }
 0x3a7   : > { %6461 = vst [vmem:[#allocation40_spill] sm:$0xff] %v5527_v57 }
 0x3a8   : > { %4202 = vmatmul.msk.bf16.gmra.mxu2 %vm1133_vm2, %v2142_v12  ;;  %6464 = vst [vmem:[#allocation43_spill] sm:$0xff] %v5541_v40  ;;  %v2120_v12 = vld [vmem:[#allocation2 + $0xdb] sm:$0xff] }
 0x3a9   : > { %4157 = vmatmul.msk.bf16.gmra.mxu3 %vm1133_vm2, %v5212_v58  ;;  %v5539_v22 = vpop.f32.mrf.mxu1 }
 0x3aa   : > { %6463 = vst [vmem:[#allocation42_spill] sm:$0xff] %v5539_v22 }
 0x3ab   : > { %v5534_v62 = vpop.f32.mrf.mxu2 }
 0x3ac   : > { %v1423_v51 = vpop.f32.mrf.mxu3  ;;  %4248 = vmatmul.msk.bf16.vlgmr.msra.gmra.mxu1 %vm1133_vm2, %v2875_v63 }
 0x3ad   : > { %v5536_v15 = vadd.f32 %v1579_v18, %v1423_v51  ;;  %v2119_v18 = vld [vmem:[#allocation2 + $0xd3] sm:$0xff] }
 0x3ae   : > { %v1584_v6 = vpop.f32.mrf.mxu0  ;;  %v2143_v51 = vpack.c.bf16 %v2120_v12, %v2119_v18 }
 0x3af   : > { %6462 = vst [vmem:[#allocation41_spill] sm:$0xff] %v5536_v15  ;;  %v2842_v15 = vld [vmem:[#allocation2 + $0x3d] sm:$0xff] }
 0x3b0   : > { %v2876_v59 = vpack.c.bf16 %v2842_v15, %v2841_v46  ;;  %v2122_v15 = vld [vmem:[#allocation2 + $0xeb] sm:$0xff] }
 0x3b1   : > { %4215 = vmatmul.msk.bf16.gmra.mxu0 %vm1133_vm2, %v5541_v40  ;;  %v5549_v63 = vpop.f32.mrf.mxu1 }
 0x3b2   : > { %6466 = vst [vmem:[#allocation45_spill] sm:$0xff] %v5549_v63 }
 0x3b3   : > { %v5545_v3 = vpop.f32.mrf.mxu2 }
 0x3b4   : > { %v1425_v58 = vpop.f32.mrf.mxu3 }
 0x3b5   : > { %v5547_v47 = vadd.f32 %v1581_v24, %v1425_v58  ;;  %v2355_v58 = vld [vmem:[#allocation2 + $0x74] sm:$0xff] }
 0x3b6   : > { %v1586_v9 = vpop.f32.mrf.mxu0  ;;  %v5559_v12 = vpack.c.bf16 %v2356_v7, %v2355_v58  ;;  %v2843_v7 = vld [vmem:[#allocation2 + $0x45] sm:$0xff] }
 0x3b7   : > { %6465 = vst [vmem:[#allocation44_spill] sm:$0xff] %v5547_v47  ;;  %v2358_v47 = vld [vmem:[#allocation2 + $0x8c] sm:$0xff] }
 0x3b8   : > { %4203 = vmatmul.msk.bf16.gmra.mxu2 %vm1133_vm2, %v2143_v51  ;;  %6468 = vst [vmem:[#allocation47_spill] sm:$0xff] %v5559_v12 }
 0x3b9   : > { %4158 = vmatmul.msk.bf16.gmra.mxu3 %vm1133_vm2, %v5232_v19  ;;  %v5563_v19 = vpop.f32.mrf.mxu1 }
 0x3ba   : > { %6469 = vst [vmem:[#allocation48_spill] sm:$0xff] %v5563_v19 }
 0x3bb   : > { %v5554_v57 = vpop.f32.mrf.mxu2 }
 0x3bc   : > { %v1428_v40 = vpop.f32.mrf.mxu3  ;;  %4249 = vmatmul.msk.bf16.gmra.mxu1 %vm1133_vm2, %v2876_v59 }
 0x3bd   : > { %v5556_v53 = vadd.f32 %v1584_v6, %v1428_v40  ;;  %v2121_v40 = vld [vmem:[#allocation2 + $0xe3] sm:$0xff] }
 0x3be   : > { %v1589_v24 = vpop.f32.mrf.mxu0  ;;  %v2144_v6 = vpack.c.bf16 %v2122_v15, %v2121_v40 }
 0x3bf   : > { %6467 = vst [vmem:[#allocation46_spill] sm:$0xff] %v5556_v53  ;;  %v2844_v53 = vld [vmem:[#allocation2 + $0x4d] sm:$0xff] }
 0x3c0   : > { %v2877_v59 = vpack.c.bf16 %v2844_v53, %v2843_v7  ;;  %v2124_v53 = vld [vmem:[#allocation2 + $0xfb] sm:$0xff] }
 0x3c1   : > { %4216 = vmatmul.msk.bf16.gmra.mxu0 %vm1133_vm2, %v5559_v12  ;;  %v5574_v49 = vpop.f32.mrf.mxu1 }
 0x3c2   : > { %6471 = vst [vmem:[#allocation50_spill] sm:$0xff] %v5574_v49 }
 0x3c3   : > { %v5565_v51 = vpop.f32.mrf.mxu2 }
 0x3c4   : > { %v1430_v18 = vpop.f32.mrf.mxu3 }
 0x3c5   : > { %v5567_v46 = vadd.f32 %v1586_v9, %v1430_v18  ;;  %v2357_v18 = vld [vmem:[#allocation2 + $0x84] sm:$0xff] }
 0x3c6   : > { %v1591_v63 = vpop.f32.mrf.mxu0  ;;  %v5579_v15 = vpack.c.bf16 %v2358_v47, %v2357_v18  ;;  %v2845_v47 = vld [vmem:[#allocation2 + $0x55] sm:$0xff] }
 0x3c7   : > { %6470 = vst [vmem:[#allocation49_spill] sm:$0xff] %v5567_v46  ;;  %v2123_v46 = vld [vmem:[#allocation2 + $0xf3] sm:$0xff] }
 0x3c8   : > { %4204 = vmatmul.msk.bf16.gmra.mxu2 %vm1133_vm2, %v2144_v6  ;;  %6473 = vst [vmem:[#allocation52_spill] sm:$0xff] %v5579_v15 }
 0x3c9   : > { %4159 = vmatmul.msk.bf16.gmra.mxu3 %vm1133_vm2, %v5260_v42  ;;  %v5587_v49 = vpop.f32.mrf.mxu1 }
 0x3cb   : > { %v5572_v12 = vpop.f32.mrf.mxu2 }
 0x3cc   : > { %v1433_v58 = vpop.f32.mrf.mxu3  ;;  %4250 = vmatmul.msk.bf16.gmra.mxu1 %vm1133_vm2, %v2877_v59 }
 0x3cd   : > { %v5576_v19 = vadd.f32 %v1589_v24, %v1433_v58  ;;  %v2145_v24 = vpack.c.bf16 %v2124_v53, %v2123_v46  ;;  %v2846_v58 = vld [vmem:[#allocation2 + $0x5d] sm:$0xff] }
 0x3ce   : > { %v1594_v9 = vpop.f32.mrf.mxu0  ;;  %v2878_v59 = vpack.c.bf16 %v2846_v58, %v2845_v47 }
 0x3cf   : > { %6472 = vst [vmem:[#allocation51_spill] sm:$0xff] %v5576_v19 }
 0x3d1   : > { %4217 = vmatmul.msk.bf16.gmra.mxu0 %vm1133_vm2, %v5579_v15  ;;  %v2360_v15 = vld [vmem:[#allocation2 + $0x9c] sm:$0xff]  ;;  %v5599_v46 = vpop.f32.mrf.mxu1 }
 0x3d2   : > { %6477 = vst [vmem:[#allocation56_spill] sm:$0xff] %v5599_v46 }
 0x3d3   : > { %v5583_v40 = vpop.f32.mrf.mxu2 }
 0x3d4   : > { %v1435_v42 = vpop.f32.mrf.mxu3 }
 0x3d5   : > { %v5585_v6 = vadd.f32 %v1591_v63, %v1435_v42  ;;  %v2359_v42 = vld [vmem:[#allocation2 + $0x94] sm:$0xff] }
 0x3d6   : > { %v1596_v7 = vpop.f32.mrf.mxu0 }
 0x3d7   : > { %6474 = vst [vmem:[#allocation53_spill] sm:$0xff] %v5585_v6  ;;  %v5597_v6 = vpack.c.bf16 %v2360_v15, %v2359_v42  ;;  %v2847_v15 = vld [vmem:[#allocation2 + $0x65] sm:$0xff] }
 0x3d8   : > { %4205 = vmatmul.msk.bf16.gmra.mxu2 %vm1133_vm2, %v2145_v24  ;;  %v2126_v24 = vld [vmem:[#allocation2 + $0x10b] sm:$0xff] }
 0x3d9   : > { %4160 = vmatmul.msk.bf16.gmra.mxu3 %vm1133_vm2, %v5279_v50 }
 0x3db   : > { %v5592_v19 = vpop.f32.mrf.mxu2 }
 0x3dc   : > { %v1438_v18 = vpop.f32.mrf.mxu3  ;;  %6475 = vst [vmem:[#allocation54_spill] sm:$0xff] %v5592_v19  ;;  %4251 = vmatmul.msk.bf16.gmra.mxu1 %vm1133_vm2, %v2878_v59  ;;  %v2848_v19 = vld [vmem:[#allocation2 + $0x6d] sm:$0xff]  ;;  %v5610_v59 = vpop.f32.mrf.mxu1 }
 0x3dd   : > { %v5594_v22 = vadd.f32 %v1594_v9, %v1438_v18  ;;  %v2125_v9 = vld [vmem:[#allocation2 + $0x103] sm:$0xff]  ;;  %6480 = vst [vmem:[#allocation59_spill] sm:$0xff] %v5610_v59  ;;  %v2879_v42 = vpack.c.bf16 %v2848_v19, %v2847_v15  ;;  %v2128_v59 = vld [vmem:[#allocation2 + $0x11b] sm:$0xff] }
 0x3de   : > { %v2465_v63 = vpop.f32.mrf.mxu0  ;;  %v2146_v18 = vpack.c.bf16 %v2126_v24, %v2125_v9  ;;  %v2361_v24 = vld [vmem:[#allocation2 + $0xa4] sm:$0xff] }
 0x3df   : > { %6476 = vst [vmem:[#allocation55_spill] sm:$0xff] %v5594_v22 }
 0x3e1   : > { %4218 = vmatmul.msk.bf16.gmra.mxu0 %vm1133_vm2, %v5597_v6 }
 0x3e3   : > { %v5603_v53 = vpop.f32.mrf.mxu2 }
 0x3e4   : > { %v1440_v50 = vpop.f32.mrf.mxu3  ;;  %6478 = vst [vmem:[#allocation57_spill] sm:$0xff] %v5603_v53  ;;  %v2362_v53 = vld [vmem:[#allocation2 + $0xac] sm:$0xff] }
 0x3e5   : > { %v5605_v58 = vadd.f32 %v1596_v7, %v1440_v50 }
 0x3e6   : > { %v2467_v47 = vpop.f32.mrf.mxu0 }
 0x3e7   : > { %6479 = vst [vmem:[#allocation58_spill] sm:$0xff] %v5605_v58  ;;  %v5617_v58 = vpack.c.bf16 %v2362_v53, %v2361_v24  ;;  %v2849_v24 = vld [vmem:[#allocation2 + $0x75] sm:$0xff] }
 0x3e8   : > { %4206 = vmatmul.msk.bf16.gmra.mxu2 %vm1133_vm2, %v2146_v18 }
 0x3e9   : > { %4161 = vmatmul.msk.bf16.gmra.mxu3 %vm1133_vm2, %v5298_v23 }
 0x3eb   : > { %v5612_v22 = vpop.f32.mrf.mxu2 }
 0x3ec   : > { %v1721_v46 = vpop.f32.mrf.mxu3  ;;  %6481 = vst [vmem:[#allocation60_spill] sm:$0xff] %v5612_v22  ;;  %4252 = vmatmul.msk.bf16.gmra.mxu1 %vm1133_vm2, %v2879_v42  ;;  %v2127_v22 = vld [vmem:[#allocation2 + $0x113] sm:$0xff] }
 0x3ed   : > { %v1811_v7 = vadd.f32 %v1721_v46, %v5235_v26  ;;  %v5626_v26 = vpop.f32.mrf.mxu1 }
 0x3ee   : > { %v2470_v50 = vpop.f32.mrf.mxu0  ;;  %6482 = vst [vmem:[#allocation61_spill] sm:$0xff] %v5626_v26  ;;  %v3100_v26 = vld [vmem:[#allocation2 + $0x8e] sm:$0xff] }
 0x3ef   : > { %v2059_v9 = vadd.f32 %v5313_v45, %v1811_v7  ;;  %v4266_v45 = vld [vmem:[%s6402_s3 + $0x20] sm:$0xf]  ;;  %v2147_v7 = vpack.c.bf16 %v2128_v59, %v2127_v22 }
 0x3f0   : > { %v2364_v22 = vld [vmem:[#allocation2 + $0xbc] sm:$0xff] }
 0x3f1   : > { %4219 = vmatmul.msk.bf16.gmra.mxu0 %vm1133_vm2, %v5617_v58  ;;  %v2307_v23 = vadd.f32 %v5460_v44, %v2059_v9  ;;  %v3198_v44 = vsel %vm1340_vm1, %v4266_v45, 0 }
 0x3f2   : > { %3207 = vmatpush.bf16.msra.mxu2 %v3198_v44  ;;  %v2129_v44 = vld [vmem:[#allocation2 + $0x123] sm:$0xff] }
 0x3f3   : > { %v5622_v19 = vadd.f32 %v2465_v63, %v2307_v23  ;;  %v5624_v15 = vpop.f32.mrf.mxu2  ;;  %v2850_v63 = vld [vmem:[#allocation2 + $0x7d] sm:$0xff] }
 0x3f4   : > { %v1723_v18 = vpop.f32.mrf.mxu3  ;;  %v2880_v9 = vpack.c.bf16 %v2850_v63, %v2849_v24 }
 0x3f5   : > { %v1812_v46 = vadd.f32 %v1723_v18, %v5250_v5  ;;  %v5646_v45 = vpop.f32.mrf.mxu1 }
 0x3f6   : > { %v2472_v42 = vpop.f32.mrf.mxu0  ;;  %3739 = vmatpush.bf16.msrb.mxu2 %v4772_v61  ;;  %6483 = vst [vmem:[#allocation62_spill] sm:$0xff] %v5646_v45  ;;  %v5828_v45 = vld [vmem:[#allocation2 + $0x124] sm:$0xff] }
 0x3f7   : > { %v2060_v53 = vadd.f32 %v5324_v1, %v1812_v46 }
 0x3f8   : > { %4207 = vmatmul.msk.bf16.gmra.mxu2 %vm1133_vm2, %v2147_v7 }
 0x3f9   : > { %4162 = vmatmul.msk.bf16.gmra.mxu3 %vm1133_vm2, %v5315_v31  ;;  %v2308_v5 = vadd.f32 %v5472_v30, %v2060_v53  ;;  %v2363_v31 = vld [vmem:[#allocation2 + $0xb4] sm:$0xff] }
 0x3fa   : > { %3740 = vmatpush.bf16.msrb.mxu2 %v4792_v17  ;;  %v5649_v61 = vpack.c.bf16 %v2364_v22, %v2363_v31  ;;  %v2130_v17 = vld [vmem:[#allocation2 + $0x12b] sm:$0x3f] }
 0x3fb   : > { %v5639_v23 = vadd.f32 %v2467_v47, %v2308_v5  ;;  %v5641_v1 = vpop.f32.mrf.mxu2  ;;  %v2148_v24 = vpack.c.bf16 %v2130_v17, %v2129_v44  ;;  %v3088_v44 = vld [vmem:[#allocation2 + $0x2e] sm:$0xff]  ;;  %v3087_v17 = vld [vmem:[#allocation2 + $0x26] sm:$0xff] }
 0x3fc   : > { %v1726_v18 = vpop.f32.mrf.mxu3  ;;  %4253 = vmatmul.msk.bf16.gmra.mxu1 %vm1133_vm2, %v2880_v9  ;;  %v2852_v9 = vld [vmem:[#allocation2 + $0x8d] sm:$0xff] }
 0x3fd   : > { %v1813_v59 = vadd.f32 %v1726_v18, %v5263_v34  ;;  %v5662_v18 = vpop.f32.mrf.mxu1 }
 0x3fe   : > { %v2475_v46 = vpop.f32.mrf.mxu0  ;;  %3741 = vmatpush.bf16.msrb.mxu2 %v4786_v10  ;;  %6485 = vst [vmem:[#allocation64_spill] sm:$0xff] %v5662_v18 }
 0x3ff   : > { %v2061_v30 = vadd.f32 %v5332_v29, %v1813_v59 }
 0x401   : > { %4220 = vmatmul.msk.bf16.gmra.mxu0 %vm1133_vm2, %v5649_v61  ;;  %v2309_v47 = vadd.f32 %v5488_v39, %v2061_v30  ;;  %v2851_v39 = vld [vmem:[#allocation2 + $0x85] sm:$0xff] }
 0x402   : > { %3742 = vmatpush.bf16.msrb.mxu2 %v4780_v2 }
 0x403   : > { %v5655_v34 = vadd.f32 %v2470_v50, %v2309_v47  ;;  %v5657_v7 = vpop.f32.mrf.mxu2 }
 0x404   : > { %v1728_v53 = vpop.f32.mrf.mxu3  ;;  %6484 = vst [vmem:[#allocation63_spill] sm:$0xff] %v5657_v7  ;;  %v6566_v7 = vld [vmem:[#allocation53_spill] sm:$0xff] }
 0x405   : > { %v1814_v63 = vadd.f32 %v1728_v53, %v5273_v4  ;;  %v2881_v4 = vpack.c.bf16 %v2852_v9, %v2851_v39  ;;  %v2368_v39 = vld [vmem:[#allocation2 + $0xdc] sm:$0xff] }
 0x406   : > { %v2477_v5 = vpop.f32.mrf.mxu0  ;;  %3743 = vmatpush.bf16.msrb.mxu2 %v4770_v60 }
 0x407   : > { %v2062_v29 = vadd.f32 %v5343_v16, %v1814_v63  ;;  %v2366_v16 = vld [vmem:[#allocation2 + $0xcc] sm:$0xff] }
 0x408   : > { %4208 = vmatmul.msk.bf16.gmra.mxu2 %vm1133_vm2, %v2148_v24 }
 0x409   : > { %4163 = vmatmul.msk.bf16.gmra.mxu3 %vm1133_vm2, %v5334_v33  ;;  %v2310_v10 = vadd.f32 %v5501_v8, %v2062_v29  ;;  %v2365_v33 = vld [vmem:[#allocation2 + $0xc4] sm:$0xff]  ;;  %v3123_v29 = vpack.c.bf16 %v3088_v44, %v3087_v17  ;;  %v3089_v17 = vld [vmem:[#allocation2 + $0x36] sm:$0xff] }
 0x40a   : > { %3744 = vmatpush.bf16.msrb.mxu2 %v4760_v48  ;;  %v5677_v30 = vpack.c.bf16 %v2366_v16, %v2365_v33 }
 0x40b   : > { %v5669_v50 = vadd.f32 %v2472_v42, %v2310_v10  ;;  %v5671_v22 = vpop.f32.mrf.mxu2  ;;  %v5683_v42 = vpop.f32.mrf.mxu1 }
 0x40c   : > { %v1731_v2 = vpop.f32.mrf.mxu3  ;;  %4254 = vmatmul.msk.bf16.gmra.mxu1 %vm1133_vm2, %v2881_v4  ;;  %6486 = vst [vmem:[#allocation65_spill] sm:$0xff] %v5683_v42 }
 0x40d   : > { %v1815_v59 = vadd.f32 %v1731_v2, %v5282_v55 }
 0x40e   : > { %v2480_v31 = vpop.f32.mrf.mxu0  ;;  %3745 = vmatpush.bf16.msrb.mxu2 %v4750_v38 }
 0x40f   : > { %v2063_v8 = vadd.f32 %v5354_v54, %v1815_v59 }
 0x411   : > { %4221 = vmatmul.msk.bf16.gmra.mxu0 %vm1133_vm2, %v5677_v30  ;;  %v2311_v60 = vadd.f32 %v5512_v14, %v2063_v8  ;;  %v2854_v14 = vld [vmem:[#allocation2 + $0x9d] sm:$0xff] }
 0x412   : > { %3746 = vmatpush.bf16.msrb.mxu2 %v4735_v27  ;;  %v3090_v8 = vld [vmem:[#allocation2 + $0x3e] sm:$0xff] }
 0x413   : > { %v5685_v55 = vadd.f32 %v2475_v46, %v2311_v60  ;;  %v5687_v53 = vpop.f32.mrf.mxu2  ;;  %v2853_v46 = vld [vmem:[#allocation2 + $0x95] sm:$0xff]  ;;  %v5700_v27 = vpop.f32.mrf.mxu1 }
 0x414   : > { %v1733_v47 = vpop.f32.mrf.mxu3  ;;  %6487 = vst [vmem:[#allocation66_spill] sm:$0xff] %v5687_v53  ;;  %v2882_v24 = vpack.c.bf16 %v2854_v14, %v2853_v46  ;;  %v6490_v60 = vld [vmem:[#allocation7_spill] sm:$0xff] }
 0x415   : > { %v1816_v48 = vadd.f32 %v1733_v47, %v5291_v25  ;;  %6488 = vst [vmem:[#allocation67_spill] sm:$0xff] %v5700_v27  ;;  %v2856_v14 = vld [vmem:[#allocation2 + $0xad] sm:$0xff] }
 0x416   : > { %v2482_v54 = vpop.f32.mrf.mxu0  ;;  %v2864_v27 = vld [vmem:[#allocation2 + $0xed] sm:$0xff] }
 0x417   : > { %v2064_v63 = vadd.f32 %v5366_v32, %v1816_v48  ;;  %v6489_v32 = vld [vmem:[#allocation6_spill] sm:$0xff] }
 0x418   : > { %4267 = vmatmul.msk.bf16.vlgmr.msra.gmra.mxu2 %vm1133_vm2, %v3123_v29  ;;  %v3124_v29 = vpack.c.bf16 %v3090_v8, %v3089_v17  ;;  %v6496_v17 = vld [vmem:[#allocation9_spill] sm:$0xff] }
 0x419   : > { %4164 = vmatmul.msk.bf16.gmra.mxu3 %vm1133_vm2, %v5357_v35  ;;  %v2312_v38 = vadd.f32 %v5523_v56, %v2064_v63  ;;  %v2367_v35 = vld [vmem:[#allocation2 + $0xd4] sm:$0xff] }
 0x41a   : > { %v5705_v59 = vpack.c.bf16 %v2368_v39, %v2367_v35  ;;  %v2370_v39 = vld [vmem:[#allocation2 + $0xec] sm:$0xff]  ;;  %v2369_v35 = vld [vmem:[#allocation2 + $0xe4] sm:$0xff] }
 0x41b   : > { %v5696_v9 = vadd.f32 %v2477_v5, %v2312_v38  ;;  %v5698_v10 = vpop.f32.mrf.mxu2  ;;  %v5715_v63 = vpop.f32.mrf.mxu1  ;;  %v6493_v38 = vld [vmem:[#allocation14_spill] sm:$0xff] }
 0x41c   : > { %v1736_v25 = vpop.f32.mrf.mxu3  ;;  %4255 = vmatmul.msk.bf16.gmra.mxu1 %vm1133_vm2, %v2882_v24  ;;  %6492 = vst [vmem:[#allocation7_spill] sm:$0xff] %v5715_v63 }
 0x41d   : > { %v1817_v4 = vadd.f32 %v1736_v25, %v6489_v32  ;;  %v6494_v32 = vld [vmem:[#allocation8_spill] sm:$0xff] }
 0x41e   : > { %v2485_v2 = vpop.f32.mrf.mxu0 }
 0x41f   : > { %v2065_v16 = vadd.f32 %v5374_v11, %v1817_v4 }
 0x421   : > { %4222 = vmatmul.msk.bf16.gmra.mxu0 %vm1133_vm2, %v5705_v59  ;;  %v2313_v56 = vadd.f32 %v5534_v62, %v2065_v16 }
 0x423   : > { %v5710_v5 = vadd.f32 %v2480_v31, %v2313_v56  ;;  %v5713_v44 = vpop.f32.mrf.mxu2  ;;  %v2855_v31 = vld [vmem:[#allocation2 + $0xa5] sm:$0xff]  ;;  %v5731_v8 = vpop.f32.mrf.mxu1 }
 0x424   : > { %v1738_v33 = vpop.f32.mrf.mxu3  ;;  %6491 = vst [vmem:[#allocation6_spill] sm:$0xff] %v5713_v44  ;;  %v2883_v46 = vpack.c.bf16 %v2856_v14, %v2855_v31  ;;  %v3091_v14 = vld [vmem:[#allocation2 + $0x46] sm:$0xff]  ;;  %v2858_v31 = vld [vmem:[#allocation2 + $0xbd] sm:$0xff] }
 0x425   : > { %v1818_v47 = vadd.f32 %v1738_v33, %v6490_v60  ;;  %v5729_v33 = vpack.c.bf16 %v2370_v39, %v2369_v35  ;;  %6495 = vst [vmem:[#allocation14_spill] sm:$0xff] %v5731_v8 }
 0x426   : > { %v2487_v48 = vpop.f32.mrf.mxu0 }
 0x427   : > { %v2066_v11 = vadd.f32 %v5389_v13, %v1818_v47  ;;  %v3092_v47 = vld [vmem:[#allocation2 + $0x4e] sm:$0xff] }
 0x428   : > { %4268 = vmatmul.msk.bf16.gmra.mxu2 %vm1133_vm2, %v3124_v29 }
 0x429   : > { %4165 = vmatmul.msk.bf16.gmra.mxu3 %vm1133_vm2, %v6493_v38  ;;  %v2314_v62 = vadd.f32 %v5545_v3, %v2066_v11 }
 0x42b   : > { %v5722_v24 = vadd.f32 %v2482_v54, %v2314_v62  ;;  %v5727_v56 = vpop.f32.mrf.mxu2  ;;  %v3125_v62 = vpack.c.bf16 %v3092_v47, %v3091_v14  ;;  %v5746_v39 = vpop.f32.mrf.mxu1 }
 0x42c   : > { %v1741_v25 = vpop.f32.mrf.mxu3  ;;  %4256 = vmatmul.msk.bf16.gmra.mxu1 %vm1133_vm2, %v2883_v46  ;;  %6500 = vst [vmem:[#allocation9_spill] sm:$0xff] %v5746_v39 }
 0x42d   : > { %v1819_v4 = vadd.f32 %v1741_v25, %v6494_v32  ;;  %v6499_v25 = vld [vmem:[#allocation17_spill] sm:$0xff] }
 0x42e   : > { %v2490_v13 = vpop.f32.mrf.mxu0 }
 0x42f   : > { %v2067_v16 = vadd.f32 %v5397_v37, %v1819_v4  ;;  %v6497_v37 = vld [vmem:[#allocation19_spill] sm:$0xff] }
 0x431   : > { %4223 = vmatmul.msk.bf16.gmra.mxu0 %vm1133_vm2, %v5729_v33  ;;  %v2315_v3 = vadd.f32 %v5554_v57, %v2067_v16  ;;  %v2372_v16 = vld [vmem:[#allocation2 + $0xfc] sm:$0xff] }
 0x433   : > { %v5736_v54 = vadd.f32 %v2485_v2, %v2315_v3  ;;  %v5740_v46 = vpop.f32.mrf.mxu2  ;;  %v2857_v2 = vld [vmem:[#allocation2 + $0xb5] sm:$0xff]  ;;  %v6501_v3 = vld [vmem:[#allocation10_spill] sm:$0xff] }
 0x434   : > { %v1743_v60 = vpop.f32.mrf.mxu3  ;;  %6498 = vst [vmem:[#allocation8_spill] sm:$0xff] %v5740_v46  ;;  %v2884_v32 = vpack.c.bf16 %v2858_v31, %v2857_v2  ;;  %v5764_v31 = vpop.f32.mrf.mxu1 }
 0x435   : > { %v1820_v11 = vadd.f32 %v1743_v60, %v6496_v17  ;;  %v2371_v17 = vld [vmem:[#allocation2 + $0xf4] sm:$0xff]  ;;  %6502 = vst [vmem:[#allocation19_spill] sm:$0xff] %v5764_v31  ;;  %v2376_v31 = vld [vmem:[#allocation2 + $0x11c] sm:$0xff] }
 0x436   : > { %v2492_v29 = vpop.f32.mrf.mxu0  ;;  %v5755_v14 = vpack.c.bf16 %v2372_v16, %v2371_v17  ;;  %v2860_v16 = vld [vmem:[#allocation2 + $0xcd] sm:$0xff] }
 0x437   : > { %v2068_v38 = vadd.f32 %v6497_v37, %v1820_v11 }
 0x438   : > { %4269 = vmatmul.msk.bf16.gmra.mxu2 %vm1133_vm2, %v3125_v62  ;;  %v3094_v62 = vld [vmem:[#allocation2 + $0x5e] sm:$0xff] }
 0x439   : > { %4166 = vmatmul.msk.bf16.gmra.mxu3 %vm1133_vm2, %v6499_v25  ;;  %v2316_v57 = vadd.f32 %v5565_v51, %v2068_v38  ;;  %v6503_v25 = vld [vmem:[#allocation11_spill] sm:$0xff] }
 0x43b   : > { %v5748_v4 = vadd.f32 %v2487_v48, %v2316_v57  ;;  %v5760_v48 = vpop.f32.mrf.mxu2 }
 0x43c   : > { %v1746_v35 = vpop.f32.mrf.mxu3  ;;  %4257 = vmatmul.msk.bf16.gmra.mxu1 %vm1133_vm2, %v2884_v32 }
 0x43d   : > { %v1821_v60 = vadd.f32 %v1746_v35, %v6501_v3  ;;  %v2859_v3 = vld [vmem:[#allocation2 + $0xc5] sm:$0xff] }
 0x43e   : > { %v5752_v47 = vpop.f32.mrf.mxu0  ;;  %v2885_v17 = vpack.c.bf16 %v2860_v16, %v2859_v3 }
 0x43f   : > { %v2069_v11 = vadd.f32 %v5416_v43, %v1821_v60  ;;  %v3093_v43 = vld [vmem:[#allocation2 + $0x56] sm:$0xff] }
 0x440   : > { %v3126_v35 = vpack.c.bf16 %v3094_v62, %v3093_v43 }
 0x441   : > { %4224 = vmatmul.msk.bf16.gmra.mxu0 %vm1133_vm2, %v5755_v14  ;;  %v2317_v51 = vadd.f32 %v5572_v12, %v2069_v11  ;;  %v4228_v12 = vld [vmem:[%s6402_s3 + $0x18] sm:$0xf] }
 0x442   : > { %v2702_v60 = vsel %vm1340_vm1, %v4228_v12, 0  ;;  %v3095_v12 = vld [vmem:[#allocation2 + $0x66] sm:$0xff] }
 0x443   : > { %v5762_v37 = vadd.f32 %v2490_v13, %v2317_v51  ;;  %2711 = vmatpush.bf16.msrb.mxu3 %v2702_v60  ;;  %v2374_v51 = vld [vmem:[#allocation2 + $0x10c] sm:$0xff] }
 0x444   : > { %v1748_v38 = vpop.f32.mrf.mxu3 }
 0x445   : > { %v1822_v57 = vadd.f32 %v1748_v38, %v6503_v25  ;;  %v5780_v38 = vpop.f32.mrf.mxu2 }
 0x446   : > { %v5767_v2 = vpop.f32.mrf.mxu0  ;;  %6504 = vst [vmem:[#allocation17_spill] sm:$0xff] %v5780_v38  ;;  %v6516_v38 = vld [vmem:[#allocation20_spill] sm:$0xff] }
 0x447   : > { %v2070_v32 = vadd.f32 %v5427_v52, %v1822_v57  ;;  %v2373_v57 = vld [vmem:[#allocation2 + $0x104] sm:$0xff] }
 0x448   : > { %4270 = vmatmul.msk.bf16.gmra.mxu2 %vm1133_vm2, %v3126_v35  ;;  %v5790_v43 = vpack.c.bf16 %v2374_v51, %v2373_v57  ;;  %v6506_v35 = vld [vmem:[#allocation13_spill] sm:$0xff]  ;;  %v2861_v51 = vld [vmem:[#allocation2 + $0xd5] sm:$0xff] }
 0x449   : > { %4167 = vmatmul.msk.bf16.gmra.mxu3 %vm1133_vm2, %v5418_v28  ;;  %v2318_v13 = vadd.f32 %v5583_v40, %v2070_v32  ;;  %v6505_v28 = vld [vmem:[#allocation12_spill] sm:$0xff]  ;;  %v5788_v40 = vpop.f32.mrf.mxu1  ;;  %v3096_v32 = vld [vmem:[#allocation2 + $0x6e] sm:$0xff] }
 0x44a   : > { %v3127_v3 = vpack.c.bf16 %v3096_v32, %v3095_v12  ;;  %v2375_v32 = vld [vmem:[#allocation2 + $0x114] sm:$0xff] }
 0x44b   : > { %v5778_v11 = vadd.f32 %v2492_v29, %v2318_v13  ;;  %v5810_v12 = vpack.c.bf16 %v2376_v31, %v2375_v32  ;;  %v2863_v31 = vld [vmem:[#allocation2 + $0xe5] sm:$0xff] }
 0x44c   : > { %v1751_v52 = vpop.f32.mrf.mxu3  ;;  %4258 = vmatmul.msk.bf16.gmra.mxu1 %vm1133_vm2, %v2885_v17  ;;  %v2862_v17 = vld [vmem:[#allocation2 + $0xdd] sm:$0xff]  ;;  %v2887_v32 = vpack.c.bf16 %v2864_v27, %v2863_v31 }
 0x44d   : > { %v5783_v62 = vadd.f32 %v1751_v52, %v6505_v28  ;;  %v5797_v13 = vpop.f32.mrf.mxu2  ;;  %v2886_v28 = vpack.c.bf16 %v2862_v17, %v2861_v51  ;;  %v3098_v17 = vld [vmem:[#allocation2 + $0x7e] sm:$0xff] }
 0x44e   : > { %v5786_v25 = vpop.f32.mrf.mxu0  ;;  %6507 = vst [vmem:[#allocation10_spill] sm:$0xff] %v5797_v13  ;;  %v6510_v51 = vld [vmem:[#allocation16_spill] sm:$0xff] }
 0x451   : > { %4225 = vmatmul.msk.bf16.gmra.mxu0 %vm1133_vm2, %v5790_v43  ;;  %v5801_v52 = vpop.f32.mrf.mxu1 }
 0x454   : > { %v1753_v29 = vpop.f32.mrf.mxu3 }
 0x455   : > { %v5795_v16 = vadd.f32 %v1753_v29, %v6506_v35  ;;  %v6508_v29 = vld [vmem:[#allocation15_spill] sm:$0xff]  ;;  %v5812_v39 = vpop.f32.mrf.mxu2 }
 0x456   : > { %v5799_v60 = vpop.f32.mrf.mxu0  ;;  %6509 = vst [vmem:[#allocation11_spill] sm:$0xff] %v5812_v39  ;;  %v2378_v39 = vld [vmem:[#allocation2 + $0x12c] sm:$0x3f] }
 0x458   : > { %4271 = vmatmul.msk.bf16.gmra.mxu2 %vm1133_vm2, %v3127_v3 }
 0x459   : > { %4168 = vmatmul.msk.bf16.gmra.mxu3 %vm1133_vm2, %v5437_v20  ;;  %v5816_v8 = vpop.f32.mrf.mxu1 }
 0x45c   : > { %v1756_v57 = vpop.f32.mrf.mxu3  ;;  %4259 = vmatmul.msk.bf16.gmra.mxu1 %vm1133_vm2, %v2886_v28 }
 0x45d   : > { %v5807_v35 = vadd.f32 %v1756_v57, %v6508_v29  ;;  %v3097_v57 = vld [vmem:[#allocation2 + $0x76] sm:$0xff]  ;;  %v5824_v28 = vpop.f32.mrf.mxu2 }
 0x45e   : > { %v2505_v20 = vpop.f32.mrf.mxu0  ;;  %v3128_v29 = vpack.c.bf16 %v3098_v17, %v3097_v57  ;;  %6511 = vst [vmem:[#allocation12_spill] sm:$0xff] %v5824_v28  ;;  %v2396_v57 = vpack.c.bf16 %v2378_v39, %v5828_v45  ;;  %v1634_v28 = vld [vmem:[#allocation2 + $0x11a] sm:$0x3f] }
 0x461   : > { %4226 = vmatmul.msk.bf16.gmra.mxu0 %vm1133_vm2, %v5810_v12 }
 0x464   : > { %v1758_v3 = vpop.f32.mrf.mxu3 }
 0x465   : > { %v5819_v63 = vadd.f32 %v1758_v3, %v6510_v51  ;;  %v5830_v3 = vpop.f32.mrf.mxu1  ;;  %v6513_v51 = vld [vmem:[#allocation18_spill] sm:$0xff]  ;;  %v5840_v13 = vpop.f32.mrf.mxu2 }
 0x466   : > { %v5826_v42 = vpop.f32.mrf.mxu0  ;;  %6515 = vst [vmem:[#allocation16_spill] sm:$0xff] %v5840_v13 }
 0x467   : > { %6512 = vst [vmem:[#allocation13_spill] sm:$0xff] %v5826_v42  ;;  %v6561_v42 = vld [vmem:[#allocation49_spill] sm:$0xff] }
 0x468   : > { %4272 = vmatmul.msk.bf16.gmra.mxu2 %vm1133_vm2, %v3128_v29 }
 0x469   : > { %4169 = vmatmul.msk.bf16.gmra.mxu3 %vm1133_vm2, %v5458_v36 }
 0x46c   : > { %v1761_v18 = vpop.f32.mrf.mxu3  ;;  %4260 = vmatmul.msk.bf16.gmra.mxu1 %vm1133_vm2, %v2887_v32  ;;  %v3099_v32 = vld [vmem:[#allocation2 + $0x86] sm:$0xff] }
 0x46d   : > { %v1827_v17 = vadd.f32 %v1761_v18, %v6513_v51  ;;  %v5845_v51 = vpop.f32.mrf.mxu1  ;;  %v3129_v39 = vpack.c.bf16 %v3100_v26, %v3099_v32 }
 0x46e   : > { %v2510_v18 = vpop.f32.mrf.mxu0 }
 0x46f   : > { %v2075_v36 = vadd.f32 %v5479_v0, %v1827_v17  ;;  %v1652_v0 = vpack.c.bf16 %v1634_v28, %v5481_v41  ;;  %v2866_v17 = vld [vmem:[#allocation2 + $0xfd] sm:$0xff] }
 0x471   : > { %4227 = vmatmul.msk.bf16.gmra.mxu0 %vm1133_vm2, %v2396_v57  ;;  %v2323_v27 = vadd.f32 %v5641_v1, %v2075_v36  ;;  %v2865_v1 = vld [vmem:[#allocation2 + $0xf5] sm:$0xff]  ;;  %v6518_v57 = vld [vmem:[#allocation21_spill] sm:$0xff] }
 0x473   : > { %v5838_v29 = vadd.f32 %v2505_v20, %v2323_v27  ;;  %v2888_v20 = vpack.c.bf16 %v2866_v17, %v2865_v1  ;;  %v3101_v1 = vld [vmem:[#allocation2 + $0x96] sm:$0xff] }
 0x474   : > { %v1763_v31 = vpop.f32.mrf.mxu3 }
 0x475   : > { %6514 = vst [vmem:[#allocation15_spill] sm:$0xff] %v5838_v29  ;;  %v5843_v46 = vadd.f32 %v1763_v31, %v6516_v38  ;;  %v5852_v38 = vpop.f32.mrf.mxu2  ;;  %v5857_v41 = vpop.f32.mrf.mxu1 }
 0x476   : > { %6519 = vst [vmem:[#allocation20_spill] sm:$0xff] %v5852_v38  ;;  %v5855_v13 = vpop.f32.mrf.mxu0  ;;  %v6525_v38 = vld [vmem:[#allocation25_spill] sm:$0xff] }
 0x477   : > { %6517 = vst [vmem:[#allocation18_spill] sm:$0xff] %v5843_v46 }
 0x478   : > { %4273 = vmatmul.msk.bf16.gmra.mxu2 %vm1133_vm2, %v3129_v39  ;;  %6520 = vst [vmem:[#allocation21_spill] sm:$0xff] %v5855_v13  ;;  %v6522_v39 = vld [vmem:[#allocation22_spill] sm:$0xff] }
 0x479   : > { %4170 = vmatmul.msk.bf16.gmra.mxu3 %vm1133_vm2, %v1652_v0  ;;  %v3102_v0 = vld [vmem:[#allocation2 + $0x9e] sm:$0xff]  ;;  %v3104_v13 = vld [vmem:[#allocation2 + $0xae] sm:$0xff] }
 0x47c   : > { %v1766_v36 = vpop.f32.mrf.mxu3  ;;  %4261 = vmatmul.msk.bf16.gmra.mxu1 %vm1133_vm2, %v2888_v20  ;;  %v2868_v20 = vld [vmem:[#allocation2 + $0x10d] sm:$0xff] }
 0x47d   : > { %v1829_v27 = vadd.f32 %v1766_v36, %v6518_v57  ;;  %v3130_v36 = vpack.c.bf16 %v3102_v0, %v3101_v1  ;;  %v5865_v57 = vpop.f32.mrf.mxu2 }
 0x47e   : > { %6524 = vst [vmem:[#allocation69_spill] sm:$0xff] %v5865_v57 }
 0x47f   : > { %v2077_v31 = vadd.f32 %v5510_v21, %v1829_v27  ;;  %v2515_v21 = vpop.f32.mrf.mxu0  ;;  %v2867_v27 = vld [vmem:[#allocation2 + $0x105] sm:$0xff] }
 0x481   : > { %v2325_v26 = vadd.f32 %v5671_v22, %v2077_v31  ;;  %v5870_v22 = vpop.f32.mrf.mxu1 }
 0x483   : > { %v5860_v28 = vadd.f32 %v2510_v18, %v2325_v26  ;;  %v2889_v18 = vpack.c.bf16 %v2868_v20, %v2867_v27  ;;  %v6526_v26 = vld [vmem:[#allocation24_spill] sm:$0xff]  ;;  %v6531_v20 = vld [vmem:[#allocation27_spill] sm:$0xff] }
 0x484   : > { %v1768_v32 = vpop.f32.mrf.mxu3 }
 0x485   : > { %6521 = vst [vmem:[#allocation68_spill] sm:$0xff] %v5860_v28  ;;  %v5863_v17 = vadd.f32 %v1768_v32, %v6522_v39  ;;  %v6527_v32 = vld [vmem:[#allocation42_spill] sm:$0xff]  ;;  %v5876_v1 = vpop.f32.mrf.mxu2 }
 0x486   : > { %6528 = vst [vmem:[#allocation25_spill] sm:$0xff] %v5876_v1  ;;  %v6533_v28 = vld [vmem:[#allocation30_spill] sm:$0xff] }
 0x487   : > { %6523 = vst [vmem:[#allocation22_spill] sm:$0xff] %v5863_v17 }
 0x488   : > { %4274 = vmatmul.msk.bf16.gmra.mxu2 %vm1133_vm2, %v3130_v36 }
 0x489   : > { %4229 = vmatmul.msk.bf16.vlgmr.msrb.gmra.mxu3 %vm1133_vm2, %v6525_v38  ;;  %v5880_v38 = vpop.f32.mrf.mxu0  ;;  %v5882_v53 = vpop.f32.mrf.mxu1 }
 0x48a   : > { %6530 = vst [vmem:[#allocation42_spill] sm:$0xff] %v5880_v38 }
 0x48c   : > { %v1771_v31 = vpop.f32.mrf.mxu3  ;;  %4262 = vmatmul.msk.bf16.gmra.mxu1 %vm1133_vm2, %v2889_v18  ;;  %v2870_v18 = vld [vmem:[#allocation2 + $0x11d] sm:$0xff] }
 0x48d   : > { %v1831_v44 = vadd.f32 %v1771_v31, %v6526_v26  ;;  %v3103_v31 = vld [vmem:[#allocation2 + $0xa6] sm:$0xff] }
 0x48e   : > { %v3131_v26 = vpack.c.bf16 %v3104_v13, %v3103_v31 }
 0x48f   : > { %v2079_v0 = vadd.f32 %v6527_v32, %v1831_v44  ;;  %v5890_v32 = vpop.f32.mrf.mxu2 }
 0x490   : > { %6534 = vst [vmem:[#allocation30_spill] sm:$0xff] %v5890_v32 }
 0x491   : > { %v2327_v39 = vadd.f32 %v5698_v10, %v2079_v0  ;;  %v2869_v10 = vld [vmem:[#allocation2 + $0x115] sm:$0xff]  ;;  %v6535_v0 = vld [vmem:[#allocation29_spill] sm:$0xff]  ;;  %v2520_v1 = vpop.f32.mrf.mxu0 }
 0x492   : > { %v2890_v44 = vpack.c.bf16 %v2870_v18, %v2869_v10  ;;  %v3105_v10 = vld [vmem:[#allocation2 + $0xb6] sm:$0xff] }
 0x493   : > { %v5878_v57 = vadd.f32 %v2515_v21, %v2327_v39 }
 0x494   : > { %v1773_v36 = vpop.f32.mrf.mxu3 }
 0x495   : > { %6529 = vst [vmem:[#allocation24_spill] sm:$0xff] %v5878_v57  ;;  %v5885_v27 = vadd.f32 %v1773_v36, %v6531_v20  ;;  %v5894_v36 = vpop.f32.mrf.mxu1  ;;  %v6536_v20 = vld [vmem:[#allocation48_spill] sm:$0xff] }
 0x496   : > { %v6538_v57 = vld [vmem:[#allocation32_spill] sm:$0xff] }
 0x497   : > { %6532 = vst [vmem:[#allocation27_spill] sm:$0xff] %v5885_v27  ;;  %v5903_v32 = vpop.f32.mrf.mxu2  ;;  %v2872_v27 = vld [vmem:[#allocation2 + $0x12d] sm:$0xff] }
 0x498   : > { %4275 = vmatmul.msk.bf16.gmra.mxu2 %vm1133_vm2, %v3131_v26  ;;  %v3106_v26 = vld [vmem:[#allocation2 + $0xbe] sm:$0xff]  ;;  %6540 = vst [vmem:[#allocation32_spill] sm:$0xff] %v5903_v32 }
 0x499   : > { %4230 = vmatmul.msk.bf16.gmra.mxu3 %vm1133_vm2, %v6533_v28 }
 0x49c   : > { %v1776_v21 = vpop.f32.mrf.mxu3  ;;  %4263 = vmatmul.msk.bf16.gmra.mxu1 %vm1133_vm2, %v2890_v44  ;;  %v2871_v44 = vld [vmem:[#allocation2 + $0x125] sm:$0xff] }
 0x49d   : > { %v1833_v39 = vadd.f32 %v1776_v21, %v6535_v0  ;;  %v3132_v21 = vpack.c.bf16 %v3106_v26, %v3105_v10  ;;  %v5905_v0 = vpop.f32.mrf.mxu0  ;;  %v5907_v17 = vpop.f32.mrf.mxu1 }
 0x49e   : > { %6541 = vst [vmem:[#allocation70_spill] sm:$0xff] %v5905_v0  ;;  %v3108_v0 = vld [vmem:[#allocation2 + $0xce] sm:$0xff] }
 0x49f   : > { %v2081_v13 = vadd.f32 %v6536_v20, %v1833_v39  ;;  %v6542_v39 = vld [vmem:[#allocation34_spill] sm:$0xff]  ;;  %v6543_v20 = vld [vmem:[#allocation33_spill] sm:$0xff] }
 0x4a1   : > { %v2329_v31 = vadd.f32 %v5727_v56, %v2081_v13  ;;  %v2891_v56 = vpack.c.bf16 %v2872_v27, %v2871_v44  ;;  %v3107_v44 = vld [vmem:[#allocation2 + $0xc6] sm:$0xff] }
 0x4a3   : > { %v5898_v38 = vadd.f32 %v2520_v1, %v2329_v31  ;;  %v5915_v31 = vpop.f32.mrf.mxu2 }
 0x4a4   : > { %v1778_v28 = vpop.f32.mrf.mxu3  ;;  %6544 = vst [vmem:[#allocation34_spill] sm:$0xff] %v5915_v31 }
 0x4a5   : > { %6537 = vst [vmem:[#allocation29_spill] sm:$0xff] %v5898_v38  ;;  %v5901_v18 = vadd.f32 %v1778_v28, %v6538_v57  ;;  %v2525_v26 = vpop.f32.mrf.mxu0  ;;  %v5918_v10 = vpop.f32.mrf.mxu1  ;;  %v6548_v38 = vld [vmem:[#allocation38_spill] sm:$0xff] }
 0x4a7   : > { %6539 = vst [vmem:[#allocation48_spill] sm:$0xff] %v5901_v18 }
 0x4a8   : > { %4276 = vmatmul.msk.bf16.gmra.mxu2 %vm1133_vm2, %v3132_v21  ;;  %v6546_v21 = vld [vmem:[#allocation36_spill] sm:$0xff] }
 0x4a9   : > { %4231 = vmatmul.msk.bf16.gmra.mxu3 %vm1133_vm2, %v6542_v39 }
 0x4ac   : > { %v1781_v1 = vpop.f32.mrf.mxu3  ;;  %4264 = vmatmul.msk.bf16.gmra.mxu1 %vm1133_vm2, %v2891_v56  ;;  %v2874_v56 = vld [vmem:[#allocation2 + $0x13d] sm:$0x3f] }
 0x4ad   : > { %v1835_v57 = vadd.f32 %v1781_v1, %v6543_v20  ;;  %v3133_v1 = vpack.c.bf16 %v3108_v0, %v3107_v44  ;;  %v2873_v20 = vld [vmem:[#allocation2 + $0x135] sm:$0xff]  ;;  %v3110_v0 = vld [vmem:[#allocation2 + $0xde] sm:$0xff] }
 0x4ae   : > { %v6551_v44 = vld [vmem:[#allocation40_spill] sm:$0xff] }
 0x4af   : > { %v2083_v13 = vadd.f32 %v5587_v49, %v1835_v57  ;;  %v5928_v49 = vpop.f32.mrf.mxu2 }
 0x4b1   : > { %v2331_v28 = vadd.f32 %v5760_v48, %v2083_v13  ;;  %v2892_v48 = vpack.c.bf16 %v2874_v56, %v2873_v20  ;;  %v5930_v13 = vpop.f32.mrf.mxu1  ;;  %v6554_v56 = vld [vmem:[#allocation41_spill] sm:$0xff] }
 0x4b3   : > { %v5920_v32 = vadd.f32 %v2525_v26, %v2331_v28  ;;  %v6549_v28 = vld [vmem:[#allocation37_spill] sm:$0xff] }
 0x4b4   : > { %v1783_v39 = vpop.f32.mrf.mxu3 }
 0x4b5   : > { %6545 = vst [vmem:[#allocation33_spill] sm:$0xff] %v5920_v32  ;;  %v5923_v27 = vadd.f32 %v1783_v39, %v6546_v21 }
 0x4b7   : > { %6547 = vst [vmem:[#allocation36_spill] sm:$0xff] %v5923_v27  ;;  %v3211_v21 = vpop.f32.mrf.mxu2 }
 0x4b8   : > { %4277 = vmatmul.msk.bf16.gmra.mxu2 %vm1133_vm2, %v3133_v1  ;;  %v6553_v1 = vld [vmem:[#allocation43_spill] sm:$0xff] }
 0x4b9   : > { %4232 = vmatmul.msk.bf16.gmra.mxu3 %vm1133_vm2, %v6548_v38  ;;  %v3109_v38 = vld [vmem:[#allocation2 + $0xd6] sm:$0xff] }
 0x4ba   : > { %v3134_v32 = vpack.c.bf16 %v3110_v0, %v3109_v38  ;;  %v6558_v0 = vld [vmem:[#allocation47_spill] sm:$0xff]  ;;  %v6559_v38 = vld [vmem:[#allocation46_spill] sm:$0xff] }
 0x4bc   : > { %v1786_v57 = vpop.f32.mrf.mxu3  ;;  %4265 = vmatmul.msk.bf16.gmra.mxu1 %vm1133_vm2, %v2892_v48 }
 0x4bd   : > { %v5933_v26 = vadd.f32 %v1786_v57, %v6549_v28  ;;  %v3112_v28 = vld [vmem:[#allocation2 + $0xee] sm:$0xff] }
 0x4bf   : > { %6550 = vst [vmem:[#allocation38_spill] sm:$0xff] %v5933_v26  ;;  %v5945_v57 = vpop.f32.mrf.mxu2  ;;  %v6556_v26 = vld [vmem:[#allocation44_spill] sm:$0xff] }
 0x4c4   : > { %v1788_v39 = vpop.f32.mrf.mxu3 }
 0x4c5   : > { %v5937_v31 = vadd.f32 %v1788_v39, %v6551_v44  ;;  %v3111_v39 = vld [vmem:[#allocation2 + $0xe6] sm:$0xff] }
 0x4c6   : > { %v3135_v44 = vpack.c.bf16 %v3112_v28, %v3111_v39  ;;  %v6563_v39 = vld [vmem:[#allocation52_spill] sm:$0xff] }
 0x4c7   : > { %6552 = vst [vmem:[#allocation37_spill] sm:$0xff] %v5937_v31  ;;  %v5950_v31 = vpop.f32.mrf.mxu2 }
 0x4c8   : > { %4278 = vmatmul.msk.bf16.gmra.mxu2 %vm1133_vm2, %v3134_v32 }
 0x4c9   : > { %4233 = vmatmul.msk.bf16.gmra.mxu3 %vm1133_vm2, %v6553_v1 }
 0x4cc   : > { %v1791_v20 = vpop.f32.mrf.mxu3 }
 0x4cd   : > { %v5943_v27 = vadd.f32 %v1791_v20, %v6554_v56 }
 0x4cf   : > { %6555 = vst [vmem:[#allocation40_spill] sm:$0xff] %v5943_v27  ;;  %v5958_v20 = vpop.f32.mrf.mxu2  ;;  %v3114_v27 = vld [vmem:[#allocation2 + $0xfe] sm:$0xff] }
 0x4d4   : > { %v1793_v48 = vpop.f32.mrf.mxu3 }
 0x4d5   : > { %v5948_v18 = vadd.f32 %v1793_v48, %v6556_v26  ;;  %v3113_v48 = vld [vmem:[#allocation2 + $0xf6] sm:$0xff] }
 0x4d6   : > { %v3136_v28 = vpack.c.bf16 %v3114_v27, %v3113_v48 }
 0x4d7   : > { %6557 = vst [vmem:[#allocation43_spill] sm:$0xff] %v5948_v18  ;;  %v6564_v18 = vld [vmem:[#allocation51_spill] sm:$0xff] }
 0x4d8   : > { %4279 = vmatmul.msk.bf16.gmra.mxu2 %vm1133_vm2, %v3135_v44  ;;  %v5966_v44 = vpop.f32.mrf.mxu2 }
 0x4d9   : > { %4234 = vmatmul.msk.bf16.gmra.mxu3 %vm1133_vm2, %v6558_v0 }
 0x4dc   : > { %v1796_v32 = vpop.f32.mrf.mxu3 }
 0x4dd   : > { %v5956_v1 = vadd.f32 %v1796_v32, %v6559_v38 }
 0x4df   : > { %6560 = vst [vmem:[#allocation41_spill] sm:$0xff] %v5956_v1  ;;  %v3116_v1 = vld [vmem:[#allocation2 + $0x10e] sm:$0xff] }
 0x4e4   : > { %v1798_v56 = vpop.f32.mrf.mxu3 }
 0x4e5   : > { %v5961_v26 = vadd.f32 %v1798_v56, %v6561_v42  ;;  %v3115_v42 = vld [vmem:[#allocation2 + $0x106] sm:$0xff]  ;;  %v5974_v56 = vpop.f32.mrf.mxu2 }
 0x4e6   : > { %v3137_v27 = vpack.c.bf16 %v3116_v1, %v3115_v42 }
 0x4e7   : > { %6562 = vst [vmem:[#allocation44_spill] sm:$0xff] %v5961_v26  ;;  %v6570_v26 = vld [vmem:[#allocation58_spill] sm:$0xff] }
 0x4e8   : > { %4280 = vmatmul.msk.bf16.gmra.mxu2 %vm1133_vm2, %v3136_v28  ;;  %v6568_v28 = vld [vmem:[#allocation55_spill] sm:$0xff] }
 0x4e9   : > { %4235 = vmatmul.msk.bf16.gmra.mxu3 %vm1133_vm2, %v6563_v39 }
 0x4ec   : > { %v1801_v0 = vpop.f32.mrf.mxu3 }
 0x4ed   : > { %v5969_v32 = vadd.f32 %v1801_v0, %v6564_v18  ;;  %v5982_v18 = vpop.f32.mrf.mxu2 }
 0x4ef   : > { %6565 = vst [vmem:[#allocation47_spill] sm:$0xff] %v5969_v32  ;;  %v3118_v32 = vld [vmem:[#allocation2 + $0x11e] sm:$0xff] }
 0x4f4   : > { %v1803_v38 = vpop.f32.mrf.mxu3 }
 0x4f5   : > { %v5972_v29 = vadd.f32 %v1803_v38, %v6566_v7  ;;  %v3117_v38 = vld [vmem:[#allocation2 + $0x116] sm:$0xff] }
 0x4f7   : > { %6567 = vst [vmem:[#allocation46_spill] sm:$0xff] %v5972_v29  ;;  %v3138_v29 = vpack.c.bf16 %v3118_v32, %v3117_v38 }
 0x4f8   : > { %4281 = vmatmul.msk.bf16.gmra.mxu2 %vm1133_vm2, %v3137_v27 }
 0x4f9   : > { %4236 = vmatmul.msk.bf16.gmra.mxu3 %vm1133_vm2, %v5597_v6  ;;  %v5990_v6 = vpop.f32.mrf.mxu2 }
 0x4fc   : > { %v1806_v48 = vpop.f32.mrf.mxu3 }
 0x4fd   : > { %v5980_v39 = vadd.f32 %v1806_v48, %v6568_v28  ;;  %v3119_v28 = vld [vmem:[#allocation2 + $0x126] sm:$0xff] }
 0x4ff   : > { %6569 = vst [vmem:[#allocation49_spill] sm:$0xff] %v5980_v39  ;;  %v3120_v39 = vld [vmem:[#allocation2 + $0x12e] sm:$0xff] }
 0x501   : > { %v5994_v46 = vpop.f32.mrf.mxu2 }
 0x504   : > { %v1808_v0 = vpop.f32.mrf.mxu3 }
 0x505   : > { %v5985_v7 = vadd.f32 %v1808_v0, %v6570_v26  ;;  %v3139_v0 = vpack.c.bf16 %v3120_v39, %v3119_v28  ;;  %v3121_v39 = vld [vmem:[#allocation2 + $0x136] sm:$0xff] }
 0x508   : > { %4282 = vmatmul.msk.bf16.gmra.mxu2 %vm1133_vm2, %v3138_v29 }
 0x509   : > { %4237 = vmatmul.msk.bf16.gmra.mxu3 %vm1133_vm2, %v5617_v58  ;;  %v6001_v58 = vld [vmem:[%s6403_s4] ss:$0 sm:$0xff] }
 0x50c   : > { %v2713_v1 = vpop.f32.mrf.mxu3 }
 0x50d   : > { %v2803_v42 = vadd.f32 %v2713_v1, %v5622_v19 }
 0x50f   : > { %v3051_v27 = vadd.f32 %v5788_v40, %v2803_v42 }
 0x511   : > { %v3299_v26 = vadd.f32 %v5928_v49, %v3051_v27  ;;  %v6010_v27 = vpop.f32.mrf.mxu2 }
 0x513   : > { %v3339_v40 = vadd.f32 %v6001_v58, %v3299_v26 }
 0x514   : > { %v2715_v48 = vpop.f32.mrf.mxu3 }
 0x515   : > { %v2804_v32 = vadd.f32 %v2715_v48, %v5639_v23  ;;  %v3375_v1 = vmax.f32 %v3339_v40, 0.0 }
 0x517   : > { %v3052_v29 = vadd.f32 %v5801_v52, %v2804_v32 }
 0x518   : > { %4283 = vmatmul.msk.bf16.gmra.mxu2 %vm1133_vm2, %v3139_v0 }
 0x519   : > { %v3300_v19 = vadd.f32 %v3211_v21, %v3052_v29  ;;  %4238 = vmatmul.msk.bf16.gmra.mxu3 %vm1133_vm2, %v5649_v61  ;;  %v3122_v61 = vld [vmem:[#allocation2 + $0x13e] sm:$0x3f]  ;;  %v6018_v0 = vpop.f32.mrf.mxu2 }
 0x51a   : > { %v3140_v29 = vpack.c.bf16 %v3122_v61, %v3121_v39 }
 0x51b   : > { %v3340_v49 = vadd.f32 %v6001_v58, %v3300_v19 }
 0x51c   : > { %v2718_v38 = vpop.f32.mrf.mxu3 }
 0x51d   : > { %v2805_v23 = vadd.f32 %v2718_v38, %v5655_v34  ;;  %v3376_v42 = vmax.f32 %v3340_v49, 0.0 }
 0x51f   : > { %v6012_v48 = vpack.c.bf16 %v3376_v42, %v3375_v1  ;;  %v3053_v52 = vadd.f32 %v5816_v8, %v2805_v23 }
 0x521   : > { %v3301_v28 = vadd.f32 %v5945_v57, %v3053_v52 }
 0x523   : > { %v3341_v8 = vadd.f32 %v6001_v58, %v3301_v28 }
 0x524   : > { %v2720_v21 = vpop.f32.mrf.mxu3 }
 0x525   : > { %v2806_v26 = vadd.f32 %v2720_v21, %v5669_v50  ;;  %v3377_v50 = vmax.f32 %v3341_v8, 0.0 }
 0x527   : > { %v3054_v32 = vadd.f32 %v5830_v3, %v2806_v26 }
 0x528   : > { %4284 = vmatmul.msk.bf16.gmra.mxu2 %vm1133_vm2, %v3140_v29 }
 0x529   : > { %v3302_v34 = vadd.f32 %v5950_v31, %v3054_v32  ;;  %4239 = vmatmul.msk.bf16.gmra.mxu3 %vm1133_vm2, %v5677_v30 }
 0x52b   : > { %v3342_v19 = vadd.f32 %v6001_v58, %v3302_v34 }
 0x52c   : > { %v2723_v40 = vpop.f32.mrf.mxu3 }
 0x52d   : > { %v2807_v57 = vadd.f32 %v2723_v40, %v5685_v55  ;;  %v3378_v49 = vmax.f32 %v3342_v19, 0.0 }
 0x52f   : > { %v6027_v3 = vpack.c.bf16 %v3378_v49, %v3377_v50  ;;  %v3055_v38 = vadd.f32 %v5845_v51, %v2807_v57 }
 0x531   : > { %v3303_v31 = vadd.f32 %v5958_v20, %v3055_v38  ;;  %v2991_v20 = vpop.f32.mrf.mxu1 }
 0x533   : > { %v3343_v55 = vadd.f32 %v6001_v58, %v3303_v31 }
 0x534   : > { %v2725_v23 = vpop.f32.mrf.mxu3 }
 0x535   : > { %v2808_v30 = vadd.f32 %v2725_v23, %v5696_v9  ;;  %v3379_v51 = vmax.f32 %v3343_v55, 0.0 }
 0x537   : > { %v3056_v1 = vadd.f32 %v5857_v41, %v2808_v30  ;;  %v3239_v41 = vpop.f32.mrf.mxu2 }
 0x539   : > { %v3304_v42 = vadd.f32 %v5966_v44, %v3056_v1  ;;  %4240 = vmatmul.msk.bf16.gmra.mxu3 %vm1133_vm2, %v5705_v59  ;;  %v2993_v34 = vpop.f32.mrf.mxu1 }
 0x53b   : > { %v3344_v52 = vadd.f32 %v6001_v58, %v3304_v42 }
 0x53c   : > { %v2728_v21 = vpop.f32.mrf.mxu3 }
 0x53d   : > { %v2809_v39 = vadd.f32 %v2728_v21, %v5710_v5  ;;  %v3380_v61 = vmax.f32 %v3344_v52, 0.0 }
 0x53f   : > { %v6039_v28 = vpack.c.bf16 %v3380_v61, %v3379_v51  ;;  %v3057_v9 = vadd.f32 %v5870_v22, %v2809_v39  ;;  %v3241_v19 = vpop.f32.mrf.mxu2 }
 0x541   : > { %v3305_v44 = vadd.f32 %v5974_v56, %v3057_v9  ;;  %v6572_v9 = vld [vmem:[#allocation54_spill] sm:$0xff] }
 0x543   : > { %v3345_v5 = vadd.f32 %v6001_v58, %v3305_v44 }
 0x544   : > { %v2730_v26 = vpop.f32.mrf.mxu3 }
 0x545   : > { %v2810_v59 = vadd.f32 %v2730_v26, %v5722_v24  ;;  %v3381_v57 = vmax.f32 %v3345_v5, 0.0  ;;  %v2996_v24 = vpop.f32.mrf.mxu1 }
 0x547   : > { %v3058_v32 = vadd.f32 %v5882_v53, %v2810_v59  ;;  %v3244_v38 = vpop.f32.mrf.mxu2 }
 0x549   : > { %v3306_v29 = vadd.f32 %v5982_v18, %v3058_v32  ;;  %4241 = vmatmul.msk.bf16.gmra.mxu3 %vm1133_vm2, %v5729_v33 }
 0x54b   : > { %v3346_v8 = vadd.f32 %v6001_v58, %v3306_v29 }
 0x54c   : > { %v2733_v22 = vpop.f32.mrf.mxu3 }
 0x54d   : > { %v2811_v40 = vadd.f32 %v2733_v22, %v5736_v54  ;;  %v3382_v56 = vmax.f32 %v3346_v8, 0.0  ;;  %v6574_v22 = vld [vmem:[#allocation57_spill] sm:$0xff] }
 0x54f   : > { %v6051_v50 = vpack.c.bf16 %v3382_v56, %v3381_v57  ;;  %v3059_v53 = vadd.f32 %v5894_v36, %v2811_v40  ;;  %v6575_v56 = vld [vmem:[#allocation28_spill] sm:$0xff] }
 0x551   : > { %v3307_v49 = vadd.f32 %v5990_v6, %v3059_v53  ;;  %v2998_v6 = vpop.f32.mrf.mxu1  ;;  %v2073_v53 = vadd.f32 %v6575_v56, %v5807_v35 }
 0x553   : > { %v3347_v54 = vadd.f32 %v6001_v58, %v3307_v49 }
 0x554   : > { %v2735_v18 = vpop.f32.mrf.mxu3 }
 0x555   : > { %v2812_v33 = vadd.f32 %v2735_v18, %v5748_v4  ;;  %v3383_v42 = vmax.f32 %v3347_v54, 0.0  ;;  %v3246_v4 = vpop.f32.mrf.mxu2 }
 0x557   : > { %v3060_v23 = vadd.f32 %v5907_v17, %v2812_v33 }
 0x559   : > { %v3308_v31 = vadd.f32 %v5994_v46, %v3060_v23  ;;  %4242 = vmatmul.msk.bf16.gmra.mxu3 %vm1133_vm2, %v5755_v14  ;;  %v6571_v46 = vld [vmem:[#allocation23_spill] sm:$0xff]  ;;  %v3001_v26 = vpop.f32.mrf.mxu1 }
 0x55a   : > { %v2071_v21 = vadd.f32 %v6571_v46, %v5783_v62  ;;  %v6573_v62 = vld [vmem:[#allocation26_spill] sm:$0xff] }
 0x55b   : > { %v3348_v30 = vadd.f32 %v6001_v58, %v3308_v31  ;;  %v2072_v32 = vadd.f32 %v6573_v62, %v5795_v16  ;;  %v6576_v31 = vld [vmem:[#allocation60_spill] sm:$0xff] }
 0x55c   : > { %v2738_v1 = vpop.f32.mrf.mxu3  ;;  %v2321_v54 = vadd.f32 %v6576_v31, %v2073_v53  ;;  %v2625_v53 = vld [vmem:[#allocation2 + $0x134] sm:$0xff] }
 0x55d   : > { %v2813_v36 = vadd.f32 %v2738_v1, %v5762_v37  ;;  %v3384_v55 = vmax.f32 %v3348_v30, 0.0  ;;  %v2319_v37 = vadd.f32 %v6572_v9, %v2071_v21  ;;  %v6076_v59 = vpop.f32.mrf.mxu2 }
 0x55e   : > { %v2569_v35 = vadd.f32 %v5786_v25, %v2321_v54 }
 0x55f   : > { %v6063_v52 = vpack.c.bf16 %v3384_v55, %v3383_v42  ;;  %v3061_v17 = vadd.f32 %v5918_v10, %v2813_v36 }
 0x561   : > { %v3309_v14 = vadd.f32 %v6010_v27, %v3061_v17  ;;  %v2567_v27 = vadd.f32 %v5752_v47, %v2319_v37 }
 0x563   : > { %v3349_v10 = vadd.f32 %v6001_v58, %v3309_v14 }
 0x564   : > { %v2740_v39 = vpop.f32.mrf.mxu3 }
 0x565   : > { %v2814_v51 = vadd.f32 %v2740_v39, %v5778_v11  ;;  %v3385_v5 = vmax.f32 %v3349_v10, 0.0  ;;  %v3251_v49 = vpop.f32.mrf.mxu2 }
 0x567   : > { %v3062_v61 = vadd.f32 %v5930_v13, %v2814_v51  ;;  %v2624_v51 = vld [vmem:[#allocation2 + $0x12c] sm:$0xff] }
 0x568   : > { %v2643_v37 = vpack.c.bf16 %v2624_v51, %v5828_v45 }
 0x569   : > { %v3310_v44 = vadd.f32 %v6018_v0, %v3062_v61  ;;  %4243 = vmatmul.msk.bf16.gmra.mxu3 %vm1133_vm2, %v5790_v43  ;;  %v2320_v0 = vadd.f32 %v6574_v22, %v2072_v32  ;;  %v3003_v43 = vpop.f32.mrf.mxu1  ;;  %v6578_v32 = vld [vmem:[#allocation18_spill] sm:$0xff] }
 0x56b   : > { %v3350_v11 = vadd.f32 %v6001_v58, %v3310_v44  ;;  %v2568_v18 = vadd.f32 %v5767_v2, %v2320_v0 }
 0x56c   : > { %v2743_v13 = vpop.f32.mrf.mxu3 }
 0x56d   : > { %v2815_v29 = vadd.f32 %v2743_v13, %v2567_v27  ;;  %v3386_v8 = vmax.f32 %v3350_v11, 0.0  ;;  %v3254_v46 = vpop.f32.mrf.mxu2 }
 0x56f   : > { %v3432_v40 = vpack.c.bf16 %v3386_v8, %v3385_v5  ;;  %v3063_v57 = vadd.f32 %v2991_v20, %v2815_v29  ;;  %v6577_v20 = vld [vmem:[#allocation31_spill] sm:$0xff] }
 0x570   : > { %v2074_v36 = vadd.f32 %v6577_v20, %v5819_v63 }
 0x571   : > { %v3311_v33 = vadd.f32 %v3239_v41, %v3063_v57  ;;  %v3006_v42 = vpop.f32.mrf.mxu1 }
 0x573   : > { %v3351_v1 = vadd.f32 %v6001_v58, %v3311_v33 }
 0x574   : > { %v2745_v16 = vpop.f32.mrf.mxu3 }
 0x575   : > { %v2816_v47 = vadd.f32 %v2745_v16, %v2568_v18  ;;  %v3387_v17 = vmax.f32 %v3351_v1, 0.0  ;;  %v3256_v44 = vpop.f32.mrf.mxu2  ;;  %v2626_v18 = vld [vmem:[#allocation2 + $0x13c] sm:$0x3f]  ;;  %v6584_v1 = vld [vmem:[#allocation39_spill] sm:$0xff] }
 0x577   : > { %v3064_v23 = vadd.f32 %v2993_v34, %v2816_v47 }
 0x579   : > { %v3312_v30 = vadd.f32 %v3241_v19, %v3064_v23  ;;  %4244 = vmatmul.msk.bf16.gmra.mxu3 %vm1133_vm2, %v5810_v12  ;;  %v2322_v19 = vadd.f32 %v5624_v15, %v2074_v36  ;;  %v3008_v9 = vpop.f32.mrf.mxu1  ;;  %v6579_v15 = vld [vmem:[#allocation35_spill] sm:$0xff]  ;;  %v2644_v23 = vpack.c.bf16 %v2626_v18, %v2625_v53 }
 0x57a   : > { %v2076_v27 = vadd.f32 %v6579_v15, %v6578_v32  ;;  %v6590_v32 = vld [vmem:[#allocation24_spill] sm:$0xff] }
 0x57b   : > { %v3352_v2 = vadd.f32 %v6001_v58, %v3312_v30  ;;  %v2570_v12 = vadd.f32 %v5799_v60, %v2322_v19  ;;  %v6583_v30 = vld [vmem:[#allocation22_spill] sm:$0xff]  ;;  %v6587_v19 = vld [vmem:[#allocation21_spill] sm:$0xff] }
 0x57c   : > { %v2748_v55 = vpop.f32.mrf.mxu3  ;;  %v2078_v20 = vadd.f32 %v6584_v1, %v6583_v30 }
 0x57d   : > { %v2817_v41 = vadd.f32 %v2748_v55, %v2569_v35  ;;  %v3388_v34 = vmax.f32 %v3352_v2, 0.0  ;;  %v3259_v0 = vpop.f32.mrf.mxu2  ;;  %v6585_v55 = vld [vmem:[#allocation68_spill] sm:$0xff] }
 0x57f   : > { %v3433_v21 = vpack.c.bf16 %v3388_v34, %v3387_v17  ;;  %v3065_v39 = vadd.f32 %v2996_v24, %v2817_v41 }
 0x581   : > { %v3313_v61 = vadd.f32 %v3244_v38, %v3065_v39  ;;  %v6580_v38 = vld [vmem:[#allocation15_spill] sm:$0xff]  ;;  %v3011_v45 = vpop.f32.mrf.mxu1 }
 0x583   : > { %v3353_v10 = vadd.f32 %v6001_v58, %v3313_v61 }
 0x584   : > { %v2750_v14 = vpop.f32.mrf.mxu3 }
 0x585   : > { %v2818_v63 = vadd.f32 %v2750_v14, %v2570_v12  ;;  %v3389_v11 = vmax.f32 %v3353_v10, 0.0  ;;  %v3261_v35 = vpop.f32.mrf.mxu2  ;;  %v6589_v10 = vld [vmem:[#allocation45_spill] sm:$0xff] }
 0x587   : > { %v3066_v25 = vadd.f32 %v2998_v6, %v2818_v63  ;;  %v6581_v6 = vld [vmem:[#allocation63_spill] sm:$0xff] }
 0x588   : > { %v2324_v8 = vadd.f32 %v6581_v6, %v2076_v27 }
 0x589   : > { %v3314_v62 = vadd.f32 %v3246_v4, %v3066_v25  ;;  %4245 = vmatmul.msk.bf16.gmra.mxu3 %vm1133_vm2, %v2643_v37  ;;  %v6582_v4 = vld [vmem:[#allocation13_spill] sm:$0xff]  ;;  %v6588_v37 = vld [vmem:[#allocation27_spill] sm:$0xff] }
 0x58a   : > { %v2572_v57 = vadd.f32 %v6582_v4, %v2324_v8 }
 0x58b   : > { %v3354_v24 = vadd.f32 %v6001_v58, %v3314_v62 }
 0x58c   : > { %v2753_v60 = vpop.f32.mrf.mxu3 }
 0x58d   : > { %v3390_v13 = vmax.f32 %v3354_v24, 0.0  ;;  %v2819_v29 = vadd.f32 %v2753_v60, %v6580_v38  ;;  %v3264_v61 = vpop.f32.mrf.mxu2  ;;  %v6591_v24 = vld [vmem:[#allocation6_spill] sm:$0xff] }
 0x58f   : > { %v3434_v5 = vpack.c.bf16 %v3390_v13, %v3389_v11  ;;  %v3067_v22 = vadd.f32 %v3001_v26, %v2819_v29  ;;  %v3013_v26 = vpop.f32.mrf.mxu1  ;;  %v6592_v11 = vld [vmem:[#allocation42_spill] sm:$0xff] }
 0x591   : > { %3522 = vmatpush.bf16.msrb.mxu0 %v3434_v5  ;;  %v3315_v16 = vadd.f32 %v6076_v59, %v3067_v22 }
 0x593   : > { %v3355_v54 = vadd.f32 %v6001_v58, %v3315_v16 }
 0x594   : > { %v2755_v56 = vpop.f32.mrf.mxu3 }
 0x595   : > { %v2820_v33 = vadd.f32 %v2755_v56, %v2572_v57  ;;  %3523 = vmatpush.bf16.msrb.mxu0 %v3433_v21  ;;  %v6593_v57 = vld [vmem:[#allocation48_spill] sm:$0xff]  ;;  %v6594_v56 = vld [vmem:[#allocation50_spill] sm:$0xff] }
 0x596   : > { %v2082_v53 = vadd.f32 %v6594_v56, %v6593_v57 }
 0x597   : > { %v3068_v47 = vadd.f32 %v3003_v43, %v2820_v33  ;;  %v3391_v43 = vmax.f32 %v3355_v54, 0.0  ;;  %v3016_v39 = vpop.f32.mrf.mxu1  ;;  %v6595_v33 = vld [vmem:[#allocation29_spill] sm:$0xff]  ;;  %v6596_v54 = vld [vmem:[#allocation8_spill] sm:$0xff] }
 0x599   : > { %v3316_v31 = vadd.f32 %v3251_v49, %v3068_v47  ;;  %4246 = vmatmul.msk.bf16.gmra.mxu3 %vm1133_vm2, %v2644_v23  ;;  %3524 = vmatpush.bf16.msrb.mxu0 %v3432_v40  ;;  %v6586_v49 = vld [vmem:[#allocation66_spill] sm:$0xff] }
 0x59a   : > { %v2326_v17 = vadd.f32 %v6586_v49, %v2078_v20  ;;  %v6597_v20 = vld [vmem:[#allocation70_spill] sm:$0xff] }
 0x59b   : > { %v3356_v36 = vadd.f32 %v6001_v58, %v3316_v31  ;;  %v2527_v31 = vpop.f32.mrf.mxu0 }
 0x59c   : > { %v2758_v2 = vpop.f32.mrf.mxu3  ;;  %v2574_v21 = vadd.f32 %v6587_v19, %v2326_v17  ;;  %v6599_v19 = vld [vmem:[#allocation56_spill] sm:$0xff] }
 0x59d   : > { %v2821_v59 = vadd.f32 %v2758_v2, %v6585_v55  ;;  %3525 = vmatpush.bf16.msrb.mxu0 %v6063_v52  ;;  %v3392_v41 = vmax.f32 %v3356_v36, 0.0 }
 0x59f   : > { %v6114_v34 = vpack.c.bf16 %v3392_v41, %v3391_v43  ;;  %v3069_v40 = vadd.f32 %v3006_v42, %v2821_v59  ;;  %v2080_v42 = vadd.f32 %v6589_v10, %v6588_v37 }
 0x5a1   : > { %3526 = vmatpush.bf16.msrb.mxu0 %v6051_v50  ;;  %v3317_v14 = vadd.f32 %v3254_v46, %v3069_v40  ;;  %v6598_v40 = vld [vmem:[#allocation36_spill] sm:$0xff] }
 0x5a3   : > { %v3357_v25 = vadd.f32 %v6001_v58, %v3317_v14  ;;  %v2530_v41 = vpop.f32.mrf.mxu0 }
 0x5a4   : > { %v2760_v12 = vpop.f32.mrf.mxu3 }
 0x5a5   : > { %v2822_v51 = vadd.f32 %v2760_v12, %v2574_v21  ;;  %3527 = vmatpush.bf16.msrb.mxu0 %v6039_v28  ;;  %v3393_v46 = vmax.f32 %v3357_v25, 0.0  ;;  %v3018_v28 = vpop.f32.mrf.mxu1  ;;  %v2084_v21 = vadd.f32 %v6599_v19, %v6598_v40 }
 0x5a7   : > { %v3070_v63 = vadd.f32 %v3008_v9, %v2822_v51  ;;  %v2328_v9 = vadd.f32 %v6591_v24, %v2080_v42  ;;  %v6603_v24 = vld [vmem:[#allocation59_spill] sm:$0xff] }
 0x5a9   : > { %v3318_v52 = vadd.f32 %v3256_v44, %v3070_v63  ;;  %3528 = vmatpush.bf16.msrb.mxu0 %v6027_v3  ;;  %v3266_v3 = vpop.f32.mrf.mxu2  ;;  %v2576_v13 = vadd.f32 %v6592_v11, %v2328_v9 }
 0x5ab   : > { %v3358_v50 = vadd.f32 %v6001_v58, %v3318_v52 }
 0x5ac   : > { %v2763_v62 = vpop.f32.mrf.mxu3 }
 0x5ad   : > { %v2823_v15 = vadd.f32 %v2763_v62, %v6590_v32  ;;  %3529 = vmatpush.bf16.msrb.mxu0 %v6012_v48  ;;  %v3394_v27 = vmax.f32 %v3358_v50, 0.0  ;;  %v3021_v8 = vpop.f32.mrf.mxu1  ;;  %v4287_v32 = vld [vmem:[%s6407_s8] sm:$0xf] }
 0x5af   : > { %v6127_v44 = vpack.c.bf16 %v3394_v27, %v3393_v46  ;;  %v3071_v60 = vadd.f32 %v3011_v45, %v2823_v15  ;;  %v4429_v15 = vld [vmem:[%s6407_s8 + $0x8] sm:$0xf0]  ;;  %v2532_v46 = vpop.f32.mrf.mxu0 }
 0x5b0   : > { %v4288_v27 = vor.u32 %v4429_v15, %v4287_v32 }
 0x5b1   : > { %v3319_v29 = vadd.f32 %v3259_v0, %v3071_v60  ;;  %v3269_v48 = vpop.f32.mrf.mxu2  ;;  %v2330_v0 = vadd.f32 %v6596_v54, %v2082_v53 }
 0x5b2   : > { %3530 = vmatmul.bf16.vlgmr.msrb.gmra.mxu0 %v4288_v27 }
 0x5b3   : > { %v3359_v4 = vadd.f32 %v6001_v58, %v3319_v29  ;;  %v2578_v36 = vadd.f32 %v6597_v20, %v2330_v0  ;;  %v6604_v29 = vld [vmem:[#allocation10_spill] sm:$0xff]  ;;  %v4432_v20 = vld [vmem:[%s6407_s8 + $0x20] sm:$0xf0] }
 0x5b4   : > { %v2765_v38 = vpop.f32.mrf.mxu3 }
 0x5b5   : > { %v2824_v5 = vadd.f32 %v2765_v38, %v2576_v13  ;;  %v3395_v45 = vmax.f32 %v3359_v4, 0.0  ;;  %v3023_v1 = vpop.f32.mrf.mxu1  ;;  %v6605_v4 = vld [vmem:[#allocation37_spill] sm:$0xff] }
 0x5b7   : > { %v3072_v6 = vadd.f32 %v3013_v26, %v2824_v5 }
 0x5b9   : > { %v3320_v22 = vadd.f32 %v3261_v35, %v3072_v6  ;;  %v3271_v35 = vpop.f32.mrf.mxu2 }
 0x5bb   : > { %v3360_v18 = vadd.f32 %v6001_v58, %v3320_v22 }
 0x5bc   : > { %v2768_v16 = vpop.f32.mrf.mxu3 }
 0x5bd   : > { %v2825_v47 = vadd.f32 %v2768_v16, %v6595_v33  ;;  %v3396_v23 = vmax.f32 %v3360_v18, 0.0  ;;  %v3026_v14 = vpop.f32.mrf.mxu1  ;;  %v2535_v18 = vpop.f32.mrf.mxu0 }
 0x5bf   : > { %v6136_v30 = vpack.c.bf16 %v3396_v23, %v3395_v45  ;;  %v3073_v26 = vadd.f32 %v3016_v39, %v2825_v47  ;;  %v6600_v39 = vld [vmem:[#allocation33_spill] sm:$0xff]  ;;  %v6607_v23 = vld [vmem:[#allocation11_spill] sm:$0xff] }
 0x5c1   : > { %v3321_v55 = vadd.f32 %v3264_v61, %v3073_v26  ;;  %v3274_v37 = vpop.f32.mrf.mxu2  ;;  %v6601_v61 = vld [vmem:[#allocation17_spill] sm:$0xff] }
 0x5c2   : > { %v2332_v42 = vadd.f32 %v6601_v61, %v2084_v21  ;;  %v6610_v21 = vld [vmem:[#allocation12_spill] sm:$0xff] }
 0x5c3   : > { %v3361_v17 = vadd.f32 %v6001_v58, %v3321_v55  ;;  %v6609_v55 = vld [vmem:[#allocation62_spill] sm:$0xff] }
 0x5c4   : > { %v2770_v2 = vpop.f32.mrf.mxu3 }
 0x5c5   : > { %v2826_v59 = vadd.f32 %v2770_v2, %v2578_v36  ;;  %v3397_v52 = vmax.f32 %v3361_v17, 0.0  ;;  %v3028_v13 = vpop.f32.mrf.mxu1  ;;  %v6608_v2 = vld [vmem:[#allocation40_spill] sm:$0xff]  ;;  %v2537_v40 = vpop.f32.mrf.mxu0 }
 0x5c7   : > { %v3074_v43 = vadd.f32 %v3018_v28, %v2826_v59  ;;  %v6602_v28 = vld [vmem:[#allocation38_spill] sm:$0xff]  ;;  %v2087_v59 = vadd.f32 %v6609_v55, %v6608_v2  ;;  %v6619_v2 = vld [vmem:[#allocation69_spill] sm:$0xff] }
 0x5c8   : > { %v2085_v9 = vadd.f32 %v6603_v24, %v6602_v28 }
 0x5c9   : > { %v3322_v49 = vadd.f32 %v3266_v3, %v3074_v43  ;;  %v2580_v3 = vadd.f32 %v2527_v31, %v2332_v42  ;;  %v3276_v6 = vpop.f32.mrf.mxu2 }
 0x5ca   : > { %v2333_v5 = vadd.f32 %v6604_v29, %v2085_v9 }
 0x5cb   : > { %v3362_v12 = vadd.f32 %v6001_v58, %v3322_v49 }
 0x5cc   : > { %v2773_v51 = vpop.f32.mrf.mxu3  ;;  %v2581_v56 = vadd.f32 %v2530_v41, %v2333_v5 }
 0x5cd   : > { %v2827_v63 = vadd.f32 %v2773_v51, %v6600_v39  ;;  %v3398_v25 = vmax.f32 %v3362_v12, 0.0  ;;  %v3031_v0 = vpop.f32.mrf.mxu1  ;;  %v2335_v12 = vadd.f32 %v6610_v21, %v2087_v59  ;;  %v2540_v24 = vpop.f32.mrf.mxu0  ;;  %v6621_v21 = vld [vmem:[#allocation7_spill] sm:$0xff] }
 0x5cf   : > { %v3075_v10 = vadd.f32 %v3021_v8, %v2827_v63  ;;  %v6145_v50 = vpack.c.bf16 %v3398_v25, %v3397_v52  ;;  %v6611_v63 = vld [vmem:[#allocation43_spill] sm:$0xff]  ;;  %v6612_v52 = vld [vmem:[#allocation64_spill] sm:$0xff] }
 0x5d0   : > { %v2088_v25 = vadd.f32 %v6612_v52, %v6611_v63 }
 0x5d1   : > { %v3323_v62 = vadd.f32 %v3269_v48, %v3075_v10  ;;  %v6606_v48 = vld [vmem:[#allocation61_spill] sm:$0xff]  ;;  %v3279_v36 = vpop.f32.mrf.mxu2  ;;  %v2583_v10 = vadd.f32 %v2535_v18, %v2335_v12 }
 0x5d2   : > { %v2086_v57 = vadd.f32 %v6606_v48, %v6605_v4 }
 0x5d3   : > { %v3363_v22 = vadd.f32 %v6001_v58, %v3323_v62 }
 0x5d4   : > { %v2775_v60 = vpop.f32.mrf.mxu3  ;;  %v2334_v31 = vadd.f32 %v6607_v23, %v2086_v57 }
 0x5d5   : > { %v2828_v11 = vadd.f32 %v2775_v60, %v2580_v3  ;;  %v3399_v47 = vmax.f32 %v3363_v22, 0.0  ;;  %v3033_v39 = vpop.f32.mrf.mxu1  ;;  %v4311_v3 = vld [vmem:[%s6407_s8 + $0x30] sm:$0xf]  ;;  %v4435_v60 = vld [vmem:[%s6407_s8 + $0x38] sm:$0xf0] }
 0x5d6   : > { %v2582_v43 = vadd.f32 %v2532_v46, %v2334_v31  ;;  %v6613_v46 = vld [vmem:[#allocation16_spill] sm:$0xff] }
 0x5d7   : > { %v3076_v38 = vadd.f32 %v3023_v1, %v2828_v11  ;;  %v4299_v1 = vld [vmem:[%s6407_s8 + $0x18] sm:$0xf]  ;;  %v2336_v27 = vadd.f32 %v6613_v46, %v2088_v25  ;;  %v4312_v11 = vor.u32 %v4435_v60, %v4311_v3 }
 0x5d9   : > { %v3324_v8 = vadd.f32 %v3271_v35, %v3076_v38  ;;  %v4300_v35 = vor.u32 %v4432_v20, %v4299_v1  ;;  %v3281_v42 = vpop.f32.mrf.mxu2  ;;  %v6615_v38 = vld [vmem:[#allocation65_spill] sm:$0xff]  ;;  %v2584_v5 = vadd.f32 %v2537_v40, %v2336_v27 }
 0x5db   : > { %v3364_v53 = vadd.f32 %v6001_v58, %v3324_v8  ;;  %3535 = vmatmul.bf16.gmra.mxu0 %v4300_v35 }
 0x5dc   : > { %v2778_v16 = vpop.f32.mrf.mxu3 }
 0x5dd   : > { %v2829_v33 = vadd.f32 %v2778_v16, %v2581_v56  ;;  %v3400_v45 = vmax.f32 %v3364_v53, 0.0  ;;  %v6616_v56 = vld [vmem:[#allocation20_spill] sm:$0xff] }
 0x5df   : > { %v6161_v54 = vpack.c.bf16 %v3400_v45, %v3399_v47  ;;  %v3077_v26 = vadd.f32 %v3026_v14, %v2829_v33  ;;  %v2542_v33 = vpop.f32.mrf.mxu0  ;;  %v6617_v47 = vld [vmem:[#allocation44_spill] sm:$0xff]  ;;  %v6618_v45 = vld [vmem:[#allocation67_spill] sm:$0xff] }
 0x5e0   : > { %v2090_v23 = vadd.f32 %v6618_v45, %v6617_v47 }
 0x5e1   : > { %v3325_v49 = vadd.f32 %v3274_v37, %v3077_v26  ;;  %v3284_v48 = vpop.f32.mrf.mxu2 }
 0x5e2   : > { %v2338_v55 = vadd.f32 %v6619_v2, %v2090_v23 }
 0x5e3   : > { %v3365_v51 = vadd.f32 %v6001_v58, %v3325_v49  ;;  %v4323_v49 = vld [vmem:[%s6407_s8 + $0x48] sm:$0xf] }
 0x5e4   : > { %v2780_v41 = vpop.f32.mrf.mxu3 }
 0x5e5   : > { %v2830_v17 = vadd.f32 %v2780_v41, %v2582_v43  ;;  %v3401_v15 = vmax.f32 %v3365_v51, 0.0 }
 0x5e7   : > { %v3078_v19 = vadd.f32 %v3028_v13, %v2830_v17  ;;  %v6614_v13 = vld [vmem:[#allocation41_spill] sm:$0xff]  ;;  %v4438_v17 = vld [vmem:[%s6407_s8 + $0x50] sm:$0xf0]  ;;  %v2545_v51 = vpop.f32.mrf.mxu0 }
 0x5e8   : > { %v2089_v29 = vadd.f32 %v6615_v38, %v6614_v13  ;;  %v4324_v40 = vor.u32 %v4438_v17, %v4323_v49  ;;  %v6629_v49 = vld [vmem:[#allocation19_spill] sm:$0xff] }
 0x5e9   : > { %v3326_v14 = vadd.f32 %v3276_v6, %v3078_v19  ;;  %v3036_v6 = vpop.f32.mrf.mxu1  ;;  %v3286_v43 = vpop.f32.mrf.mxu2  ;;  %v6620_v19 = vld [vmem:[#allocation47_spill] sm:$0xff] }
 0x5ea   : > { %v2337_v53 = vadd.f32 %v6616_v56, %v2089_v29  ;;  %v2091_v12 = vadd.f32 %v6621_v21, %v6620_v19 }
 0x5eb   : > { %v3366_v61 = vadd.f32 %v6001_v58, %v3326_v14  ;;  %3540 = vmatmul.bf16.gmra.mxu0 %v4312_v11  ;;  %v2586_v14 = vadd.f32 %v2542_v33, %v2338_v55  ;;  %v6627_v33 = vld [vmem:[#allocation9_spill] sm:$0xff] }
 0x5ec   : > { %v2783_v62 = vpop.f32.mrf.mxu3  ;;  %v2585_v31 = vadd.f32 %v2540_v24, %v2337_v53  ;;  %v6623_v24 = vld [vmem:[#allocation46_spill] sm:$0xff] }
 0x5ed   : > { %v2831_v32 = vadd.f32 %v2783_v62, %v2583_v10  ;;  %v3402_v37 = vmax.f32 %v3366_v61, 0.0  ;;  %v6622_v10 = vld [vmem:[#allocation25_spill] sm:$0xff] }
 0x5ee   : > { %v2339_v61 = vadd.f32 %v6622_v10, %v2091_v12  ;;  %v4443_v10 = vld [vmem:[%s6410_s11 + $0x14] sm:$0xf0] }
 0x5ef   : > { %v6177_v28 = vpack.c.bf16 %v3402_v37, %v3401_v15  ;;  %v3079_v9 = vadd.f32 %v3031_v0, %v2831_v32  ;;  %v4440_v15 = vld [vmem:[%s6410_s11 + $0x4] sm:$0xf]  ;;  %v4345_v37 = vld [vmem:[%s6410_s11 + $0x8] sm:$0xf0] }
 0x5f0   : > { %v4348_v27 = vor.u32 %v4440_v15, %v4345_v37  ;;  %v2587_v11 = vadd.f32 %v2545_v51, %v2339_v61 }
 0x5f1   : > { %v3327_v22 = vadd.f32 %v3279_v36, %v3079_v9  ;;  %v3038_v36 = vpop.f32.mrf.mxu1  ;;  %v3289_v46 = vpop.f32.mrf.mxu2  ;;  %v6624_v9 = vld [vmem:[#allocation14_spill] sm:$0xff] }
 0x5f2   : > { %v2092_v3 = vadd.f32 %v6624_v9, %v6623_v24  ;;  %3747 = vmatmul.bf16.vlgmr.msrb.gmra.mxu2 %v4348_v27 }
 0x5f3   : > { %v3367_v16 = vadd.f32 %v6001_v58, %v3327_v22  ;;  %v6625_v22 = vld [vmem:[#allocation30_spill] sm:$0xff] }
 0x5f4   : > { %v2785_v8 = vpop.f32.mrf.mxu3 }
 0x5f5   : > { %v2832_v4 = vadd.f32 %v2785_v8, %v2584_v5  ;;  %v3403_v20 = vmax.f32 %v3367_v16, 0.0  ;;  %v6626_v16 = vld [vmem:[#allocation49_spill] sm:$0xff] }
 0x5f6   : > { %v2093_v47 = vadd.f32 %v6627_v33, %v6626_v16  ;;  %v4369_v16 = vld [vmem:[%s6410_s11 + $0x38] sm:$0xf0] }
 0x5f7   : > { %v3080_v57 = vadd.f32 %v3033_v39, %v2832_v4  ;;  %v2340_v4 = vadd.f32 %v6625_v22, %v2092_v3  ;;  %v4445_v22 = vld [vmem:[%s6410_s11 + $0x24] sm:$0xf0] }
 0x5f9   : > { %v3328_v18 = vadd.f32 %v3281_v42, %v3080_v57  ;;  %v3041_v42 = vpop.f32.mrf.mxu1  ;;  %v4441_v57 = vld [vmem:[%s6410_s11 + $0x4] sm:$0xf0]  ;;  %v3291_v23 = vpop.f32.mrf.mxu2 }
 0x5fb   : > { %v3368_v0 = vadd.f32 %v6001_v58, %v3328_v18  ;;  %3545 = vmatmul.bf16.gmra.mxu0 %v4324_v40 }
 0x5fc   : > { %v2788_v26 = vpop.f32.mrf.mxu3 }
 0x5fd   : > { %v2833_v1 = vadd.f32 %v2788_v26, %v2585_v31  ;;  %v3404_v35 = vmax.f32 %v3368_v0, 0.0 }
 0x5ff   : > { %v3441_v59 = vpack.c.bf16 %v3404_v35, %v3403_v20  ;;  %v3081_v41 = vadd.f32 %v3036_v6, %v2833_v1  ;;  %v2547_v6 = vpop.f32.mrf.mxu0  ;;  %v6628_v20 = vld [vmem:[#allocation32_spill] sm:$0xff] }
 0x600   : > { %v2588_v45 = vadd.f32 %v2547_v6, %v2340_v4  ;;  %v2341_v35 = vadd.f32 %v6628_v20, %v2093_v47  ;;  %v4434_v20 = vld [vmem:[%s6407_s8 + $0x34] sm:$0xf] }
 0x601   : > { %v3329_v63 = vadd.f32 %v3284_v48, %v3081_v41  ;;  %v4343_v48 = vld [vmem:[%s6410_s11] sm:$0xf]  ;;  %v3043_v18 = vpop.f32.mrf.mxu1  ;;  %v4353_v41 = vld [vmem:[%s6410_s11 + $0x18] sm:$0xf0] }
 0x602   : > { %v4344_v56 = vor.u32 %v4441_v57, %v4343_v48  ;;  %v4295_v48 = vld [vmem:[%s6407_s8 + $0x8] sm:$0xf] }
 0x603   : > { %v3369_v62 = vadd.f32 %v6001_v58, %v3329_v63  ;;  %v6630_v63 = vld [vmem:[#allocation34_spill] sm:$0xff] }
 0x604   : > { %v2790_v39 = vpop.f32.mrf.mxu3  ;;  %3718 = vmatmul.bf16.vlgmr.msrb.gmra.mxu1 %v4344_v56  ;;  %v4431_v56 = vld [vmem:[%s6407_s8 + $0x1c] sm:$0xf] }
 0x605   : > { %v2834_v52 = vadd.f32 %v2790_v39, %v2586_v14  ;;  %v3405_v38 = vmax.f32 %v3369_v62, 0.0  ;;  %v3294_v39 = vpop.f32.mrf.mxu2 }
 0x607   : > { %v3082_v25 = vadd.f32 %v3038_v36, %v2834_v52  ;;  %v2550_v36 = vpop.f32.mrf.mxu0 }
 0x608   : > { %v2589_v17 = vadd.f32 %v2550_v36, %v2341_v35  ;;  %v4313_v35 = vld [vmem:[%s6407_s8 + $0x3c] sm:$0xf0] }
 0x609   : > { %v3330_v32 = vadd.f32 %v3286_v43, %v3082_v25  ;;  %v4442_v43 = vld [vmem:[%s6410_s11 + $0x14] sm:$0xf]  ;;  %v3046_v21 = vpop.f32.mrf.mxu1  ;;  %v4316_v36 = vor.u32 %v4434_v20, %v4313_v35 }
 0x60a   : > { %v4356_v19 = vor.u32 %v4442_v43, %v4353_v41  ;;  %v4437_v41 = vld [vmem:[%s6407_s8 + $0x4c] sm:$0xf] }
 0x60b   : > { %v3370_v60 = vadd.f32 %v6001_v58, %v3330_v32 }
 0x60c   : > { %v2793_v13 = vpop.f32.mrf.mxu3  ;;  %3752 = vmatmul.bf16.gmra.mxu2 %v4356_v19 }
 0x60d   : > { %v3406_v29 = vmax.f32 %v3370_v60, 0.0  ;;  %v2835_v5 = vadd.f32 %v2793_v13, %v2587_v11  ;;  %v3296_v24 = vpop.f32.mrf.mxu2  ;;  %v4289_v60 = vld [vmem:[%s6407_s8 + $0xc] sm:$0xf0]  ;;  %v4361_v11 = vld [vmem:[%s6410_s11 + $0x28] sm:$0xf0] }
 0x60f   : > { %v3442_v8 = vpack.c.bf16 %v3406_v29, %v3405_v38  ;;  %v3083_v53 = vadd.f32 %v3041_v42, %v2835_v5 }
 0x611   : > { %3551 = vmatpush.bf16.msra.mxu3 %v3442_v8  ;;  %v3331_v0 = vadd.f32 %v3289_v46, %v3083_v53  ;;  %v3048_v46 = vpop.f32.mrf.mxu1  ;;  %v4359_v8 = vld [vmem:[%s6410_s11 + $0x20] sm:$0xf]  ;;  %v4301_v53 = vld [vmem:[%s6407_s8 + $0x24] sm:$0xf0] }
 0x612   : > { %v4360_v4 = vor.u32 %v4445_v22, %v4359_v8  ;;  %v4304_v47 = vor.u32 %v4431_v56, %v4301_v53 }
 0x613   : > { %v3371_v55 = vadd.f32 %v6001_v58, %v3331_v0  ;;  %v4307_v0 = vld [vmem:[%s6407_s8 + $0x20] sm:$0xf] }
 0x614   : > { %v2795_v31 = vpop.f32.mrf.mxu3 }
 0x615   : > { %v2836_v26 = vadd.f32 %v2795_v31, %v2588_v45  ;;  %3552 = vmatpush.bf16.msra.mxu3 %v3441_v59  ;;  %v2094_v59 = vadd.f32 %v6629_v49, %v5985_v7  ;;  %v3407_v14 = vmax.f32 %v3371_v55, 0.0  ;;  %v4351_v7 = vld [vmem:[%s6410_s11 + $0x10] sm:$0xf]  ;;  %v4436_v55 = vld [vmem:[%s6407_s8 + $0x40] sm:$0xf0] }
 0x616   : > { %v4352_v61 = vor.u32 %v4443_v10, %v4351_v7  ;;  %v4367_v45 = vld [vmem:[%s6410_s11 + $0x30] sm:$0xf]  ;;  %v4325_v49 = vld [vmem:[%s6407_s8 + $0x54] sm:$0xf0]  ;;  %v4448_v7 = vld [vmem:[%s6408_s9] sm:$0xff] }
 0x617   : > { %v3084_v1 = vadd.f32 %v3043_v18, %v2836_v26  ;;  %v2342_v52 = vadd.f32 %v6630_v63, %v2094_v59  ;;  %v4446_v18 = vld [vmem:[%s6410_s11 + $0x34] sm:$0xf]  ;;  %v4433_v26 = vld [vmem:[%s6407_s8 + $0x28] sm:$0xf0]  ;;  %v4328_v59 = vor.u32 %v4437_v41, %v4325_v49 }
 0x618   : > { %3723 = vmatmul.bf16.gmra.mxu1 %v4352_v61  ;;  %v4372_v33 = vor.u32 %v4446_v18, %v4369_v16 }
 0x619   : > { %v3332_v2 = vadd.f32 %v3291_v23, %v3084_v1  ;;  %3553 = vmatpush.bf16.msra.mxu3 %v6177_v28  ;;  %v4447_v23 = vld [vmem:[%s6410_s11 + $0x34] sm:$0xf0]  ;;  %v4308_v1 = vor.u32 %v4433_v26, %v4307_v0 }
 0x61a   : > { %v4368_v31 = vor.u32 %v4447_v23, %v4367_v45 }
 0x61b   : > { %v3372_v40 = vadd.f32 %v6001_v58, %v3332_v2  ;;  %v4319_v2 = vld [vmem:[%s6407_s8 + $0x38] sm:$0xf] }
 0x61c   : > { %v2798_v12 = vpop.f32.mrf.mxu3  ;;  %v4320_v43 = vor.u32 %v4436_v55, %v4319_v2 }
 0x61d   : > { %v2837_v28 = vadd.f32 %v2798_v12, %v2589_v17  ;;  %3554 = vmatpush.bf16.msra.mxu3 %v6161_v54  ;;  %v3408_v51 = vmax.f32 %v3372_v40, 0.0  ;;  %v2552_v54 = vpop.f32.mrf.mxu0  ;;  %v4331_v17 = vld [vmem:[%s6407_s8 + $0x50] sm:$0xf]  ;;  %v4439_v40 = vld [vmem:[%s6407_s8 + $0x58] sm:$0xf0] }
 0x61e   : > { %v2590_v62 = vadd.f32 %v2552_v54, %v2342_v52  ;;  %v4332_v19 = vor.u32 %v4439_v40, %v4331_v17 }
 0x61f   : > { %v3443_v25 = vpack.c.bf16 %v3408_v51, %v3407_v14  ;;  %v3085_v42 = vadd.f32 %v3046_v21, %v2837_v28 }
 0x621   : > { %3555 = vmatpush.bf16.msra.mxu3 %v6145_v50  ;;  %v3333_v15 = vadd.f32 %v3294_v39, %v3085_v42  ;;  %v4428_v50 = vld [vmem:[%s6407_s8 + $0x4] sm:$0xf] }
 0x623   : > { %v3373_v9 = vadd.f32 %v6001_v58, %v3333_v15  ;;  %v3613_v15 = vld [vmem:[%s6404_s5] sm:$0xf] }
 0x624   : > { %v2800_v32 = vpop.f32.mrf.mxu3 }
 0x625   : > { %v2838_v37 = vadd.f32 %v2800_v32, %v2590_v62  ;;  %3556 = vmatpush.bf16.msra.mxu3 %v6136_v30  ;;  %v4444_v30 = vld [vmem:[%s6410_s11 + $0x24] sm:$0xf]  ;;  %v3409_v29 = vmax.f32 %v3373_v9, 0.0 }
 0x626   : > { %v4364_v38 = vor.u32 %v4444_v30, %v4361_v11 }
 0x627   : > { %v3086_v27 = vadd.f32 %v3048_v46, %v2838_v37  ;;  %v3631_v37 = vsel %vm1340_vm1, %v3613_v15, 0 }
 0x628   : > { %3757 = vmatmul.bf16.gmra.mxu2 %v4364_v38  ;;  %3728 = vmatmul.bf16.gmra.mxu1 %v4360_v4 }
 0x629   : > { %v3334_v3 = vadd.f32 %v3296_v24, %v3086_v27  ;;  %3557 = vmatpush.bf16.msra.mxu3 %v6127_v44  ;;  %v4292_v44 = vor.u32 %v4428_v50, %v4289_v60 }
 0x62b   : > { %v3374_v13 = vadd.f32 %v6001_v58, %v3334_v3 }
 0x62d   : > { %v3410_v5 = vmax.f32 %v3374_v13, 0.0  ;;  %3558 = vmatpush.bf16.msra.mxu3 %v6114_v34  ;;  %v4430_v34 = vld [vmem:[%s6407_s8 + $0x10] sm:$0xf0] }
 0x62e   : > { %v4296_v57 = vor.u32 %v4430_v34, %v4295_v48 }
 0x62f   : > { %v3444_v6 = vpack.c.bf16 %v3410_v5, %v3409_v29  ;;  %v3531_v21 = vpop.f32.mrf.mxu0 }
 0x630   : > { %3559 = vmatmul.bf16.vlgmr.msra.gmra.mxu3 %v4292_v44 }
 0x631   : > { %v3520_v58 = vsel %vm3518_vm3, %v3444_v6, 0  ;;  %3640 = vmatpush.bf16.msrb.mxu3 %v3631_v37 }
 0x632   : > { %3586 = vmatpush.bf16.msra.mxu0 %v3520_v58 }
 0x636   : > { %3587 = vmatpush.bf16.msra.mxu0 %v3443_v25 }
 0x637   : > { %v3533_v12 = vpop.f32.mrf.mxu0 }
 0x638   : > { %3762 = vmatmul.bf16.gmra.mxu2 %v4372_v33  ;;  %3733 = vmatmul.bf16.gmra.mxu1 %v4368_v31 }
 0x639   : > { %4333 = vmatmul.msk.bf16.vlgmr.msra.gmra.mxu0 %vm3505_vm4, %v4296_v57 }
 0x63a   : > { %3803 = vmatpush.bf16.msrb.mxu0 %v4448_v7 }
 0x640   : > { %3564 = vmatmul.bf16.gmra.mxu3 %v4304_v47 }
 0x649   : > { %4334 = vmatmul.msk.bf16.gmra.mxu0 %vm3505_vm4, %v4308_v1 }
 0x650   : > { %3569 = vmatmul.bf16.gmra.mxu3 %v4316_v36 }
 0x658   : > { %v3536_v28 = vpop.f32.mrf.mxu0 }
 0x659   : > { %4335 = vmatmul.msk.bf16.gmra.mxu0 %vm3505_vm4, %v4320_v43 }
 0x660   : > { %3574 = vmatmul.bf16.gmra.mxu3 %v4328_v59  ;;  %v3538_v14 = vpop.f32.mrf.mxu0 }
 0x668   : > { %v3541_v63 = vpop.f32.mrf.mxu0 }
 0x669   : > { %4336 = vmatmul.msk.bf16.gmra.mxu0 %vm3505_vm4, %v4332_v19 }
 0x670   : > { %v3543_v42 = vpop.f32.mrf.mxu0 }
 0x675   : > { %v3748_v39 = vpop.f32.mrf.mxu2 }
 0x678   : > { %v3546_v46 = vpop.f32.mrf.mxu0 }
 0x67d   : > { %v3750_v25 = vpop.f32.mrf.mxu2 }
 0x680   : > { %v3548_v60 = vpop.f32.mrf.mxu0 }
 0x681   : > { %v3719_v51 = vpop.f32.mrf.mxu1 }
 0x682   : > { %v3749_v10 = vadd.f32 %v3748_v39, %v3719_v51 }
 0x689   : > { %v3721_v52 = vpop.f32.mrf.mxu1 }
 0x68a   : > { %v3751_v61 = vadd.f32 %v3750_v25, %v3721_v52 }
 0x68c   : > { %v3768_v54 = vpack.c.bf16 %v3751_v61, %v3749_v10 }
 0x68e   : > { %4377 = vmatmul.msk.bf16.vlgmr.msrb.gmra.mxu0 %vm473_vm0, %v3768_v54  ;;  %v4494_v54 = vld [vmem:[%s6405_s6] ss:$0 sm:$0xff] }
 0x68f   : > { %v3753_v32 = vpop.f32.mrf.mxu2 }
 0x695   : > { %v3724_v62 = vpop.f32.mrf.mxu1 }
 0x696   : > { %v3754_v24 = vadd.f32 %v3753_v32, %v3724_v62  ;;  %v4495_v62 = vld [vmem:[%s6409_s10] ss:$0 sm:$0xff] }
 0x697   : > { %v3755_v9 = vpop.f32.mrf.mxu2 }
 0x69d   : > { %v3726_v27 = vpop.f32.mrf.mxu1 }
 0x69e   : > { %v3756_v3 = vadd.f32 %v3755_v9, %v3726_v27 }
 0x6a0   : > { %v3769_v50 = vpack.c.bf16 %v3756_v3, %v3754_v24 }
 0x6a2   : > { %4378 = vmatmul.msk.bf16.gmra.mxu0 %vm473_vm0, %v3769_v50 }
 0x6a5   : > { %v3729_v30 = vpop.f32.mrf.mxu1 }
 0x6ab   : > { %v3758_v11 = vpop.f32.mrf.mxu2 }
 0x6ac   : > { %v3759_v29 = vadd.f32 %v3758_v11, %v3729_v30 }
 0x6ad   : > { %v3731_v44 = vpop.f32.mrf.mxu1 }
 0x6b3   : > { %v3560_v13 = vpop.f32.mrf.mxu3  ;;  %v3760_v5 = vpop.f32.mrf.mxu2 }
 0x6b4   : > { %v3761_v6 = vadd.f32 %v3760_v5, %v3731_v44  ;;  %v3561_v8 = vadd.f32 %v3560_v13, %v3531_v21 }
 0x6b5   : > { %v3734_v56 = vpop.f32.mrf.mxu1 }
 0x6b6   : > { %v3589_v38 = vpop.f32.mrf.mxu0  ;;  %v3770_v4 = vpack.c.bf16 %v3761_v6, %v3759_v29 }
 0x6b7   : > { %v3590_v34 = vadd.f32 %v3589_v38, %v3561_v8 }
 0x6b8   : > { %4379 = vmatmul.msk.bf16.gmra.mxu0 %vm473_vm0, %v3770_v4 }
 0x6bb   : > { %v3562_v22 = vpop.f32.mrf.mxu3  ;;  %v3763_v53 = vpop.f32.mrf.mxu2 }
 0x6bc   : > { %v3563_v58 = vadd.f32 %v3562_v22, %v3533_v12  ;;  %v3764_v45 = vadd.f32 %v3763_v53, %v3734_v56 }
 0x6bd   : > { %v3736_v47 = vpop.f32.mrf.mxu1 }
 0x6be   : > { %v3591_v48 = vpop.f32.mrf.mxu0 }
 0x6bf   : > { %v3592_v57 = vadd.f32 %v3591_v48, %v3563_v58 }
 0x6c1   : > { %v3609_v18 = vpack.c.bf16 %v3592_v57, %v3590_v34 }
 0x6c3   : > { %4337 = vmatmul.msk.bf16.vlgmr.msrb.gmra.mxu3 %vm1133_vm2, %v3609_v18  ;;  %v3565_v16 = vpop.f32.mrf.mxu3  ;;  %v3765_v23 = vpop.f32.mrf.mxu2 }
 0x6c4   : > { %v3766_v31 = vadd.f32 %v3765_v23, %v3736_v47  ;;  %v3566_v0 = vadd.f32 %v3565_v16, %v3536_v28 }
 0x6c6   : > { %v3594_v33 = vpop.f32.mrf.mxu0  ;;  %v3771_v1 = vpack.c.bf16 %v3766_v31, %v3764_v45 }
 0x6c7   : > { %v3595_v36 = vadd.f32 %v3594_v33, %v3566_v0 }
 0x6c8   : > { %4380 = vmatmul.msk.bf16.gmra.mxu0 %vm473_vm0, %v3771_v1 }
 0x6cb   : > { %v3567_v26 = vpop.f32.mrf.mxu3 }
 0x6cc   : > { %v3568_v20 = vadd.f32 %v3567_v26, %v3538_v14 }
 0x6ce   : > { %v3596_v35 = vpop.f32.mrf.mxu0 }
 0x6cf   : > { %v3597_v2 = vadd.f32 %v3596_v35, %v3568_v20 }
 0x6d1   : > { %v3610_v55 = vpack.c.bf16 %v3597_v2, %v3595_v36 }
 0x6d3   : > { %4338 = vmatmul.msk.bf16.gmra.mxu3 %vm1133_vm2, %v3610_v55  ;;  %v3570_v43 = vpop.f32.mrf.mxu3 }
 0x6d4   : > { %v3571_v49 = vadd.f32 %v3570_v43, %v3541_v63 }
 0x6d6   : > { %v3599_v41 = vpop.f32.mrf.mxu0 }
 0x6d7   : > { %v3600_v19 = vadd.f32 %v3599_v41, %v3571_v49 }
 0x6db   : > { %v3572_v59 = vpop.f32.mrf.mxu3 }
 0x6dc   : > { %v3573_v17 = vadd.f32 %v3572_v59, %v3543_v42 }
 0x6de   : > { %v3601_v40 = vpop.f32.mrf.mxu0 }
 0x6df   : > { %v3602_v21 = vadd.f32 %v3601_v40, %v3573_v17 }
 0x6e1   : > { %v3611_v12 = vpack.c.bf16 %v3602_v21, %v3600_v19 }
 0x6e3   : > { %4339 = vmatmul.msk.bf16.gmra.mxu3 %vm1133_vm2, %v3611_v12  ;;  %v3575_v28 = vpop.f32.mrf.mxu3 }
 0x6e4   : > { %v3576_v51 = vadd.f32 %v3575_v28, %v3546_v46 }
 0x6e6   : > { %v3604_v14 = vpop.f32.mrf.mxu0 }
 0x6e7   : > { %v3605_v7 = vadd.f32 %v3604_v14, %v3576_v51 }
 0x6eb   : > { %v3577_v39 = vpop.f32.mrf.mxu3 }
 0x6ec   : > { %v3578_v52 = vadd.f32 %v3577_v39, %v3548_v60 }
 0x6ee   : > { %v3606_v25 = vpop.f32.mrf.mxu0 }
 0x6ef   : > { %v3607_v10 = vadd.f32 %v3606_v25, %v3578_v52 }
 0x6f1   : > { %v3612_v61 = vpack.c.bf16 %v3607_v10, %v3605_v7 }
 0x6f3   : > { %4340 = vmatmul.msk.bf16.gmra.mxu3 %vm1133_vm2, %v3612_v61 }
 0x70b   : > { %v3805_v63 = vpop.f32.mrf.mxu0 }
 0x70c   : > { %v3806_v37 = vadd.f32 %v4495_v62, %v3805_v63 }
 0x713   : > { %v3807_v42 = vpop.f32.mrf.mxu0 }
 0x714   : > { %v3808_v50 = vadd.f32 %v4495_v62, %v3807_v42 }
 0x71f   : > { %v3810_v27 = vpop.f32.mrf.mxu0 }
 0x720   : > { %v3811_v44 = vadd.f32 %v4495_v62, %v3810_v27 }
 0x727   : > { %v3812_v11 = vpop.f32.mrf.mxu0 }
 0x728   : > { %v3813_v4 = vadd.f32 %v4495_v62, %v3812_v11 }
 0x735   : > { %v3815_v8 = vpop.f32.mrf.mxu0 }
 0x736   : > { %v3816_v56 = vadd.f32 %v4495_v62, %v3815_v8 }
 0x73d   : > { %v3817_v53 = vpop.f32.mrf.mxu0 }
 0x73e   : > { %v3818_v45 = vadd.f32 %v4495_v62, %v3817_v53 }
 0x745   : > { %v3820_v31 = vpop.f32.mrf.mxu0 }
 0x746   : > { %v3642_v32 = vpop.f32.mrf.mxu3  ;;  %v3821_v20 = vadd.f32 %v4495_v62, %v3820_v31 }
 0x747   : > { %v3643_v15 = vadd.f32 %v4494_v54, %v3642_v32 }
 0x749   : > { %v3825_v46 = vadd.f32 %v3806_v37, %v3643_v15 }
 0x74b   : > { %v3833_v24 = vmax.f32 %v3825_v46, 0.0 }
 0x74d   : > { %3842 = vst.msk [vmem:[%s6347_s20] sm:$0xff] %vm3841_vm5, %v3833_v24  ;;  %v3822_v2 = vpop.f32.mrf.mxu0 }
 0x74e   : > { %v3644_v9 = vpop.f32.mrf.mxu3  ;;  %v3823_v41 = vadd.f32 %v4495_v62, %v3822_v2 }
 0x74f   : > { %v3645_v3 = vadd.f32 %v4494_v54, %v3644_v9 }
 0x751   : > { %v3826_v60 = vadd.f32 %v3808_v50, %v3645_v3 }
 0x753   : > { %v3834_v30 = vmax.f32 %v3826_v60, 0.0 }
 0x755   : > { %3843 = vst.msk [vmem:[%s6347_s20 + $0x8] sm:$0xff] %vm3841_vm5, %v3834_v30 }
 0x756   : > { %v3647_v13 = vpop.f32.mrf.mxu3 }
 0x757   : > { %v3648_v38 = vadd.f32 %v4494_v54, %v3647_v13 }
 0x759   : > { %v3827_v29 = vadd.f32 %v3811_v44, %v3648_v38 }
 0x75b   : > { %v3835_v5 = vmax.f32 %v3827_v29, 0.0 }
 0x75d   : > { %3844 = vst.msk [vmem:[%s6347_s20 + $0x10] sm:$0xff] %vm3841_vm5, %v3835_v5 }
 0x75e   : > { %v3649_v6 = vpop.f32.mrf.mxu3 }
 0x75f   : > { %v3650_v22 = vadd.f32 %v4494_v54, %v3649_v6 }
 0x761   : > { %v3828_v58 = vadd.f32 %v3813_v4, %v3650_v22 }
 0x763   : > { %v3836_v48 = vmax.f32 %v3828_v58, 0.0 }
 0x765   : > { %3845 = vst.msk [vmem:[%s6347_s20 + $0x18] sm:$0xff] %vm3841_vm5, %v3836_v48 }
 0x766   : > { %v3652_v34 = vpop.f32.mrf.mxu3 }
 0x767   : > { %v3653_v57 = vadd.f32 %v4494_v54, %v3652_v34 }
 0x769   : > { %v3829_v18 = vadd.f32 %v3816_v56, %v3653_v57 }
 0x76b   : > { %v3837_v16 = vmax.f32 %v3829_v18, 0.0 }
 0x76d   : > { %3846 = vst.msk [vmem:[%s6347_s20 + $0x20] sm:$0xff] %vm3841_vm5, %v3837_v16 }
 0x76e   : > { %v3654_v33 = vpop.f32.mrf.mxu3 }
 0x76f   : > { %v3655_v47 = vadd.f32 %v4494_v54, %v3654_v33 }
 0x771   : > { %v3830_v23 = vadd.f32 %v3818_v45, %v3655_v47 }
 0x773   : > { %v3838_v0 = vmax.f32 %v3830_v23, 0.0 }
 0x775   : > { %3847 = vst.msk [vmem:[%s6347_s20 + $0x28] sm:$0xff] %vm3841_vm5, %v3838_v0 }
 0x776   : > { %v3657_v26 = vpop.f32.mrf.mxu3 }
 0x777   : > { %v3658_v1 = vadd.f32 %v4494_v54, %v3657_v26 }
 0x779   : > { %v3831_v35 = vadd.f32 %v3821_v20, %v3658_v1 }
 0x77b   : > { %v3839_v36 = vmax.f32 %v3831_v35, 0.0 }
 0x77d   : > { %3848 = vst.msk [vmem:[%s6347_s20 + $0x30] sm:$0xff] %vm3841_vm5, %v3839_v36 }
 0x77e   : > { %v3659_v55 = vpop.f32.mrf.mxu3 }
 0x77f   : > { %v3660_v43 = vadd.f32 %v4494_v54, %v3659_v55 }
 0x781   : > { %v3832_v49 = vadd.f32 %v3823_v41, %v3660_v43 }
 0x783   : > { %v3840_v59 = vmax.f32 %v3832_v49, 0.0 }
 0x785   : > { %3849 = vst.msk [vmem:[%s6347_s20 + $0x38] sm:$0xff] %vm3841_vm5, %v3840_v59 }
 0x786   : > { %4523 = shalt.err (!%p4520_p3)
}
 0x787   : > { %s4560_s18 = smov 128   ;;  %s4561_s20 = smov 8  }
 0x788   : > { %4451 = dma.vmem_to_hbm [thread:$0]  (%p4665_p5), %s3864_s16, 1024, %s3866_s0, %s3851_s25, %s4560_s18, %s4560_s18, %s4561_s20  }
 0x789 PF: > { %p4457_p4 = scmp.ge.s32.totalorder %s4558_s24, 2  ;;  %s3880_s26 = sand.u32 1, %s4546_s21  }
 0x78a   : > { %s3881_s1 = scalar_lea.sflag [#allocation4], %s3880_s26 }
 0x78b   : > { %p4454_p7 = pnand %p4457_p4, %p4669_p6 }
 0x78d   : > { %p4455_p8 = pneg %p4454_p7 }
 0x78f   : > { %4541 = dma.done.wait (%p4455_p8), %s3881_s1, 1024  }
 0x790   : > { %4543 = vsyncadd (%p4455_p8), %s3881_s1, 4294966272  ;;  %p22_p9 = scmp.ge.s32.totalorder %s4652_s27, 4   ;;  %s6631_s21 = smov %s4550_s22 }
 0x791   : > { %s6632_s22 = smov %s4554_s23  ;;  %s6633_s23 = smov %s4663_s30 }
 0x792   : > { %s6634_s24 = smov %s4652_s27  ;;  %24 = sbr.rel (!%p22_p9) target bundleno = 6 (0x6), region = 111 }
 0x797   :  { %3887 = vsyncpa [#allocation4], 1 }
 0x798   :  { %3889 = vsyncpa [#allocation4 + $0x1], 1 }

</bundles_post_ra>
